<compile_context>
chip_gen: v7x
topology: tpu7x:2x2x1
jax: 0.10.0
libtpu: 0.0.40
codegen_flags: <defaults>
</compile_context>

<pallas_src>
import functools

import jax
import jax.numpy as jnp
from jax import lax
from jax.experimental import pallas as pl
from jax.experimental.pallas import tpu as pltpu


MARGIN = 128  # lane-aligned left margin of the flat zero-padded hidden-state buffers


# ----------------------------- Pallas kernel -------------------------------- #
def _make_convlstm_kernel(H, W, ksize, hidden_channels, step, emit_steps):
    """Fused kernel body: whole step x layer recurrence for one batch element."""
    nl = len(hidden_channels)
    pad = (ksize - 1) // 2
    HW = H * W
    ch_last = hidden_channels[-1]
    # Tap order (di-major) must match the wrapper's weight / x-patch packing.
    taps = [(di - pad, dj - pad) for di in range(ksize) for dj in range(ksize)]

    def kernel(xp_ref, *refs):
        # refs = (wmain_0, wh_0, b_0, ..., wmain_{nl-1}, wh_{nl-1}, b_{nl-1},
        #         out_ref, state_buf_0, ..., state_buf_{nl-1})
        wmain_refs = [refs[3 * i + 0] for i in range(nl)]
        wh_refs = [refs[3 * i + 1] for i in range(nl)]
        b_refs = [refs[3 * i + 2] for i in range(nl)]
        out_ref = refs[3 * nl]
        buf_refs = list(refs[3 * nl + 1:])

        # Column-validity masks for W-shifted taps (row over/underflow is absorbed by the
        # zero margins of the flat state buffers).  Computed once per program.
        col = lax.broadcasted_iota(jnp.int32, (1, HW), 1) % W
        col_mask = {-1: col >= 1, 0: None, 1: col <= W - 2}

        # Zero the state buffers: h = 0 initial state AND the permanent zero halo.
        # Must happen per grid program (scratch persists across batch elements).
        for i in range(nl):
            buf_refs[i][...] = jnp.zeros_like(buf_refs[i])

        # Hoisted per-layer loads (tiny, VMEM-resident operands).
        biases = [b_refs[i][...] for i in range(nl)]          # (4*ch, 1) f32
        wx0 = wmain_refs[0][...]                              # (4*ch0, 9*cin0) bf16

        # Cell state stays an f32 value in vregs across the unrolled recurrence.
        c_state = [jnp.zeros((hidden_channels[i], HW), jnp.float32) for i in range(nl)]

        def tap_window(buf_ref, ddi, ddj):
            # Static, lane-offset view of the flat padded state: element (r*W + c) of the
            # window is the padded input at (r+ddi, c+ddj).  Only the W-direction needs a
            # mask; the H-direction lands in the zero margins.
            off = MARGIN + ddi * W + ddj
            win = buf_ref[:, off:off + HW]                    # (ch_src, HW) bf16
            m = col_mask[ddj]
            if m is not None:
                win = jnp.where(m, win, jnp.zeros_like(win))
            return win

        out_row = 0
        # TODO(synk): for large `step`, convert to lax.fori_loop with c_state in VMEM
        # scratch; at step=2 full unrolling keeps register pressure low.
        for s in range(step):
            for i in range(nl):
                ch = hidden_channels[i]

                # Input-path contribution -> (4*ch, HW) f32 accumulator.
                if i == 0:
                    # One fused MXU matmul against the precomputed x im2col patches.
                    gates = jnp.dot(wx0, xp_ref[s], preferred_element_type=jnp.float32)
                else:
                    # Previous layer's hidden state (just written this step): per-tap
                    # accumulating matmuls, K = ch_prev, N = HW = 256.
                    gates = jnp.zeros((4 * ch, HW), jnp.float32)
                    for t, (ddi, ddj) in enumerate(taps):
                        w_t = wmain_refs[i][t]                       # (4*ch, ch_prev) bf16
                        win = tap_window(buf_refs[i - 1], ddi, ddj)  # (ch_prev, HW) bf16
                        gates = gates + jnp.dot(w_t, win,
                                                preferred_element_type=jnp.float32)

                # Recurrent-path contribution (own hidden state from step s-1).
                for t, (ddi, ddj) in enumerate(taps):
                    w_t = wh_refs[i][t]                              # (4*ch, ch) bf16
                    win = tap_window(buf_refs[i], ddi, ddj)          # (ch, HW) bf16
                    gates = gates + jnp.dot(w_t, win,
                                            preferred_element_type=jnp.float32)

                gates = gates + biases[i]                            # (4*ch,1) lane-bcast

                # Gate order (i, f, o, c): one dense sigmoid slab + one tanh slab.
                sig = jax.nn.sigmoid(gates[:3 * ch, :])
                ig = sig[0 * ch:1 * ch, :]
                fg = sig[1 * ch:2 * ch, :]
                og = sig[2 * ch:3 * ch, :]
                gc = jnp.tanh(gates[3 * ch:4 * ch, :])

                cc = fg * c_state[i] + ig * gc
                h_new = og * jnp.tanh(cc)                            # (ch, HW) f32
                c_state[i] = cc

                # Write h into this layer's flat padded state (lane-aligned interior):
                # it is the recurrent input for step s+1 and the next layer's input.
                buf_refs[i][:, MARGIN:MARGIN + HW] = h_new.astype(jnp.bfloat16)

                if i == nl - 1 and s in emit_steps:                  # static decision
                    out_ref[out_row:out_row + ch_last, :] = h_new    # full-lane store
                    out_row += ch_last

    return kernel


# ------------------------------ JAX wrapper ---------------------------------- #
def convlstm_forward(x_nchw, params, hidden_channels, kernel_size, step, effective_step):
    """Mirrors ConvLSTM.forward. Input/output are NCHW like the PyTorch module."""
    B, Ctot, H, W = x_nchw.shape
    k = kernel_size
    pad = (k - 1) // 2
    cin0 = Ctot // 8
    assert step * cin0 <= Ctot, "step * (C//8) exceeds input channels (OOB in reference)"
    nl = len(hidden_channels)
    ch_last = hidden_channels[-1]
    in_chs = [cin0] + list(hidden_channels)
    HW = H * W
    KX = k * k * cin0
    emit_steps = [s for s in range(step) if s <= effective_step[0]]
    n_out = len(emit_steps)
    assert n_out >= 1

    # Flat padded state buffer size: lane-aligned interior at [MARGIN, MARGIN+HW), zero
    # margins of >= pad*(W+1) on both sides absorb row over/underflow of the tap windows.
    halo = pad * (W + 1)
    assert MARGIN >= halo
    NBUF = MARGIN + ((HW + halo + 127) // 128) * 128

    # --- Layer-0 x im2col patches, transposed layout (9*cin0, HW), built in the wrapper
    #     (pure layout plumbing; x does not depend on the recurrence).  Only the
    #     step*cin0 channels that are ever read are materialized.
    xs = x_nchw[:, :step * cin0].astype(jnp.float32).reshape(B, step, cin0, H, W)
    xs_pad = jnp.pad(xs, ((0, 0), (0, 0), (0, 0), (pad, pad), (pad, pad)))
    tap_views = [xs_pad[:, :, :, di:di + H, dj:dj + W]
                 for di in range(k) for dj in range(k)]              # (B,step,cin0,H,W)
    xp = jnp.stack(tap_views, axis=2)                                # (B,step,9,cin0,H,W)
    xp = xp.reshape(B, step, KX, HW).astype(jnp.bfloat16)

    operands = [xp]
    in_specs = [pl.BlockSpec((None, step, KX, HW), lambda b: (b, 0, 0, 0))]

    # --- Weights: transposed to (4*ch, K) so gates come out lane-dense; bf16 MXU
    #     operands, f32 biases.  Constant index_maps -> fetched once, VMEM-resident.
    for i, ch in enumerate(hidden_channels):
        cin = in_chs[i]
        p = params[i]
        if i == 0:
            wmain = p['Wx'].reshape(k * k * cin, 4 * ch).T.astype(jnp.bfloat16)
            wmain_spec = pl.BlockSpec((4 * ch, KX), lambda b: (0, 0))
        else:
            wmain = jnp.transpose(p['Wx'], (0, 1, 3, 2)).reshape(
                k * k, 4 * ch, cin).astype(jnp.bfloat16)             # per-tap (4ch, cin)
            wmain_spec = pl.BlockSpec((k * k, 4 * ch, cin), lambda b: (0, 0, 0))
        wh = jnp.transpose(p['Wh'], (0, 1, 3, 2)).reshape(
            k * k, 4 * ch, ch).astype(jnp.bfloat16)                  # per-tap (4ch, ch)
        bias = p['b'].reshape(4 * ch, 1).astype(jnp.float32)
        operands += [wmain, wh, bias]
        in_specs += [wmain_spec,
                     pl.BlockSpec((k * k, 4 * ch, ch), lambda b: (0, 0, 0)),
                     pl.BlockSpec((4 * ch, 1), lambda b: (0, 0))]

    kernel = _make_convlstm_kernel(H, W, k, hidden_channels, step, emit_steps)

    out = pl.pallas_call(
        kernel,
        out_shape=jax.ShapeDtypeStruct((B, n_out * ch_last, HW), jnp.float32),
        grid=(B,),
        in_specs=in_specs,
        out_specs=pl.BlockSpec((None, n_out * ch_last, HW), lambda b: (b, 0, 0)),
        scratch_shapes=[pltpu.VMEM((ch, NBUF), jnp.bfloat16) for ch in hidden_channels],
        compiler_params=pltpu.CompilerParams(
            dimension_semantics=("parallel",),        # batch split across TCs on v7x
            vmem_limit_bytes=32 * 1024 * 1024),
    )(*operands)

    # Lane-dense kernel output is already channel-major: just reshape to NCHW.
    return out.reshape(B, n_out * ch_last, H, W)


def init_params(key, input_channels, hidden_channels, k):
    """Conv weights in HWIO with the four LSTM gates fused (order i, f, o, c)."""
    in_chs = [input_channels] + list(hidden_channels)
    params = []
    for i, ch in enumerate(hidden_channels):
        assert ch % 2 == 0
        cin = in_chs[i]
        key, k1, k2, k3 = jax.random.split(key, 4)
        params.append(dict(
            Wx=0.1 * jax.random.normal(k1, (k, k, cin, 4 * ch), jnp.float32),
            Wh=0.1 * jax.random.normal(k2, (k, k, ch, 4 * ch), jnp.float32),
            b=0.1 * jax.random.normal(k3, (4 * ch,), jnp.float32),
            # Peephole weights Wci/Wcf/Wco are identically zero in the PyTorch module
            # (created by init_hidden as zeros, never written in forward) -> omitted.
        ))
    return params


# --------------------------- Pure-JAX reference ------------------------------ #
def _conv_same(x_nhwc, w_hwio):
    return lax.conv_general_dilated(
        x_nhwc, w_hwio, (1, 1), 'SAME',
        dimension_numbers=('NHWC', 'HWIO', 'NHWC'),
        precision=lax.Precision.HIGHEST)


def convlstm_forward_ref(x_nchw, params, hidden_channels, kernel_size, step,
                         effective_step, quantize_bf16=False):
    """Reference (mirrors ConvLSTM.forward).  With quantize_bf16=True the conv
    inputs/weights are rounded to bf16 (same operand precision as the kernel's MXU
    path) while all arithmetic stays f32."""
    q = ((lambda a: a.astype(jnp.bfloat16).astype(jnp.float32))
         if quantize_bf16 else (lambda a: a))
    B, Ctot, H, W = x_nchw.shape
    x_nhwc = jnp.transpose(x_nchw, (0, 2, 3, 1)).astype(jnp.float32)
    b = Ctot // 8
    internal_state, outputs = [], []
    for s in range(step):
        x = x_nhwc[..., s * b:(s + 1) * b]
        for i, ch in enumerate(hidden_channels):
            if s == 0:
                internal_state.append((jnp.zeros((B, H, W, ch), jnp.float32),
                                       jnp.zeros((B, H, W, ch), jnp.float32)))
            h, c = internal_state[i]
            p = params[i]
            g = (_conv_same(q(x), q(p['Wx'])) + _conv_same(q(h), q(p['Wh']))
                 + p['b'].reshape(1, 1, 1, -1))
            ig = jax.nn.sigmoid(g[..., 0 * ch:1 * ch])   # + c * Wci, Wci == 0
            fg = jax.nn.sigmoid(g[..., 1 * ch:2 * ch])   # + c * Wcf, Wcf == 0
            og = jax.nn.sigmoid(g[..., 2 * ch:3 * ch])   # + cc * Wco, Wco == 0
            cc = fg * c + ig * jnp.tanh(g[..., 3 * ch:4 * ch])
            x = og * jnp.tanh(cc)
            internal_state[i] = (x, cc)
        if s <= effective_step[0]:
            outputs.append(x)
    result = outputs[0]
    for j in range(1, len(outputs)):
        result = jnp.concatenate([result, outputs[j]], axis=-1)
    return jnp.transpose(result, (0, 3, 1, 2))


# ----------------------------------- main ------------------------------------ #
if __name__ == "__main__":
    key = jax.random.PRNGKey(0)
    B, Ctot, H, W = 2, 32, 16, 16          # input NCHW; b = Ctot // 8 = 4 channels/step
    hidden_channels = [8, 8]
    kernel_size = 3
    step = 2
    effective_step = [1]

    k_in, k_par = jax.random.split(key)
    x = jax.random.normal(k_in, (B, Ctot, H, W), dtype=jnp.float32)
    params = init_params(k_par, Ctot // 8, hidden_channels, kernel_size)

    fwd = jax.jit(functools.partial(convlstm_forward,
                                    hidden_channels=hidden_channels,
                                    kernel_size=kernel_size,
                                    step=step,
                                    effective_step=effective_step))
    out = jax.block_until_ready(fwd(x, params))
    assert out.shape == (B, step * hidden_channels[-1], H, W), out.shape

    # Strict check: reference with the same bf16-rounded matmul operands (f32 math)
    # -> isolates kernel indexing / tap decomposition correctness from precision policy.
    ref_bf16 = convlstm_forward_ref(x, params, hidden_channels, kernel_size,
                                    step, effective_step, quantize_bf16=True)
    # Sanity check of the bf16 precision policy against the full-f32 module.
    ref_f32 = convlstm_forward_ref(x, params, hidden_channels, kernel_size,
                                   step, effective_step, quantize_bf16=False)

    err_exact = float(jnp.max(jnp.abs(out - ref_bf16)))
    err_f32 = float(jnp.max(jnp.abs(out - ref_f32)))
    if err_exact > 5e-3:
        raise AssertionError(
            f"Pallas kernel mismatch vs bf16-operand reference: max_err={err_exact}")
    if err_f32 > 5e-2:
        raise AssertionError(
            f"Pallas kernel too far from f32 reference: max_err={err_f32}")

    print("KERNEL_OK")
</pallas_src>

<mosaic_0001>
module attributes {stable_mosaic.version = 11 : i64} {
  func.func @kernel(%arg0: i32, %arg1: memref<1x2x36x256xbf16, #tpu.memory_space<vmem>>, %arg2: memref<32x36xbf16, #tpu.memory_space<vmem>>, %arg3: memref<9x32x8xbf16, #tpu.memory_space<vmem>>, %arg4: memref<32x1xf32, #tpu.memory_space<vmem>>, %arg5: memref<9x32x8xbf16, #tpu.memory_space<vmem>>, %arg6: memref<9x32x8xbf16, #tpu.memory_space<vmem>>, %arg7: memref<32x1xf32, #tpu.memory_space<vmem>>, %arg8: memref<1x16x256xf32, #tpu.memory_space<vmem>>, %arg9: memref<8x512xbf16, #tpu.memory_space<vmem>>, %arg10: memref<8x512xbf16, #tpu.memory_space<vmem>>) attributes {dimension_semantics = [#tpu.dimension_semantics<parallel>], iteration_bounds = array<i64: 2>, scalar_prefetch = 0 : i64, scratch_operands = 2 : i64, tpu.core_type = #tpu.core_type<tc>, window_params = [{transform_indices = @transform_0, window_bounds = array<i64: 1, 2, 36, 256>}, {pipeline_mode = #tpu.pipeline_mode<synchronous>, transform_indices = @transform_1, window_bounds = array<i64: 32, 36>}, {pipeline_mode = #tpu.pipeline_mode<synchronous>, transform_indices = @transform_2, window_bounds = array<i64: 9, 32, 8>}, {pipeline_mode = #tpu.pipeline_mode<synchronous>, transform_indices = @transform_3, window_bounds = array<i64: 32, 1>}, {pipeline_mode = #tpu.pipeline_mode<synchronous>, transform_indices = @transform_4, window_bounds = array<i64: 9, 32, 8>}, {pipeline_mode = #tpu.pipeline_mode<synchronous>, transform_indices = @transform_5, window_bounds = array<i64: 9, 32, 8>}, {pipeline_mode = #tpu.pipeline_mode<synchronous>, transform_indices = @transform_6, window_bounds = array<i64: 32, 1>}, {transform_indices = @transform_7, window_bounds = array<i64: 1, 16, 256>}]} {
    %0 = tpu.iota {dimensions = array<i32: 1>} : vector<1x256xi32>
    %c16_i32 = arith.constant 16 : i32
    %c0_i32 = arith.constant 0 : i32
    %1 = arith.cmpi eq, %c16_i32, %c0_i32 : i32
    %c1_i32 = arith.constant 1 : i32
    %2 = arith.select %1, %c1_i32, %c16_i32 : i32
    %3 = vector.broadcast %2 : i32 to vector<1x256xi32>
    %4 = arith.remsi %0, %3 : vector<1x256xi32>
    %c0_i32_0 = arith.constant 0 : i32
    %5 = vector.broadcast %c0_i32_0 : i32 to vector<1x256xi32>
    %6 = arith.cmpi ne, %4, %5 : vector<1x256xi32>
    %c0_i32_1 = arith.constant 0 : i32
    %7 = vector.broadcast %c0_i32_1 : i32 to vector<1x256xi32>
    %8 = arith.cmpi slt, %4, %7 : vector<1x256xi32>
    %c0_i32_2 = arith.constant 0 : i32
    %9 = arith.cmpi slt, %2, %c0_i32_2 : i32
    %10 = vector.broadcast %9 : i1 to vector<1x256xi1>
    %11 = vector.broadcast %10 : vector<1x256xi1> to vector<1x256xi1>
    %12 = arith.xori %8, %11 : vector<1x256xi1>
    %13 = arith.andi %12, %6 : vector<1x256xi1>
    %14 = vector.broadcast %2 : i32 to vector<1x256xi32>
    %15 = arith.addi %4, %14 : vector<1x256xi32>
    %16 = arith.select %13, %15, %4 : vector<1x256xi1>, vector<1x256xi32>
    %c1_i32_3 = arith.constant 1 : i32
    %17 = vector.broadcast %c1_i32_3 : i32 to vector<1x256xi32>
    %18 = arith.cmpi sge, %16, %17 : vector<1x256xi32>
    %c14_i32 = arith.constant 14 : i32
    %19 = vector.broadcast %c14_i32 : i32 to vector<1x256xi32>
    %20 = arith.cmpi sle, %16, %19 : vector<1x256xi32>
    %cst = arith.constant 0.000000e+00 : bf16
    %21 = vector.broadcast %cst : bf16 to vector<8x512xbf16>
    %c0 = arith.constant 0 : index
    %c0_4 = arith.constant 0 : index
    %22 = vector.load %arg9[%c0, %c0_4] : memref<8x512xbf16, #tpu.memory_space<vmem>>, vector<8x512xbf16>
    tpu.vector_store %arg9[%c0, %c0_4], %21 {strides = array<i32>} : memref<8x512xbf16, #tpu.memory_space<vmem>>, vector<8x512xbf16>,
    %cst_5 = arith.constant 0.000000e+00 : bf16
    %23 = vector.broadcast %cst_5 : bf16 to vector<8x512xbf16>
    %c0_6 = arith.constant 0 : index
    %c0_7 = arith.constant 0 : index
    %24 = vector.load %arg10[%c0_6, %c0_7] : memref<8x512xbf16, #tpu.memory_space<vmem>>, vector<8x512xbf16>
    tpu.vector_store %arg10[%c0_6, %c0_7], %23 {strides = array<i32>} : memref<8x512xbf16, #tpu.memory_space<vmem>>, vector<8x512xbf16>,
    %c0_8 = arith.constant 0 : index
    %c0_9 = arith.constant 0 : index
    %25 = vector.load %arg4[%c0_8, %c0_9] : memref<32x1xf32, #tpu.memory_space<vmem>>, vector<32x1xf32>
    %c0_10 = arith.constant 0 : index
    %c0_11 = arith.constant 0 : index
    %26 = vector.load %arg7[%c0_10, %c0_11] : memref<32x1xf32, #tpu.memory_space<vmem>>, vector<32x1xf32>
    %c0_12 = arith.constant 0 : index
    %c0_13 = arith.constant 0 : index
    %27 = vector.load %arg2[%c0_12, %c0_13] : memref<32x36xbf16, #tpu.memory_space<vmem>>, vector<32x36xbf16>
    %cst_14 = arith.constant 0.000000e+00 : f32
    %28 = vector.broadcast %cst_14 : f32 to vector<8x256xf32>
    %cst_15 = arith.constant 0.000000e+00 : f32
    %29 = vector.broadcast %cst_15 : f32 to vector<8x256xf32>
    %c0_16 = arith.constant 0 : index
    %c0_17 = arith.constant 0 : index
    %c0_18 = arith.constant 0 : index
    %c0_19 = arith.constant 0 : index
    %30 = vector.load %arg1[%c0_16, %c0_17, %c0_18, %c0_19] : memref<1x2x36x256xbf16, #tpu.memory_space<vmem>>, vector<1x1x36x256xbf16>
    %31 = vector.shape_cast %30 : vector<1x1x36x256xbf16> to vector<36x256xbf16>
    %cst_20 = arith.constant dense<0.000000e+00> : vector<32x256xf32>
    %32 = tpu.matmul %27, %31, %cst_20 {dimension_numbers = #tpu.dot_dimension_numbers<[1], [0], [0], [1], [0, 0, 1, 1], [], []>} : vector<32x36xbf16>, vector<36x256xbf16>, vector<32x256xf32> -> vector<32x256xf32>
    %c0_21 = arith.constant 0 : index
    %c0_22 = arith.constant 0 : index
    %c0_23 = arith.constant 0 : index
    %33 = vector.load %arg3[%c0_21, %c0_22, %c0_23] : memref<9x32x8xbf16, #tpu.memory_space<vmem>>, vector<1x32x8xbf16>
    %34 = vector.shape_cast %33 : vector<1x32x8xbf16> to vector<32x8xbf16>
    %c0_24 = arith.constant 0 : index
    %c111 = arith.constant 111 : index
    %35 = vector.load %arg9[%c0_24, %c111] : memref<8x512xbf16, #tpu.memory_space<vmem>>, vector<8x256xbf16>
    %cst_25 = arith.constant 0.000000e+00 : bf16
    %36 = vector.broadcast %cst_25 : bf16 to vector<8x256xbf16>
    %37 = vector.shape_cast %18 : vector<1x256xi1> to vector<1x256xi1>
    %38 = vector.broadcast %37 : vector<1x256xi1> to vector<8x256xi1>
    %39 = arith.select %38, %35, %36 : vector<8x256xi1>, vector<8x256xbf16>
    %cst_26 = arith.constant dense<0.000000e+00> : vector<32x256xf32>
    %40 = tpu.matmul %34, %39, %cst_26 {dimension_numbers = #tpu.dot_dimension_numbers<[1], [0], [0], [1], [0, 0, 1, 1], [], []>} : vector<32x8xbf16>, vector<8x256xbf16>, vector<32x256xf32> -> vector<32x256xf32>
    %41 = arith.addf %32, %40 : vector<32x256xf32>
    %c1 = arith.constant 1 : index
    %c0_27 = arith.constant 0 : index
    %c0_28 = arith.constant 0 : index
    %42 = vector.load %arg3[%c1, %c0_27, %c0_28] : memref<9x32x8xbf16, #tpu.memory_space<vmem>>, vector<1x32x8xbf16>
    %43 = vector.shape_cast %42 : vector<1x32x8xbf16> to vector<32x8xbf16>
    %c0_29 = arith.constant 0 : index
    %c112 = arith.constant 112 : index
    %44 = vector.load %arg9[%c0_29, %c112] : memref<8x512xbf16, #tpu.memory_space<vmem>>, vector<8x256xbf16>
    %cst_30 = arith.constant dense<0.000000e+00> : vector<32x256xf32>
    %45 = tpu.matmul %43, %44, %cst_30 {dimension_numbers = #tpu.dot_dimension_numbers<[1], [0], [0], [1], [0, 0, 1, 1], [], []>} : vector<32x8xbf16>, vector<8x256xbf16>, vector<32x256xf32> -> vector<32x256xf32>
    %46 = arith.addf %41, %45 : vector<32x256xf32>
    %c2 = arith.constant 2 : index
    %c0_31 = arith.constant 0 : index
    %c0_32 = arith.constant 0 : index
    %47 = vector.load %arg3[%c2, %c0_31, %c0_32] : memref<9x32x8xbf16, #tpu.memory_space<vmem>>, vector<1x32x8xbf16>
    %48 = vector.shape_cast %47 : vector<1x32x8xbf16> to vector<32x8xbf16>
    %c0_33 = arith.constant 0 : index
    %c113 = arith.constant 113 : index
    %49 = vector.load %arg9[%c0_33, %c113] : memref<8x512xbf16, #tpu.memory_space<vmem>>, vector<8x256xbf16>
    %cst_34 = arith.constant 0.000000e+00 : bf16
    %50 = vector.broadcast %cst_34 : bf16 to vector<8x256xbf16>
    %51 = vector.shape_cast %20 : vector<1x256xi1> to vector<1x256xi1>
    %52 = vector.broadcast %51 : vector<1x256xi1> to vector<8x256xi1>
    %53 = arith.select %52, %49, %50 : vector<8x256xi1>, vector<8x256xbf16>
    %cst_35 = arith.constant dense<0.000000e+00> : vector<32x256xf32>
    %54 = tpu.matmul %48, %53, %cst_35 {dimension_numbers = #tpu.dot_dimension_numbers<[1], [0], [0], [1], [0, 0, 1, 1], [], []>} : vector<32x8xbf16>, vector<8x256xbf16>, vector<32x256xf32> -> vector<32x256xf32>
    %55 = arith.addf %46, %54 : vector<32x256xf32>
    %c3 = arith.constant 3 : index
    %c0_36 = arith.constant 0 : index
    %c0_37 = arith.constant 0 : index
    %56 = vector.load %arg3[%c3, %c0_36, %c0_37] : memref<9x32x8xbf16, #tpu.memory_space<vmem>>, vector<1x32x8xbf16>
    %57 = vector.shape_cast %56 : vector<1x32x8xbf16> to vector<32x8xbf16>
    %c0_38 = arith.constant 0 : index
    %c127 = arith.constant 127 : index
    %58 = vector.load %arg9[%c0_38, %c127] : memref<8x512xbf16, #tpu.memory_space<vmem>>, vector<8x256xbf16>
    %cst_39 = arith.constant 0.000000e+00 : bf16
    %59 = vector.broadcast %cst_39 : bf16 to vector<8x256xbf16>
    %60 = vector.shape_cast %18 : vector<1x256xi1> to vector<1x256xi1>
    %61 = vector.broadcast %60 : vector<1x256xi1> to vector<8x256xi1>
    %62 = arith.select %61, %58, %59 : vector<8x256xi1>, vector<8x256xbf16>
    %cst_40 = arith.constant dense<0.000000e+00> : vector<32x256xf32>
    %63 = tpu.matmul %57, %62, %cst_40 {dimension_numbers = #tpu.dot_dimension_numbers<[1], [0], [0], [1], [0, 0, 1, 1], [], []>} : vector<32x8xbf16>, vector<8x256xbf16>, vector<32x256xf32> -> vector<32x256xf32>
    %64 = arith.addf %55, %63 : vector<32x256xf32>
    %c4 = arith.constant 4 : index
    %c0_41 = arith.constant 0 : index
    %c0_42 = arith.constant 0 : index
    %65 = vector.load %arg3[%c4, %c0_41, %c0_42] : memref<9x32x8xbf16, #tpu.memory_space<vmem>>, vector<1x32x8xbf16>
    %66 = vector.shape_cast %65 : vector<1x32x8xbf16> to vector<32x8xbf16>
    %c0_43 = arith.constant 0 : index
    %c128 = arith.constant 128 : index
    %67 = vector.load %arg9[%c0_43, %c128] : memref<8x512xbf16, #tpu.memory_space<vmem>>, vector<8x256xbf16>
    %cst_44 = arith.constant dense<0.000000e+00> : vector<32x256xf32>
    %68 = tpu.matmul %66, %67, %cst_44 {dimension_numbers = #tpu.dot_dimension_numbers<[1], [0], [0], [1], [0, 0, 1, 1], [], []>} : vector<32x8xbf16>, vector<8x256xbf16>, vector<32x256xf32> -> vector<32x256xf32>
    %69 = arith.addf %64, %68 : vector<32x256xf32>
    %c5 = arith.constant 5 : index
    %c0_45 = arith.constant 0 : index
    %c0_46 = arith.constant 0 : index
    %70 = vector.load %arg3[%c5, %c0_45, %c0_46] : memref<9x32x8xbf16, #tpu.memory_space<vmem>>, vector<1x32x8xbf16>
    %71 = vector.shape_cast %70 : vector<1x32x8xbf16> to vector<32x8xbf16>
    %c0_47 = arith.constant 0 : index
    %c129 = arith.constant 129 : index
    %72 = vector.load %arg9[%c0_47, %c129] : memref<8x512xbf16, #tpu.memory_space<vmem>>, vector<8x256xbf16>
    %cst_48 = arith.constant 0.000000e+00 : bf16
    %73 = vector.broadcast %cst_48 : bf16 to vector<8x256xbf16>
    %74 = vector.shape_cast %20 : vector<1x256xi1> to vector<1x256xi1>
    %75 = vector.broadcast %74 : vector<1x256xi1> to vector<8x256xi1>
    %76 = arith.select %75, %72, %73 : vector<8x256xi1>, vector<8x256xbf16>
    %cst_49 = arith.constant dense<0.000000e+00> : vector<32x256xf32>
    %77 = tpu.matmul %71, %76, %cst_49 {dimension_numbers = #tpu.dot_dimension_numbers<[1], [0], [0], [1], [0, 0, 1, 1], [], []>} : vector<32x8xbf16>, vector<8x256xbf16>, vector<32x256xf32> -> vector<32x256xf32>
    %78 = arith.addf %69, %77 : vector<32x256xf32>
    %c6 = arith.constant 6 : index
    %c0_50 = arith.constant 0 : index
    %c0_51 = arith.constant 0 : index
    %79 = vector.load %arg3[%c6, %c0_50, %c0_51] : memref<9x32x8xbf16, #tpu.memory_space<vmem>>, vector<1x32x8xbf16>
    %80 = vector.shape_cast %79 : vector<1x32x8xbf16> to vector<32x8xbf16>
    %c0_52 = arith.constant 0 : index
    %c143 = arith.constant 143 : index
    %81 = vector.load %arg9[%c0_52, %c143] : memref<8x512xbf16, #tpu.memory_space<vmem>>, vector<8x256xbf16>
    %cst_53 = arith.constant 0.000000e+00 : bf16
    %82 = vector.broadcast %cst_53 : bf16 to vector<8x256xbf16>
    %83 = vector.shape_cast %18 : vector<1x256xi1> to vector<1x256xi1>
    %84 = vector.broadcast %83 : vector<1x256xi1> to vector<8x256xi1>
    %85 = arith.select %84, %81, %82 : vector<8x256xi1>, vector<8x256xbf16>
    %cst_54 = arith.constant dense<0.000000e+00> : vector<32x256xf32>
    %86 = tpu.matmul %80, %85, %cst_54 {dimension_numbers = #tpu.dot_dimension_numbers<[1], [0], [0], [1], [0, 0, 1, 1], [], []>} : vector<32x8xbf16>, vector<8x256xbf16>, vector<32x256xf32> -> vector<32x256xf32>
    %87 = arith.addf %78, %86 : vector<32x256xf32>
    %c7 = arith.constant 7 : index
    %c0_55 = arith.constant 0 : index
    %c0_56 = arith.constant 0 : index
    %88 = vector.load %arg3[%c7, %c0_55, %c0_56] : memref<9x32x8xbf16, #tpu.memory_space<vmem>>, vector<1x32x8xbf16>
    %89 = vector.shape_cast %88 : vector<1x32x8xbf16> to vector<32x8xbf16>
    %c0_57 = arith.constant 0 : index
    %c144 = arith.constant 144 : index
    %90 = vector.load %arg9[%c0_57, %c144] : memref<8x512xbf16, #tpu.memory_space<vmem>>, vector<8x256xbf16>
    %cst_58 = arith.constant dense<0.000000e+00> : vector<32x256xf32>
    %91 = tpu.matmul %89, %90, %cst_58 {dimension_numbers = #tpu.dot_dimension_numbers<[1], [0], [0], [1], [0, 0, 1, 1], [], []>} : vector<32x8xbf16>, vector<8x256xbf16>, vector<32x256xf32> -> vector<32x256xf32>
    %92 = arith.addf %87, %91 : vector<32x256xf32>
    %c8 = arith.constant 8 : index
    %c0_59 = arith.constant 0 : index
    %c0_60 = arith.constant 0 : index
    %93 = vector.load %arg3[%c8, %c0_59, %c0_60] : memref<9x32x8xbf16, #tpu.memory_space<vmem>>, vector<1x32x8xbf16>
    %94 = vector.shape_cast %93 : vector<1x32x8xbf16> to vector<32x8xbf16>
    %c0_61 = arith.constant 0 : index
    %c145 = arith.constant 145 : index
    %95 = vector.load %arg9[%c0_61, %c145] : memref<8x512xbf16, #tpu.memory_space<vmem>>, vector<8x256xbf16>
    %cst_62 = arith.constant 0.000000e+00 : bf16
    %96 = vector.broadcast %cst_62 : bf16 to vector<8x256xbf16>
    %97 = vector.shape_cast %20 : vector<1x256xi1> to vector<1x256xi1>
    %98 = vector.broadcast %97 : vector<1x256xi1> to vector<8x256xi1>
    %99 = arith.select %98, %95, %96 : vector<8x256xi1>, vector<8x256xbf16>
    %cst_63 = arith.constant dense<0.000000e+00> : vector<32x256xf32>
    %100 = tpu.matmul %94, %99, %cst_63 {dimension_numbers = #tpu.dot_dimension_numbers<[1], [0], [0], [1], [0, 0, 1, 1], [], []>} : vector<32x8xbf16>, vector<8x256xbf16>, vector<32x256xf32> -> vector<32x256xf32>
    %101 = arith.addf %92, %100 : vector<32x256xf32>
    %102 = vector.broadcast %25 : vector<32x1xf32> to vector<32x256xf32>
    %103 = arith.addf %101, %102 : vector<32x256xf32>
    %104 = vector.extract_strided_slice %103 {offsets = [0, 0], sizes = [24, 256], strides = [1, 1]} : vector<32x256xf32> to vector<24x256xf32>
    %105 = arith.negf %104 : vector<24x256xf32>
    %106 = math.exp %105 : vector<24x256xf32>
    %cst_64 = arith.constant 1.000000e+00 : f32
    %107 = vector.broadcast %cst_64 : f32 to vector<24x256xf32>
    %108 = arith.addf %107, %106 : vector<24x256xf32>
    %109 = arith.divf %107, %108 : vector<24x256xf32>
    %110 = vector.extract_strided_slice %109 {offsets = [0, 0], sizes = [8, 256], strides = [1, 1]} : vector<24x256xf32> to vector<8x256xf32>
    %111 = vector.extract_strided_slice %109 {offsets = [8, 0], sizes = [8, 256], strides = [1, 1]} : vector<24x256xf32> to vector<8x256xf32>
    %112 = vector.extract_strided_slice %109 {offsets = [16, 0], sizes = [8, 256], strides = [1, 1]} : vector<24x256xf32> to vector<8x256xf32>
    %113 = vector.extract_strided_slice %103 {offsets = [24, 0], sizes = [8, 256], strides = [1, 1]} : vector<32x256xf32> to vector<8x256xf32>
    %114 = math.tanh %113 : vector<8x256xf32>
    %115 = arith.mulf %111, %28 : vector<8x256xf32>
    %116 = arith.mulf %110, %114 : vector<8x256xf32>
    %117 = arith.addf %115, %116 : vector<8x256xf32>
    %118 = math.tanh %117 : vector<8x256xf32>
    %119 = arith.mulf %112, %118 : vector<8x256xf32>
    %120 = arith.truncf %119 : vector<8x256xf32> to vector<8x256xbf16>
    %c0_65 = arith.constant 0 : index
    %c128_66 = arith.constant 128 : index
    %121 = vector.load %arg9[%c0_65, %c128_66] : memref<8x512xbf16, #tpu.memory_space<vmem>>, vector<8x256xbf16>
    tpu.vector_store %arg9[%c0_65, %c128_66], %120 {strides = array<i32>} : memref<8x512xbf16, #tpu.memory_space<vmem>>, vector<8x256xbf16>,
    %cst_67 = arith.constant 0.000000e+00 : f32
    %122 = vector.broadcast %cst_67 : f32 to vector<32x256xf32>
    %c0_68 = arith.constant 0 : index
    %c0_69 = arith.constant 0 : index
    %c0_70 = arith.constant 0 : index
    %123 = vector.load %arg5[%c0_68, %c0_69, %c0_70] : memref<9x32x8xbf16, #tpu.memory_space<vmem>>, vector<1x32x8xbf16>
    %124 = vector.shape_cast %123 : vector<1x32x8xbf16> to vector<32x8xbf16>
    %c0_71 = arith.constant 0 : index
    %c111_72 = arith.constant 111 : index
    %125 = vector.load %arg9[%c0_71, %c111_72] : memref<8x512xbf16, #tpu.memory_space<vmem>>, vector<8x256xbf16>
    %cst_73 = arith.constant 0.000000e+00 : bf16
    %126 = vector.broadcast %cst_73 : bf16 to vector<8x256xbf16>
    %127 = vector.shape_cast %18 : vector<1x256xi1> to vector<1x256xi1>
    %128 = vector.broadcast %127 : vector<1x256xi1> to vector<8x256xi1>
    %129 = arith.select %128, %125, %126 : vector<8x256xi1>, vector<8x256xbf16>
    %cst_74 = arith.constant dense<0.000000e+00> : vector<32x256xf32>
    %130 = tpu.matmul %124, %129, %cst_74 {dimension_numbers = #tpu.dot_dimension_numbers<[1], [0], [0], [1], [0, 0, 1, 1], [], []>} : vector<32x8xbf16>, vector<8x256xbf16>, vector<32x256xf32> -> vector<32x256xf32>
    %131 = arith.addf %122, %130 : vector<32x256xf32>
    %c1_75 = arith.constant 1 : index
    %c0_76 = arith.constant 0 : index
    %c0_77 = arith.constant 0 : index
    %132 = vector.load %arg5[%c1_75, %c0_76, %c0_77] : memref<9x32x8xbf16, #tpu.memory_space<vmem>>, vector<1x32x8xbf16>
    %133 = vector.shape_cast %132 : vector<1x32x8xbf16> to vector<32x8xbf16>
    %c0_78 = arith.constant 0 : index
    %c112_79 = arith.constant 112 : index
    %134 = vector.load %arg9[%c0_78, %c112_79] : memref<8x512xbf16, #tpu.memory_space<vmem>>, vector<8x256xbf16>
    %cst_80 = arith.constant dense<0.000000e+00> : vector<32x256xf32>
    %135 = tpu.matmul %133, %134, %cst_80 {dimension_numbers = #tpu.dot_dimension_numbers<[1], [0], [0], [1], [0, 0, 1, 1], [], []>} : vector<32x8xbf16>, vector<8x256xbf16>, vector<32x256xf32> -> vector<32x256xf32>
    %136 = arith.addf %131, %135 : vector<32x256xf32>
    %c2_81 = arith.constant 2 : index
    %c0_82 = arith.constant 0 : index
    %c0_83 = arith.constant 0 : index
    %137 = vector.load %arg5[%c2_81, %c0_82, %c0_83] : memref<9x32x8xbf16, #tpu.memory_space<vmem>>, vector<1x32x8xbf16>
    %138 = vector.shape_cast %137 : vector<1x32x8xbf16> to vector<32x8xbf16>
    %c0_84 = arith.constant 0 : index
    %c113_85 = arith.constant 113 : index
    %139 = vector.load %arg9[%c0_84, %c113_85] : memref<8x512xbf16, #tpu.memory_space<vmem>>, vector<8x256xbf16>
    %cst_86 = arith.constant 0.000000e+00 : bf16
    %140 = vector.broadcast %cst_86 : bf16 to vector<8x256xbf16>
    %141 = vector.shape_cast %20 : vector<1x256xi1> to vector<1x256xi1>
    %142 = vector.broadcast %141 : vector<1x256xi1> to vector<8x256xi1>
    %143 = arith.select %142, %139, %140 : vector<8x256xi1>, vector<8x256xbf16>
    %cst_87 = arith.constant dense<0.000000e+00> : vector<32x256xf32>
    %144 = tpu.matmul %138, %143, %cst_87 {dimension_numbers = #tpu.dot_dimension_numbers<[1], [0], [0], [1], [0, 0, 1, 1], [], []>} : vector<32x8xbf16>, vector<8x256xbf16>, vector<32x256xf32> -> vector<32x256xf32>
    %145 = arith.addf %136, %144 : vector<32x256xf32>
    %c3_88 = arith.constant 3 : index
    %c0_89 = arith.constant 0 : index
    %c0_90 = arith.constant 0 : index
    %146 = vector.load %arg5[%c3_88, %c0_89, %c0_90] : memref<9x32x8xbf16, #tpu.memory_space<vmem>>, vector<1x32x8xbf16>
    %147 = vector.shape_cast %146 : vector<1x32x8xbf16> to vector<32x8xbf16>
    %c0_91 = arith.constant 0 : index
    %c127_92 = arith.constant 127 : index
    %148 = vector.load %arg9[%c0_91, %c127_92] : memref<8x512xbf16, #tpu.memory_space<vmem>>, vector<8x256xbf16>
    %cst_93 = arith.constant 0.000000e+00 : bf16
    %149 = vector.broadcast %cst_93 : bf16 to vector<8x256xbf16>
    %150 = vector.shape_cast %18 : vector<1x256xi1> to vector<1x256xi1>
    %151 = vector.broadcast %150 : vector<1x256xi1> to vector<8x256xi1>
    %152 = arith.select %151, %148, %149 : vector<8x256xi1>, vector<8x256xbf16>
    %cst_94 = arith.constant dense<0.000000e+00> : vector<32x256xf32>
    %153 = tpu.matmul %147, %152, %cst_94 {dimension_numbers = #tpu.dot_dimension_numbers<[1], [0], [0], [1], [0, 0, 1, 1], [], []>} : vector<32x8xbf16>, vector<8x256xbf16>, vector<32x256xf32> -> vector<32x256xf32>
    %154 = arith.addf %145, %153 : vector<32x256xf32>
    %c4_95 = arith.constant 4 : index
    %c0_96 = arith.constant 0 : index
    %c0_97 = arith.constant 0 : index
    %155 = vector.load %arg5[%c4_95, %c0_96, %c0_97] : memref<9x32x8xbf16, #tpu.memory_space<vmem>>, vector<1x32x8xbf16>
    %156 = vector.shape_cast %155 : vector<1x32x8xbf16> to vector<32x8xbf16>
    %c0_98 = arith.constant 0 : index
    %c128_99 = arith.constant 128 : index
    %157 = vector.load %arg9[%c0_98, %c128_99] : memref<8x512xbf16, #tpu.memory_space<vmem>>, vector<8x256xbf16>
    %cst_100 = arith.constant dense<0.000000e+00> : vector<32x256xf32>
    %158 = tpu.matmul %156, %157, %cst_100 {dimension_numbers = #tpu.dot_dimension_numbers<[1], [0], [0], [1], [0, 0, 1, 1], [], []>} : vector<32x8xbf16>, vector<8x256xbf16>, vector<32x256xf32> -> vector<32x256xf32>
    %159 = arith.addf %154, %158 : vector<32x256xf32>
    %c5_101 = arith.constant 5 : index
    %c0_102 = arith.constant 0 : index
    %c0_103 = arith.constant 0 : index
    %160 = vector.load %arg5[%c5_101, %c0_102, %c0_103] : memref<9x32x8xbf16, #tpu.memory_space<vmem>>, vector<1x32x8xbf16>
    %161 = vector.shape_cast %160 : vector<1x32x8xbf16> to vector<32x8xbf16>
    %c0_104 = arith.constant 0 : index
    %c129_105 = arith.constant 129 : index
    %162 = vector.load %arg9[%c0_104, %c129_105] : memref<8x512xbf16, #tpu.memory_space<vmem>>, vector<8x256xbf16>
    %cst_106 = arith.constant 0.000000e+00 : bf16
    %163 = vector.broadcast %cst_106 : bf16 to vector<8x256xbf16>
    %164 = vector.shape_cast %20 : vector<1x256xi1> to vector<1x256xi1>
    %165 = vector.broadcast %164 : vector<1x256xi1> to vector<8x256xi1>
    %166 = arith.select %165, %162, %163 : vector<8x256xi1>, vector<8x256xbf16>
    %cst_107 = arith.constant dense<0.000000e+00> : vector<32x256xf32>
    %167 = tpu.matmul %161, %166, %cst_107 {dimension_numbers = #tpu.dot_dimension_numbers<[1], [0], [0], [1], [0, 0, 1, 1], [], []>} : vector<32x8xbf16>, vector<8x256xbf16>, vector<32x256xf32> -> vector<32x256xf32>
    %168 = arith.addf %159, %167 : vector<32x256xf32>
    %c6_108 = arith.constant 6 : index
    %c0_109 = arith.constant 0 : index
    %c0_110 = arith.constant 0 : index
    %169 = vector.load %arg5[%c6_108, %c0_109, %c0_110] : memref<9x32x8xbf16, #tpu.memory_space<vmem>>, vector<1x32x8xbf16>
    %170 = vector.shape_cast %169 : vector<1x32x8xbf16> to vector<32x8xbf16>
    %c0_111 = arith.constant 0 : index
    %c143_112 = arith.constant 143 : index
    %171 = vector.load %arg9[%c0_111, %c143_112] : memref<8x512xbf16, #tpu.memory_space<vmem>>, vector<8x256xbf16>
    %cst_113 = arith.constant 0.000000e+00 : bf16
    %172 = vector.broadcast %cst_113 : bf16 to vector<8x256xbf16>
    %173 = vector.shape_cast %18 : vector<1x256xi1> to vector<1x256xi1>
    %174 = vector.broadcast %173 : vector<1x256xi1> to vector<8x256xi1>
    %175 = arith.select %174, %171, %172 : vector<8x256xi1>, vector<8x256xbf16>
    %cst_114 = arith.constant dense<0.000000e+00> : vector<32x256xf32>
    %176 = tpu.matmul %170, %175, %cst_114 {dimension_numbers = #tpu.dot_dimension_numbers<[1], [0], [0], [1], [0, 0, 1, 1], [], []>} : vector<32x8xbf16>, vector<8x256xbf16>, vector<32x256xf32> -> vector<32x256xf32>
    %177 = arith.addf %168, %176 : vector<32x256xf32>
    %c7_115 = arith.constant 7 : index
    %c0_116 = arith.constant 0 : index
    %c0_117 = arith.constant 0 : index
    %178 = vector.load %arg5[%c7_115, %c0_116, %c0_117] : memref<9x32x8xbf16, #tpu.memory_space<vmem>>, vector<1x32x8xbf16>
    %179 = vector.shape_cast %178 : vector<1x32x8xbf16> to vector<32x8xbf16>
    %c0_118 = arith.constant 0 : index
    %c144_119 = arith.constant 144 : index
    %180 = vector.load %arg9[%c0_118, %c144_119] : memref<8x512xbf16, #tpu.memory_space<vmem>>, vector<8x256xbf16>
    %cst_120 = arith.constant dense<0.000000e+00> : vector<32x256xf32>
    %181 = tpu.matmul %179, %180, %cst_120 {dimension_numbers = #tpu.dot_dimension_numbers<[1], [0], [0], [1], [0, 0, 1, 1], [], []>} : vector<32x8xbf16>, vector<8x256xbf16>, vector<32x256xf32> -> vector<32x256xf32>
    %182 = arith.addf %177, %181 : vector<32x256xf32>
    %c8_121 = arith.constant 8 : index
    %c0_122 = arith.constant 0 : index
    %c0_123 = arith.constant 0 : index
    %183 = vector.load %arg5[%c8_121, %c0_122, %c0_123] : memref<9x32x8xbf16, #tpu.memory_space<vmem>>, vector<1x32x8xbf16>
    %184 = vector.shape_cast %183 : vector<1x32x8xbf16> to vector<32x8xbf16>
    %c0_124 = arith.constant 0 : index
    %c145_125 = arith.constant 145 : index
    %185 = vector.load %arg9[%c0_124, %c145_125] : memref<8x512xbf16, #tpu.memory_space<vmem>>, vector<8x256xbf16>
    %cst_126 = arith.constant 0.000000e+00 : bf16
    %186 = vector.broadcast %cst_126 : bf16 to vector<8x256xbf16>
    %187 = vector.shape_cast %20 : vector<1x256xi1> to vector<1x256xi1>
    %188 = vector.broadcast %187 : vector<1x256xi1> to vector<8x256xi1>
    %189 = arith.select %188, %185, %186 : vector<8x256xi1>, vector<8x256xbf16>
    %cst_127 = arith.constant dense<0.000000e+00> : vector<32x256xf32>
    %190 = tpu.matmul %184, %189, %cst_127 {dimension_numbers = #tpu.dot_dimension_numbers<[1], [0], [0], [1], [0, 0, 1, 1], [], []>} : vector<32x8xbf16>, vector<8x256xbf16>, vector<32x256xf32> -> vector<32x256xf32>
    %191 = arith.addf %182, %190 : vector<32x256xf32>
    %c0_128 = arith.constant 0 : index
    %c0_129 = arith.constant 0 : index
    %c0_130 = arith.constant 0 : index
    %192 = vector.load %arg6[%c0_128, %c0_129, %c0_130] : memref<9x32x8xbf16, #tpu.memory_space<vmem>>, vector<1x32x8xbf16>
    %193 = vector.shape_cast %192 : vector<1x32x8xbf16> to vector<32x8xbf16>
    %c0_131 = arith.constant 0 : index
    %c111_132 = arith.constant 111 : index
    %194 = vector.load %arg10[%c0_131, %c111_132] : memref<8x512xbf16, #tpu.memory_space<vmem>>, vector<8x256xbf16>
    %cst_133 = arith.constant 0.000000e+00 : bf16
    %195 = vector.broadcast %cst_133 : bf16 to vector<8x256xbf16>
    %196 = vector.shape_cast %18 : vector<1x256xi1> to vector<1x256xi1>
    %197 = vector.broadcast %196 : vector<1x256xi1> to vector<8x256xi1>
    %198 = arith.select %197, %194, %195 : vector<8x256xi1>, vector<8x256xbf16>
    %cst_134 = arith.constant dense<0.000000e+00> : vector<32x256xf32>
    %199 = tpu.matmul %193, %198, %cst_134 {dimension_numbers = #tpu.dot_dimension_numbers<[1], [0], [0], [1], [0, 0, 1, 1], [], []>} : vector<32x8xbf16>, vector<8x256xbf16>, vector<32x256xf32> -> vector<32x256xf32>
    %200 = arith.addf %191, %199 : vector<32x256xf32>
    %c1_135 = arith.constant 1 : index
    %c0_136 = arith.constant 0 : index
    %c0_137 = arith.constant 0 : index
    %201 = vector.load %arg6[%c1_135, %c0_136, %c0_137] : memref<9x32x8xbf16, #tpu.memory_space<vmem>>, vector<1x32x8xbf16>
    %202 = vector.shape_cast %201 : vector<1x32x8xbf16> to vector<32x8xbf16>
    %c0_138 = arith.constant 0 : index
    %c112_139 = arith.constant 112 : index
    %203 = vector.load %arg10[%c0_138, %c112_139] : memref<8x512xbf16, #tpu.memory_space<vmem>>, vector<8x256xbf16>
    %cst_140 = arith.constant dense<0.000000e+00> : vector<32x256xf32>
    %204 = tpu.matmul %202, %203, %cst_140 {dimension_numbers = #tpu.dot_dimension_numbers<[1], [0], [0], [1], [0, 0, 1, 1], [], []>} : vector<32x8xbf16>, vector<8x256xbf16>, vector<32x256xf32> -> vector<32x256xf32>
    %205 = arith.addf %200, %204 : vector<32x256xf32>
    %c2_141 = arith.constant 2 : index
    %c0_142 = arith.constant 0 : index
    %c0_143 = arith.constant 0 : index
    %206 = vector.load %arg6[%c2_141, %c0_142, %c0_143] : memref<9x32x8xbf16, #tpu.memory_space<vmem>>, vector<1x32x8xbf16>
    %207 = vector.shape_cast %206 : vector<1x32x8xbf16> to vector<32x8xbf16>
    %c0_144 = arith.constant 0 : index
    %c113_145 = arith.constant 113 : index
    %208 = vector.load %arg10[%c0_144, %c113_145] : memref<8x512xbf16, #tpu.memory_space<vmem>>, vector<8x256xbf16>
    %cst_146 = arith.constant 0.000000e+00 : bf16
    %209 = vector.broadcast %cst_146 : bf16 to vector<8x256xbf16>
    %210 = vector.shape_cast %20 : vector<1x256xi1> to vector<1x256xi1>
    %211 = vector.broadcast %210 : vector<1x256xi1> to vector<8x256xi1>
    %212 = arith.select %211, %208, %209 : vector<8x256xi1>, vector<8x256xbf16>
    %cst_147 = arith.constant dense<0.000000e+00> : vector<32x256xf32>
    %213 = tpu.matmul %207, %212, %cst_147 {dimension_numbers = #tpu.dot_dimension_numbers<[1], [0], [0], [1], [0, 0, 1, 1], [], []>} : vector<32x8xbf16>, vector<8x256xbf16>, vector<32x256xf32> -> vector<32x256xf32>
    %214 = arith.addf %205, %213 : vector<32x256xf32>
    %c3_148 = arith.constant 3 : index
    %c0_149 = arith.constant 0 : index
    %c0_150 = arith.constant 0 : index
    %215 = vector.load %arg6[%c3_148, %c0_149, %c0_150] : memref<9x32x8xbf16, #tpu.memory_space<vmem>>, vector<1x32x8xbf16>
    %216 = vector.shape_cast %215 : vector<1x32x8xbf16> to vector<32x8xbf16>
    %c0_151 = arith.constant 0 : index
    %c127_152 = arith.constant 127 : index
    %217 = vector.load %arg10[%c0_151, %c127_152] : memref<8x512xbf16, #tpu.memory_space<vmem>>, vector<8x256xbf16>
    %cst_153 = arith.constant 0.000000e+00 : bf16
    %218 = vector.broadcast %cst_153 : bf16 to vector<8x256xbf16>
    %219 = vector.shape_cast %18 : vector<1x256xi1> to vector<1x256xi1>
    %220 = vector.broadcast %219 : vector<1x256xi1> to vector<8x256xi1>
    %221 = arith.select %220, %217, %218 : vector<8x256xi1>, vector<8x256xbf16>
    %cst_154 = arith.constant dense<0.000000e+00> : vector<32x256xf32>
    %222 = tpu.matmul %216, %221, %cst_154 {dimension_numbers = #tpu.dot_dimension_numbers<[1], [0], [0], [1], [0, 0, 1, 1], [], []>} : vector<32x8xbf16>, vector<8x256xbf16>, vector<32x256xf32> -> vector<32x256xf32>
    %223 = arith.addf %214, %222 : vector<32x256xf32>
    %c4_155 = arith.constant 4 : index
    %c0_156 = arith.constant 0 : index
    %c0_157 = arith.constant 0 : index
    %224 = vector.load %arg6[%c4_155, %c0_156, %c0_157] : memref<9x32x8xbf16, #tpu.memory_space<vmem>>, vector<1x32x8xbf16>
    %225 = vector.shape_cast %224 : vector<1x32x8xbf16> to vector<32x8xbf16>
    %c0_158 = arith.constant 0 : index
    %c128_159 = arith.constant 128 : index
    %226 = vector.load %arg10[%c0_158, %c128_159] : memref<8x512xbf16, #tpu.memory_space<vmem>>, vector<8x256xbf16>
    %cst_160 = arith.constant dense<0.000000e+00> : vector<32x256xf32>
    %227 = tpu.matmul %225, %226, %cst_160 {dimension_numbers = #tpu.dot_dimension_numbers<[1], [0], [0], [1], [0, 0, 1, 1], [], []>} : vector<32x8xbf16>, vector<8x256xbf16>, vector<32x256xf32> -> vector<32x256xf32>
    %228 = arith.addf %223, %227 : vector<32x256xf32>
    %c5_161 = arith.constant 5 : index
    %c0_162 = arith.constant 0 : index
    %c0_163 = arith.constant 0 : index
    %229 = vector.load %arg6[%c5_161, %c0_162, %c0_163] : memref<9x32x8xbf16, #tpu.memory_space<vmem>>, vector<1x32x8xbf16>
    %230 = vector.shape_cast %229 : vector<1x32x8xbf16> to vector<32x8xbf16>
    %c0_164 = arith.constant 0 : index
    %c129_165 = arith.constant 129 : index
    %231 = vector.load %arg10[%c0_164, %c129_165] : memref<8x512xbf16, #tpu.memory_space<vmem>>, vector<8x256xbf16>
    %cst_166 = arith.constant 0.000000e+00 : bf16
    %232 = vector.broadcast %cst_166 : bf16 to vector<8x256xbf16>
    %233 = vector.shape_cast %20 : vector<1x256xi1> to vector<1x256xi1>
    %234 = vector.broadcast %233 : vector<1x256xi1> to vector<8x256xi1>
    %235 = arith.select %234, %231, %232 : vector<8x256xi1>, vector<8x256xbf16>
    %cst_167 = arith.constant dense<0.000000e+00> : vector<32x256xf32>
    %236 = tpu.matmul %230, %235, %cst_167 {dimension_numbers = #tpu.dot_dimension_numbers<[1], [0], [0], [1], [0, 0, 1, 1], [], []>} : vector<32x8xbf16>, vector<8x256xbf16>, vector<32x256xf32> -> vector<32x256xf32>
    %237 = arith.addf %228, %236 : vector<32x256xf32>
    %c6_168 = arith.constant 6 : index
    %c0_169 = arith.constant 0 : index
    %c0_170 = arith.constant 0 : index
    %238 = vector.load %arg6[%c6_168, %c0_169, %c0_170] : memref<9x32x8xbf16, #tpu.memory_space<vmem>>, vector<1x32x8xbf16>
    %239 = vector.shape_cast %238 : vector<1x32x8xbf16> to vector<32x8xbf16>
    %c0_171 = arith.constant 0 : index
    %c143_172 = arith.constant 143 : index
    %240 = vector.load %arg10[%c0_171, %c143_172] : memref<8x512xbf16, #tpu.memory_space<vmem>>, vector<8x256xbf16>
    %cst_173 = arith.constant 0.000000e+00 : bf16
    %241 = vector.broadcast %cst_173 : bf16 to vector<8x256xbf16>
    %242 = vector.shape_cast %18 : vector<1x256xi1> to vector<1x256xi1>
    %243 = vector.broadcast %242 : vector<1x256xi1> to vector<8x256xi1>
    %244 = arith.select %243, %240, %241 : vector<8x256xi1>, vector<8x256xbf16>
    %cst_174 = arith.constant dense<0.000000e+00> : vector<32x256xf32>
    %245 = tpu.matmul %239, %244, %cst_174 {dimension_numbers = #tpu.dot_dimension_numbers<[1], [0], [0], [1], [0, 0, 1, 1], [], []>} : vector<32x8xbf16>, vector<8x256xbf16>, vector<32x256xf32> -> vector<32x256xf32>
    %246 = arith.addf %237, %245 : vector<32x256xf32>
    %c7_175 = arith.constant 7 : index
    %c0_176 = arith.constant 0 : index
    %c0_177 = arith.constant 0 : index
    %247 = vector.load %arg6[%c7_175, %c0_176, %c0_177] : memref<9x32x8xbf16, #tpu.memory_space<vmem>>, vector<1x32x8xbf16>
    %248 = vector.shape_cast %247 : vector<1x32x8xbf16> to vector<32x8xbf16>
    %c0_178 = arith.constant 0 : index
    %c144_179 = arith.constant 144 : index
    %249 = vector.load %arg10[%c0_178, %c144_179] : memref<8x512xbf16, #tpu.memory_space<vmem>>, vector<8x256xbf16>
    %cst_180 = arith.constant dense<0.000000e+00> : vector<32x256xf32>
    %250 = tpu.matmul %248, %249, %cst_180 {dimension_numbers = #tpu.dot_dimension_numbers<[1], [0], [0], [1], [0, 0, 1, 1], [], []>} : vector<32x8xbf16>, vector<8x256xbf16>, vector<32x256xf32> -> vector<32x256xf32>
    %251 = arith.addf %246, %250 : vector<32x256xf32>
    %c8_181 = arith.constant 8 : index
    %c0_182 = arith.constant 0 : index
    %c0_183 = arith.constant 0 : index
    %252 = vector.load %arg6[%c8_181, %c0_182, %c0_183] : memref<9x32x8xbf16, #tpu.memory_space<vmem>>, vector<1x32x8xbf16>
    %253 = vector.shape_cast %252 : vector<1x32x8xbf16> to vector<32x8xbf16>
    %c0_184 = arith.constant 0 : index
    %c145_185 = arith.constant 145 : index
    %254 = vector.load %arg10[%c0_184, %c145_185] : memref<8x512xbf16, #tpu.memory_space<vmem>>, vector<8x256xbf16>
    %cst_186 = arith.constant 0.000000e+00 : bf16
    %255 = vector.broadcast %cst_186 : bf16 to vector<8x256xbf16>
    %256 = vector.shape_cast %20 : vector<1x256xi1> to vector<1x256xi1>
    %257 = vector.broadcast %256 : vector<1x256xi1> to vector<8x256xi1>
    %258 = arith.select %257, %254, %255 : vector<8x256xi1>, vector<8x256xbf16>
    %cst_187 = arith.constant dense<0.000000e+00> : vector<32x256xf32>
    %259 = tpu.matmul %253, %258, %cst_187 {dimension_numbers = #tpu.dot_dimension_numbers<[1], [0], [0], [1], [0, 0, 1, 1], [], []>} : vector<32x8xbf16>, vector<8x256xbf16>, vector<32x256xf32> -> vector<32x256xf32>
    %260 = arith.addf %251, %259 : vector<32x256xf32>
    %261 = vector.broadcast %26 : vector<32x1xf32> to vector<32x256xf32>
    %262 = arith.addf %260, %261 : vector<32x256xf32>
    %263 = vector.extract_strided_slice %262 {offsets = [0, 0], sizes = [24, 256], strides = [1, 1]} : vector<32x256xf32> to vector<24x256xf32>
    %264 = arith.negf %263 : vector<24x256xf32>
    %265 = math.exp %264 : vector<24x256xf32>
    %cst_188 = arith.constant 1.000000e+00 : f32
    %266 = vector.broadcast %cst_188 : f32 to vector<24x256xf32>
    %267 = arith.addf %266, %265 : vector<24x256xf32>
    %268 = arith.divf %266, %267 : vector<24x256xf32>
    %269 = vector.extract_strided_slice %268 {offsets = [0, 0], sizes = [8, 256], strides = [1, 1]} : vector<24x256xf32> to vector<8x256xf32>
    %270 = vector.extract_strided_slice %268 {offsets = [8, 0], sizes = [8, 256], strides = [1, 1]} : vector<24x256xf32> to vector<8x256xf32>
    %271 = vector.extract_strided_slice %268 {offsets = [16, 0], sizes = [8, 256], strides = [1, 1]} : vector<24x256xf32> to vector<8x256xf32>
    %272 = vector.extract_strided_slice %262 {offsets = [24, 0], sizes = [8, 256], strides = [1, 1]} : vector<32x256xf32> to vector<8x256xf32>
    %273 = math.tanh %272 : vector<8x256xf32>
    %274 = arith.mulf %270, %29 : vector<8x256xf32>
    %275 = arith.mulf %269, %273 : vector<8x256xf32>
    %276 = arith.addf %274, %275 : vector<8x256xf32>
    %277 = math.tanh %276 : vector<8x256xf32>
    %278 = arith.mulf %271, %277 : vector<8x256xf32>
    %279 = arith.truncf %278 : vector<8x256xf32> to vector<8x256xbf16>
    %c0_189 = arith.constant 0 : index
    %c128_190 = arith.constant 128 : index
    %280 = vector.load %arg10[%c0_189, %c128_190] : memref<8x512xbf16, #tpu.memory_space<vmem>>, vector<8x256xbf16>
    tpu.vector_store %arg10[%c0_189, %c128_190], %279 {strides = array<i32>} : memref<8x512xbf16, #tpu.memory_space<vmem>>, vector<8x256xbf16>,
    %c0_191 = arith.constant 0 : index
    %c0_192 = arith.constant 0 : index
    %c0_193 = arith.constant 0 : index
    %281 = vector.load %arg8[%c0_191, %c0_192, %c0_193] : memref<1x16x256xf32, #tpu.memory_space<vmem>>, vector<1x8x256xf32>
    %282 = vector.shape_cast %281 : vector<1x8x256xf32> to vector<8x256xf32>
    %283 = vector.shape_cast %278 : vector<8x256xf32> to vector<1x8x256xf32>
    tpu.vector_store %arg8[%c0_191, %c0_192, %c0_193], %283 {strides = array<i32>} : memref<1x16x256xf32, #tpu.memory_space<vmem>>, vector<1x8x256xf32>,
    %c0_194 = arith.constant 0 : index
    %c1_195 = arith.constant 1 : index
    %c0_196 = arith.constant 0 : index
    %c0_197 = arith.constant 0 : index
    %284 = vector.load %arg1[%c0_194, %c1_195, %c0_196, %c0_197] : memref<1x2x36x256xbf16, #tpu.memory_space<vmem>>, vector<1x1x36x256xbf16>
    %285 = vector.shape_cast %284 : vector<1x1x36x256xbf16> to vector<36x256xbf16>
    %cst_198 = arith.constant dense<0.000000e+00> : vector<32x256xf32>
    %286 = tpu.matmul %27, %285, %cst_198 {dimension_numbers = #tpu.dot_dimension_numbers<[1], [0], [0], [1], [0, 0, 1, 1], [], []>} : vector<32x36xbf16>, vector<36x256xbf16>, vector<32x256xf32> -> vector<32x256xf32>
    %c0_199 = arith.constant 0 : index
    %c0_200 = arith.constant 0 : index
    %c0_201 = arith.constant 0 : index
    %287 = vector.load %arg3[%c0_199, %c0_200, %c0_201] : memref<9x32x8xbf16, #tpu.memory_space<vmem>>, vector<1x32x8xbf16>
    %288 = vector.shape_cast %287 : vector<1x32x8xbf16> to vector<32x8xbf16>
    %c0_202 = arith.constant 0 : index
    %c111_203 = arith.constant 111 : index
    %289 = vector.load %arg9[%c0_202, %c111_203] : memref<8x512xbf16, #tpu.memory_space<vmem>>, vector<8x256xbf16>
    %cst_204 = arith.constant 0.000000e+00 : bf16
    %290 = vector.broadcast %cst_204 : bf16 to vector<8x256xbf16>
    %291 = vector.shape_cast %18 : vector<1x256xi1> to vector<1x256xi1>
    %292 = vector.broadcast %291 : vector<1x256xi1> to vector<8x256xi1>
    %293 = arith.select %292, %289, %290 : vector<8x256xi1>, vector<8x256xbf16>
    %cst_205 = arith.constant dense<0.000000e+00> : vector<32x256xf32>
    %294 = tpu.matmul %288, %293, %cst_205 {dimension_numbers = #tpu.dot_dimension_numbers<[1], [0], [0], [1], [0, 0, 1, 1], [], []>} : vector<32x8xbf16>, vector<8x256xbf16>, vector<32x256xf32> -> vector<32x256xf32>
    %295 = arith.addf %286, %294 : vector<32x256xf32>
    %c1_206 = arith.constant 1 : index
    %c0_207 = arith.constant 0 : index
    %c0_208 = arith.constant 0 : index
    %296 = vector.load %arg3[%c1_206, %c0_207, %c0_208] : memref<9x32x8xbf16, #tpu.memory_space<vmem>>, vector<1x32x8xbf16>
    %297 = vector.shape_cast %296 : vector<1x32x8xbf16> to vector<32x8xbf16>
    %c0_209 = arith.constant 0 : index
    %c112_210 = arith.constant 112 : index
    %298 = vector.load %arg9[%c0_209, %c112_210] : memref<8x512xbf16, #tpu.memory_space<vmem>>, vector<8x256xbf16>
    %cst_211 = arith.constant dense<0.000000e+00> : vector<32x256xf32>
    %299 = tpu.matmul %297, %298, %cst_211 {dimension_numbers = #tpu.dot_dimension_numbers<[1], [0], [0], [1], [0, 0, 1, 1], [], []>} : vector<32x8xbf16>, vector<8x256xbf16>, vector<32x256xf32> -> vector<32x256xf32>
    %300 = arith.addf %295, %299 : vector<32x256xf32>
    %c2_212 = arith.constant 2 : index
    %c0_213 = arith.constant 0 : index
    %c0_214 = arith.constant 0 : index
    %301 = vector.load %arg3[%c2_212, %c0_213, %c0_214] : memref<9x32x8xbf16, #tpu.memory_space<vmem>>, vector<1x32x8xbf16>
    %302 = vector.shape_cast %301 : vector<1x32x8xbf16> to vector<32x8xbf16>
    %c0_215 = arith.constant 0 : index
    %c113_216 = arith.constant 113 : index
    %303 = vector.load %arg9[%c0_215, %c113_216] : memref<8x512xbf16, #tpu.memory_space<vmem>>, vector<8x256xbf16>
    %cst_217 = arith.constant 0.000000e+00 : bf16
    %304 = vector.broadcast %cst_217 : bf16 to vector<8x256xbf16>
    %305 = vector.shape_cast %20 : vector<1x256xi1> to vector<1x256xi1>
    %306 = vector.broadcast %305 : vector<1x256xi1> to vector<8x256xi1>
    %307 = arith.select %306, %303, %304 : vector<8x256xi1>, vector<8x256xbf16>
    %cst_218 = arith.constant dense<0.000000e+00> : vector<32x256xf32>
    %308 = tpu.matmul %302, %307, %cst_218 {dimension_numbers = #tpu.dot_dimension_numbers<[1], [0], [0], [1], [0, 0, 1, 1], [], []>} : vector<32x8xbf16>, vector<8x256xbf16>, vector<32x256xf32> -> vector<32x256xf32>
    %309 = arith.addf %300, %308 : vector<32x256xf32>
    %c3_219 = arith.constant 3 : index
    %c0_220 = arith.constant 0 : index
    %c0_221 = arith.constant 0 : index
    %310 = vector.load %arg3[%c3_219, %c0_220, %c0_221] : memref<9x32x8xbf16, #tpu.memory_space<vmem>>, vector<1x32x8xbf16>
    %311 = vector.shape_cast %310 : vector<1x32x8xbf16> to vector<32x8xbf16>
    %c0_222 = arith.constant 0 : index
    %c127_223 = arith.constant 127 : index
    %312 = vector.load %arg9[%c0_222, %c127_223] : memref<8x512xbf16, #tpu.memory_space<vmem>>, vector<8x256xbf16>
    %cst_224 = arith.constant 0.000000e+00 : bf16
    %313 = vector.broadcast %cst_224 : bf16 to vector<8x256xbf16>
    %314 = vector.shape_cast %18 : vector<1x256xi1> to vector<1x256xi1>
    %315 = vector.broadcast %314 : vector<1x256xi1> to vector<8x256xi1>
    %316 = arith.select %315, %312, %313 : vector<8x256xi1>, vector<8x256xbf16>
    %cst_225 = arith.constant dense<0.000000e+00> : vector<32x256xf32>
    %317 = tpu.matmul %311, %316, %cst_225 {dimension_numbers = #tpu.dot_dimension_numbers<[1], [0], [0], [1], [0, 0, 1, 1], [], []>} : vector<32x8xbf16>, vector<8x256xbf16>, vector<32x256xf32> -> vector<32x256xf32>
    %318 = arith.addf %309, %317 : vector<32x256xf32>
    %c4_226 = arith.constant 4 : index
    %c0_227 = arith.constant 0 : index
    %c0_228 = arith.constant 0 : index
    %319 = vector.load %arg3[%c4_226, %c0_227, %c0_228] : memref<9x32x8xbf16, #tpu.memory_space<vmem>>, vector<1x32x8xbf16>
    %320 = vector.shape_cast %319 : vector<1x32x8xbf16> to vector<32x8xbf16>
    %c0_229 = arith.constant 0 : index
    %c128_230 = arith.constant 128 : index
    %321 = vector.load %arg9[%c0_229, %c128_230] : memref<8x512xbf16, #tpu.memory_space<vmem>>, vector<8x256xbf16>
    %cst_231 = arith.constant dense<0.000000e+00> : vector<32x256xf32>
    %322 = tpu.matmul %320, %321, %cst_231 {dimension_numbers = #tpu.dot_dimension_numbers<[1], [0], [0], [1], [0, 0, 1, 1], [], []>} : vector<32x8xbf16>, vector<8x256xbf16>, vector<32x256xf32> -> vector<32x256xf32>
    %323 = arith.addf %318, %322 : vector<32x256xf32>
    %c5_232 = arith.constant 5 : index
    %c0_233 = arith.constant 0 : index
    %c0_234 = arith.constant 0 : index
    %324 = vector.load %arg3[%c5_232, %c0_233, %c0_234] : memref<9x32x8xbf16, #tpu.memory_space<vmem>>, vector<1x32x8xbf16>
    %325 = vector.shape_cast %324 : vector<1x32x8xbf16> to vector<32x8xbf16>
    %c0_235 = arith.constant 0 : index
    %c129_236 = arith.constant 129 : index
    %326 = vector.load %arg9[%c0_235, %c129_236] : memref<8x512xbf16, #tpu.memory_space<vmem>>, vector<8x256xbf16>
    %cst_237 = arith.constant 0.000000e+00 : bf16
    %327 = vector.broadcast %cst_237 : bf16 to vector<8x256xbf16>
    %328 = vector.shape_cast %20 : vector<1x256xi1> to vector<1x256xi1>
    %329 = vector.broadcast %328 : vector<1x256xi1> to vector<8x256xi1>
    %330 = arith.select %329, %326, %327 : vector<8x256xi1>, vector<8x256xbf16>
    %cst_238 = arith.constant dense<0.000000e+00> : vector<32x256xf32>
    %331 = tpu.matmul %325, %330, %cst_238 {dimension_numbers = #tpu.dot_dimension_numbers<[1], [0], [0], [1], [0, 0, 1, 1], [], []>} : vector<32x8xbf16>, vector<8x256xbf16>, vector<32x256xf32> -> vector<32x256xf32>
    %332 = arith.addf %323, %331 : vector<32x256xf32>
    %c6_239 = arith.constant 6 : index
    %c0_240 = arith.constant 0 : index
    %c0_241 = arith.constant 0 : index
    %333 = vector.load %arg3[%c6_239, %c0_240, %c0_241] : memref<9x32x8xbf16, #tpu.memory_space<vmem>>, vector<1x32x8xbf16>
    %334 = vector.shape_cast %333 : vector<1x32x8xbf16> to vector<32x8xbf16>
    %c0_242 = arith.constant 0 : index
    %c143_243 = arith.constant 143 : index
    %335 = vector.load %arg9[%c0_242, %c143_243] : memref<8x512xbf16, #tpu.memory_space<vmem>>, vector<8x256xbf16>
    %cst_244 = arith.constant 0.000000e+00 : bf16
    %336 = vector.broadcast %cst_244 : bf16 to vector<8x256xbf16>
    %337 = vector.shape_cast %18 : vector<1x256xi1> to vector<1x256xi1>
    %338 = vector.broadcast %337 : vector<1x256xi1> to vector<8x256xi1>
    %339 = arith.select %338, %335, %336 : vector<8x256xi1>, vector<8x256xbf16>
    %cst_245 = arith.constant dense<0.000000e+00> : vector<32x256xf32>
    %340 = tpu.matmul %334, %339, %cst_245 {dimension_numbers = #tpu.dot_dimension_numbers<[1], [0], [0], [1], [0, 0, 1, 1], [], []>} : vector<32x8xbf16>, vector<8x256xbf16>, vector<32x256xf32> -> vector<32x256xf32>
    %341 = arith.addf %332, %340 : vector<32x256xf32>
    %c7_246 = arith.constant 7 : index
    %c0_247 = arith.constant 0 : index
    %c0_248 = arith.constant 0 : index
    %342 = vector.load %arg3[%c7_246, %c0_247, %c0_248] : memref<9x32x8xbf16, #tpu.memory_space<vmem>>, vector<1x32x8xbf16>
    %343 = vector.shape_cast %342 : vector<1x32x8xbf16> to vector<32x8xbf16>
    %c0_249 = arith.constant 0 : index
    %c144_250 = arith.constant 144 : index
    %344 = vector.load %arg9[%c0_249, %c144_250] : memref<8x512xbf16, #tpu.memory_space<vmem>>, vector<8x256xbf16>
    %cst_251 = arith.constant dense<0.000000e+00> : vector<32x256xf32>
    %345 = tpu.matmul %343, %344, %cst_251 {dimension_numbers = #tpu.dot_dimension_numbers<[1], [0], [0], [1], [0, 0, 1, 1], [], []>} : vector<32x8xbf16>, vector<8x256xbf16>, vector<32x256xf32> -> vector<32x256xf32>
    %346 = arith.addf %341, %345 : vector<32x256xf32>
    %c8_252 = arith.constant 8 : index
    %c0_253 = arith.constant 0 : index
    %c0_254 = arith.constant 0 : index
    %347 = vector.load %arg3[%c8_252, %c0_253, %c0_254] : memref<9x32x8xbf16, #tpu.memory_space<vmem>>, vector<1x32x8xbf16>
    %348 = vector.shape_cast %347 : vector<1x32x8xbf16> to vector<32x8xbf16>
    %c0_255 = arith.constant 0 : index
    %c145_256 = arith.constant 145 : index
    %349 = vector.load %arg9[%c0_255, %c145_256] : memref<8x512xbf16, #tpu.memory_space<vmem>>, vector<8x256xbf16>
    %cst_257 = arith.constant 0.000000e+00 : bf16
    %350 = vector.broadcast %cst_257 : bf16 to vector<8x256xbf16>
    %351 = vector.shape_cast %20 : vector<1x256xi1> to vector<1x256xi1>
    %352 = vector.broadcast %351 : vector<1x256xi1> to vector<8x256xi1>
    %353 = arith.select %352, %349, %350 : vector<8x256xi1>, vector<8x256xbf16>
    %cst_258 = arith.constant dense<0.000000e+00> : vector<32x256xf32>
    %354 = tpu.matmul %348, %353, %cst_258 {dimension_numbers = #tpu.dot_dimension_numbers<[1], [0], [0], [1], [0, 0, 1, 1], [], []>} : vector<32x8xbf16>, vector<8x256xbf16>, vector<32x256xf32> -> vector<32x256xf32>
    %355 = arith.addf %346, %354 : vector<32x256xf32>
    %356 = vector.broadcast %25 : vector<32x1xf32> to vector<32x256xf32>
    %357 = arith.addf %355, %356 : vector<32x256xf32>
    %358 = vector.extract_strided_slice %357 {offsets = [0, 0], sizes = [24, 256], strides = [1, 1]} : vector<32x256xf32> to vector<24x256xf32>
    %359 = arith.negf %358 : vector<24x256xf32>
    %360 = math.exp %359 : vector<24x256xf32>
    %cst_259 = arith.constant 1.000000e+00 : f32
    %361 = vector.broadcast %cst_259 : f32 to vector<24x256xf32>
    %362 = arith.addf %361, %360 : vector<24x256xf32>
    %363 = arith.divf %361, %362 : vector<24x256xf32>
    %364 = vector.extract_strided_slice %363 {offsets = [0, 0], sizes = [8, 256], strides = [1, 1]} : vector<24x256xf32> to vector<8x256xf32>
    %365 = vector.extract_strided_slice %363 {offsets = [8, 0], sizes = [8, 256], strides = [1, 1]} : vector<24x256xf32> to vector<8x256xf32>
    %366 = vector.extract_strided_slice %363 {offsets = [16, 0], sizes = [8, 256], strides = [1, 1]} : vector<24x256xf32> to vector<8x256xf32>
    %367 = vector.extract_strided_slice %357 {offsets = [24, 0], sizes = [8, 256], strides = [1, 1]} : vector<32x256xf32> to vector<8x256xf32>
    %368 = math.tanh %367 : vector<8x256xf32>
    %369 = arith.mulf %365, %117 : vector<8x256xf32>
    %370 = arith.mulf %364, %368 : vector<8x256xf32>
    %371 = arith.addf %369, %370 : vector<8x256xf32>
    %372 = math.tanh %371 : vector<8x256xf32>
    %373 = arith.mulf %366, %372 : vector<8x256xf32>
    %374 = arith.truncf %373 : vector<8x256xf32> to vector<8x256xbf16>
    %c0_260 = arith.constant 0 : index
    %c128_261 = arith.constant 128 : index
    %375 = vector.load %arg9[%c0_260, %c128_261] : memref<8x512xbf16, #tpu.memory_space<vmem>>, vector<8x256xbf16>
    tpu.vector_store %arg9[%c0_260, %c128_261], %374 {strides = array<i32>} : memref<8x512xbf16, #tpu.memory_space<vmem>>, vector<8x256xbf16>,
    %cst_262 = arith.constant 0.000000e+00 : f32
    %376 = vector.broadcast %cst_262 : f32 to vector<32x256xf32>
    %c0_263 = arith.constant 0 : index
    %c0_264 = arith.constant 0 : index
    %c0_265 = arith.constant 0 : index
    %377 = vector.load %arg5[%c0_263, %c0_264, %c0_265] : memref<9x32x8xbf16, #tpu.memory_space<vmem>>, vector<1x32x8xbf16>
    %378 = vector.shape_cast %377 : vector<1x32x8xbf16> to vector<32x8xbf16>
    %c0_266 = arith.constant 0 : index
    %c111_267 = arith.constant 111 : index
    %379 = vector.load %arg9[%c0_266, %c111_267] : memref<8x512xbf16, #tpu.memory_space<vmem>>, vector<8x256xbf16>
    %cst_268 = arith.constant 0.000000e+00 : bf16
    %380 = vector.broadcast %cst_268 : bf16 to vector<8x256xbf16>
    %381 = vector.shape_cast %18 : vector<1x256xi1> to vector<1x256xi1>
    %382 = vector.broadcast %381 : vector<1x256xi1> to vector<8x256xi1>
    %383 = arith.select %382, %379, %380 : vector<8x256xi1>, vector<8x256xbf16>
    %cst_269 = arith.constant dense<0.000000e+00> : vector<32x256xf32>
    %384 = tpu.matmul %378, %383, %cst_269 {dimension_numbers = #tpu.dot_dimension_numbers<[1], [0], [0], [1], [0, 0, 1, 1], [], []>} : vector<32x8xbf16>, vector<8x256xbf16>, vector<32x256xf32> -> vector<32x256xf32>
    %385 = arith.addf %376, %384 : vector<32x256xf32>
    %c1_270 = arith.constant 1 : index
    %c0_271 = arith.constant 0 : index
    %c0_272 = arith.constant 0 : index
    %386 = vector.load %arg5[%c1_270, %c0_271, %c0_272] : memref<9x32x8xbf16, #tpu.memory_space<vmem>>, vector<1x32x8xbf16>
    %387 = vector.shape_cast %386 : vector<1x32x8xbf16> to vector<32x8xbf16>
    %c0_273 = arith.constant 0 : index
    %c112_274 = arith.constant 112 : index
    %388 = vector.load %arg9[%c0_273, %c112_274] : memref<8x512xbf16, #tpu.memory_space<vmem>>, vector<8x256xbf16>
    %cst_275 = arith.constant dense<0.000000e+00> : vector<32x256xf32>
    %389 = tpu.matmul %387, %388, %cst_275 {dimension_numbers = #tpu.dot_dimension_numbers<[1], [0], [0], [1], [0, 0, 1, 1], [], []>} : vector<32x8xbf16>, vector<8x256xbf16>, vector<32x256xf32> -> vector<32x256xf32>
    %390 = arith.addf %385, %389 : vector<32x256xf32>
    %c2_276 = arith.constant 2 : index
    %c0_277 = arith.constant 0 : index
    %c0_278 = arith.constant 0 : index
    %391 = vector.load %arg5[%c2_276, %c0_277, %c0_278] : memref<9x32x8xbf16, #tpu.memory_space<vmem>>, vector<1x32x8xbf16>
    %392 = vector.shape_cast %391 : vector<1x32x8xbf16> to vector<32x8xbf16>
    %c0_279 = arith.constant 0 : index
    %c113_280 = arith.constant 113 : index
    %393 = vector.load %arg9[%c0_279, %c113_280] : memref<8x512xbf16, #tpu.memory_space<vmem>>, vector<8x256xbf16>
    %cst_281 = arith.constant 0.000000e+00 : bf16
    %394 = vector.broadcast %cst_281 : bf16 to vector<8x256xbf16>
    %395 = vector.shape_cast %20 : vector<1x256xi1> to vector<1x256xi1>
    %396 = vector.broadcast %395 : vector<1x256xi1> to vector<8x256xi1>
    %397 = arith.select %396, %393, %394 : vector<8x256xi1>, vector<8x256xbf16>
    %cst_282 = arith.constant dense<0.000000e+00> : vector<32x256xf32>
    %398 = tpu.matmul %392, %397, %cst_282 {dimension_numbers = #tpu.dot_dimension_numbers<[1], [0], [0], [1], [0, 0, 1, 1], [], []>} : vector<32x8xbf16>, vector<8x256xbf16>, vector<32x256xf32> -> vector<32x256xf32>
    %399 = arith.addf %390, %398 : vector<32x256xf32>
    %c3_283 = arith.constant 3 : index
    %c0_284 = arith.constant 0 : index
    %c0_285 = arith.constant 0 : index
    %400 = vector.load %arg5[%c3_283, %c0_284, %c0_285] : memref<9x32x8xbf16, #tpu.memory_space<vmem>>, vector<1x32x8xbf16>
    %401 = vector.shape_cast %400 : vector<1x32x8xbf16> to vector<32x8xbf16>
    %c0_286 = arith.constant 0 : index
    %c127_287 = arith.constant 127 : index
    %402 = vector.load %arg9[%c0_286, %c127_287] : memref<8x512xbf16, #tpu.memory_space<vmem>>, vector<8x256xbf16>
    %cst_288 = arith.constant 0.000000e+00 : bf16
    %403 = vector.broadcast %cst_288 : bf16 to vector<8x256xbf16>
    %404 = vector.shape_cast %18 : vector<1x256xi1> to vector<1x256xi1>
    %405 = vector.broadcast %404 : vector<1x256xi1> to vector<8x256xi1>
    %406 = arith.select %405, %402, %403 : vector<8x256xi1>, vector<8x256xbf16>
    %cst_289 = arith.constant dense<0.000000e+00> : vector<32x256xf32>
    %407 = tpu.matmul %401, %406, %cst_289 {dimension_numbers = #tpu.dot_dimension_numbers<[1], [0], [0], [1], [0, 0, 1, 1], [], []>} : vector<32x8xbf16>, vector<8x256xbf16>, vector<32x256xf32> -> vector<32x256xf32>
    %408 = arith.addf %399, %407 : vector<32x256xf32>
    %c4_290 = arith.constant 4 : index
    %c0_291 = arith.constant 0 : index
    %c0_292 = arith.constant 0 : index
    %409 = vector.load %arg5[%c4_290, %c0_291, %c0_292] : memref<9x32x8xbf16, #tpu.memory_space<vmem>>, vector<1x32x8xbf16>
    %410 = vector.shape_cast %409 : vector<1x32x8xbf16> to vector<32x8xbf16>
    %c0_293 = arith.constant 0 : index
    %c128_294 = arith.constant 128 : index
    %411 = vector.load %arg9[%c0_293, %c128_294] : memref<8x512xbf16, #tpu.memory_space<vmem>>, vector<8x256xbf16>
    %cst_295 = arith.constant dense<0.000000e+00> : vector<32x256xf32>
    %412 = tpu.matmul %410, %411, %cst_295 {dimension_numbers = #tpu.dot_dimension_numbers<[1], [0], [0], [1], [0, 0, 1, 1], [], []>} : vector<32x8xbf16>, vector<8x256xbf16>, vector<32x256xf32> -> vector<32x256xf32>
    %413 = arith.addf %408, %412 : vector<32x256xf32>
    %c5_296 = arith.constant 5 : index
    %c0_297 = arith.constant 0 : index
    %c0_298 = arith.constant 0 : index
    %414 = vector.load %arg5[%c5_296, %c0_297, %c0_298] : memref<9x32x8xbf16, #tpu.memory_space<vmem>>, vector<1x32x8xbf16>
    %415 = vector.shape_cast %414 : vector<1x32x8xbf16> to vector<32x8xbf16>
    %c0_299 = arith.constant 0 : index
    %c129_300 = arith.constant 129 : index
    %416 = vector.load %arg9[%c0_299, %c129_300] : memref<8x512xbf16, #tpu.memory_space<vmem>>, vector<8x256xbf16>
    %cst_301 = arith.constant 0.000000e+00 : bf16
    %417 = vector.broadcast %cst_301 : bf16 to vector<8x256xbf16>
    %418 = vector.shape_cast %20 : vector<1x256xi1> to vector<1x256xi1>
    %419 = vector.broadcast %418 : vector<1x256xi1> to vector<8x256xi1>
    %420 = arith.select %419, %416, %417 : vector<8x256xi1>, vector<8x256xbf16>
    %cst_302 = arith.constant dense<0.000000e+00> : vector<32x256xf32>
    %421 = tpu.matmul %415, %420, %cst_302 {dimension_numbers = #tpu.dot_dimension_numbers<[1], [0], [0], [1], [0, 0, 1, 1], [], []>} : vector<32x8xbf16>, vector<8x256xbf16>, vector<32x256xf32> -> vector<32x256xf32>
    %422 = arith.addf %413, %421 : vector<32x256xf32>
    %c6_303 = arith.constant 6 : index
    %c0_304 = arith.constant 0 : index
    %c0_305 = arith.constant 0 : index
    %423 = vector.load %arg5[%c6_303, %c0_304, %c0_305] : memref<9x32x8xbf16, #tpu.memory_space<vmem>>, vector<1x32x8xbf16>
    %424 = vector.shape_cast %423 : vector<1x32x8xbf16> to vector<32x8xbf16>
    %c0_306 = arith.constant 0 : index
    %c143_307 = arith.constant 143 : index
    %425 = vector.load %arg9[%c0_306, %c143_307] : memref<8x512xbf16, #tpu.memory_space<vmem>>, vector<8x256xbf16>
    %cst_308 = arith.constant 0.000000e+00 : bf16
    %426 = vector.broadcast %cst_308 : bf16 to vector<8x256xbf16>
    %427 = vector.shape_cast %18 : vector<1x256xi1> to vector<1x256xi1>
    %428 = vector.broadcast %427 : vector<1x256xi1> to vector<8x256xi1>
    %429 = arith.select %428, %425, %426 : vector<8x256xi1>, vector<8x256xbf16>
    %cst_309 = arith.constant dense<0.000000e+00> : vector<32x256xf32>
    %430 = tpu.matmul %424, %429, %cst_309 {dimension_numbers = #tpu.dot_dimension_numbers<[1], [0], [0], [1], [0, 0, 1, 1], [], []>} : vector<32x8xbf16>, vector<8x256xbf16>, vector<32x256xf32> -> vector<32x256xf32>
    %431 = arith.addf %422, %430 : vector<32x256xf32>
    %c7_310 = arith.constant 7 : index
    %c0_311 = arith.constant 0 : index
    %c0_312 = arith.constant 0 : index
    %432 = vector.load %arg5[%c7_310, %c0_311, %c0_312] : memref<9x32x8xbf16, #tpu.memory_space<vmem>>, vector<1x32x8xbf16>
    %433 = vector.shape_cast %432 : vector<1x32x8xbf16> to vector<32x8xbf16>
    %c0_313 = arith.constant 0 : index
    %c144_314 = arith.constant 144 : index
    %434 = vector.load %arg9[%c0_313, %c144_314] : memref<8x512xbf16, #tpu.memory_space<vmem>>, vector<8x256xbf16>
    %cst_315 = arith.constant dense<0.000000e+00> : vector<32x256xf32>
    %435 = tpu.matmul %433, %434, %cst_315 {dimension_numbers = #tpu.dot_dimension_numbers<[1], [0], [0], [1], [0, 0, 1, 1], [], []>} : vector<32x8xbf16>, vector<8x256xbf16>, vector<32x256xf32> -> vector<32x256xf32>
    %436 = arith.addf %431, %435 : vector<32x256xf32>
    %c8_316 = arith.constant 8 : index
    %c0_317 = arith.constant 0 : index
    %c0_318 = arith.constant 0 : index
    %437 = vector.load %arg5[%c8_316, %c0_317, %c0_318] : memref<9x32x8xbf16, #tpu.memory_space<vmem>>, vector<1x32x8xbf16>
    %438 = vector.shape_cast %437 : vector<1x32x8xbf16> to vector<32x8xbf16>
    %c0_319 = arith.constant 0 : index
    %c145_320 = arith.constant 145 : index
    %439 = vector.load %arg9[%c0_319, %c145_320] : memref<8x512xbf16, #tpu.memory_space<vmem>>, vector<8x256xbf16>
    %cst_321 = arith.constant 0.000000e+00 : bf16
    %440 = vector.broadcast %cst_321 : bf16 to vector<8x256xbf16>
    %441 = vector.shape_cast %20 : vector<1x256xi1> to vector<1x256xi1>
    %442 = vector.broadcast %441 : vector<1x256xi1> to vector<8x256xi1>
    %443 = arith.select %442, %439, %440 : vector<8x256xi1>, vector<8x256xbf16>
    %cst_322 = arith.constant dense<0.000000e+00> : vector<32x256xf32>
    %444 = tpu.matmul %438, %443, %cst_322 {dimension_numbers = #tpu.dot_dimension_numbers<[1], [0], [0], [1], [0, 0, 1, 1], [], []>} : vector<32x8xbf16>, vector<8x256xbf16>, vector<32x256xf32> -> vector<32x256xf32>
    %445 = arith.addf %436, %444 : vector<32x256xf32>
    %c0_323 = arith.constant 0 : index
    %c0_324 = arith.constant 0 : index
    %c0_325 = arith.constant 0 : index
    %446 = vector.load %arg6[%c0_323, %c0_324, %c0_325] : memref<9x32x8xbf16, #tpu.memory_space<vmem>>, vector<1x32x8xbf16>
    %447 = vector.shape_cast %446 : vector<1x32x8xbf16> to vector<32x8xbf16>
    %c0_326 = arith.constant 0 : index
    %c111_327 = arith.constant 111 : index
    %448 = vector.load %arg10[%c0_326, %c111_327] : memref<8x512xbf16, #tpu.memory_space<vmem>>, vector<8x256xbf16>
    %cst_328 = arith.constant 0.000000e+00 : bf16
    %449 = vector.broadcast %cst_328 : bf16 to vector<8x256xbf16>
    %450 = vector.shape_cast %18 : vector<1x256xi1> to vector<1x256xi1>
    %451 = vector.broadcast %450 : vector<1x256xi1> to vector<8x256xi1>
    %452 = arith.select %451, %448, %449 : vector<8x256xi1>, vector<8x256xbf16>
    %cst_329 = arith.constant dense<0.000000e+00> : vector<32x256xf32>
    %453 = tpu.matmul %447, %452, %cst_329 {dimension_numbers = #tpu.dot_dimension_numbers<[1], [0], [0], [1], [0, 0, 1, 1], [], []>} : vector<32x8xbf16>, vector<8x256xbf16>, vector<32x256xf32> -> vector<32x256xf32>
    %454 = arith.addf %445, %453 : vector<32x256xf32>
    %c1_330 = arith.constant 1 : index
    %c0_331 = arith.constant 0 : index
    %c0_332 = arith.constant 0 : index
    %455 = vector.load %arg6[%c1_330, %c0_331, %c0_332] : memref<9x32x8xbf16, #tpu.memory_space<vmem>>, vector<1x32x8xbf16>
    %456 = vector.shape_cast %455 : vector<1x32x8xbf16> to vector<32x8xbf16>
    %c0_333 = arith.constant 0 : index
    %c112_334 = arith.constant 112 : index
    %457 = vector.load %arg10[%c0_333, %c112_334] : memref<8x512xbf16, #tpu.memory_space<vmem>>, vector<8x256xbf16>
    %cst_335 = arith.constant dense<0.000000e+00> : vector<32x256xf32>
    %458 = tpu.matmul %456, %457, %cst_335 {dimension_numbers = #tpu.dot_dimension_numbers<[1], [0], [0], [1], [0, 0, 1, 1], [], []>} : vector<32x8xbf16>, vector<8x256xbf16>, vector<32x256xf32> -> vector<32x256xf32>
    %459 = arith.addf %454, %458 : vector<32x256xf32>
    %c2_336 = arith.constant 2 : index
    %c0_337 = arith.constant 0 : index
    %c0_338 = arith.constant 0 : index
    %460 = vector.load %arg6[%c2_336, %c0_337, %c0_338] : memref<9x32x8xbf16, #tpu.memory_space<vmem>>, vector<1x32x8xbf16>
    %461 = vector.shape_cast %460 : vector<1x32x8xbf16> to vector<32x8xbf16>
    %c0_339 = arith.constant 0 : index
    %c113_340 = arith.constant 113 : index
    %462 = vector.load %arg10[%c0_339, %c113_340] : memref<8x512xbf16, #tpu.memory_space<vmem>>, vector<8x256xbf16>
    %cst_341 = arith.constant 0.000000e+00 : bf16
    %463 = vector.broadcast %cst_341 : bf16 to vector<8x256xbf16>
    %464 = vector.shape_cast %20 : vector<1x256xi1> to vector<1x256xi1>
    %465 = vector.broadcast %464 : vector<1x256xi1> to vector<8x256xi1>
    %466 = arith.select %465, %462, %463 : vector<8x256xi1>, vector<8x256xbf16>
    %cst_342 = arith.constant dense<0.000000e+00> : vector<32x256xf32>
    %467 = tpu.matmul %461, %466, %cst_342 {dimension_numbers = #tpu.dot_dimension_numbers<[1], [0], [0], [1], [0, 0, 1, 1], [], []>} : vector<32x8xbf16>, vector<8x256xbf16>, vector<32x256xf32> -> vector<32x256xf32>
    %468 = arith.addf %459, %467 : vector<32x256xf32>
    %c3_343 = arith.constant 3 : index
    %c0_344 = arith.constant 0 : index
    %c0_345 = arith.constant 0 : index
    %469 = vector.load %arg6[%c3_343, %c0_344, %c0_345] : memref<9x32x8xbf16, #tpu.memory_space<vmem>>, vector<1x32x8xbf16>
    %470 = vector.shape_cast %469 : vector<1x32x8xbf16> to vector<32x8xbf16>
    %c0_346 = arith.constant 0 : index
    %c127_347 = arith.constant 127 : index
    %471 = vector.load %arg10[%c0_346, %c127_347] : memref<8x512xbf16, #tpu.memory_space<vmem>>, vector<8x256xbf16>
    %cst_348 = arith.constant 0.000000e+00 : bf16
    %472 = vector.broadcast %cst_348 : bf16 to vector<8x256xbf16>
    %473 = vector.shape_cast %18 : vector<1x256xi1> to vector<1x256xi1>
    %474 = vector.broadcast %473 : vector<1x256xi1> to vector<8x256xi1>
    %475 = arith.select %474, %471, %472 : vector<8x256xi1>, vector<8x256xbf16>
    %cst_349 = arith.constant dense<0.000000e+00> : vector<32x256xf32>
    %476 = tpu.matmul %470, %475, %cst_349 {dimension_numbers = #tpu.dot_dimension_numbers<[1], [0], [0], [1], [0, 0, 1, 1], [], []>} : vector<32x8xbf16>, vector<8x256xbf16>, vector<32x256xf32> -> vector<32x256xf32>
    %477 = arith.addf %468, %476 : vector<32x256xf32>
    %c4_350 = arith.constant 4 : index
    %c0_351 = arith.constant 0 : index
    %c0_352 = arith.constant 0 : index
    %478 = vector.load %arg6[%c4_350, %c0_351, %c0_352] : memref<9x32x8xbf16, #tpu.memory_space<vmem>>, vector<1x32x8xbf16>
    %479 = vector.shape_cast %478 : vector<1x32x8xbf16> to vector<32x8xbf16>
    %c0_353 = arith.constant 0 : index
    %c128_354 = arith.constant 128 : index
    %480 = vector.load %arg10[%c0_353, %c128_354] : memref<8x512xbf16, #tpu.memory_space<vmem>>, vector<8x256xbf16>
    %cst_355 = arith.constant dense<0.000000e+00> : vector<32x256xf32>
    %481 = tpu.matmul %479, %480, %cst_355 {dimension_numbers = #tpu.dot_dimension_numbers<[1], [0], [0], [1], [0, 0, 1, 1], [], []>} : vector<32x8xbf16>, vector<8x256xbf16>, vector<32x256xf32> -> vector<32x256xf32>
    %482 = arith.addf %477, %481 : vector<32x256xf32>
    %c5_356 = arith.constant 5 : index
    %c0_357 = arith.constant 0 : index
    %c0_358 = arith.constant 0 : index
    %483 = vector.load %arg6[%c5_356, %c0_357, %c0_358] : memref<9x32x8xbf16, #tpu.memory_space<vmem>>, vector<1x32x8xbf16>
    %484 = vector.shape_cast %483 : vector<1x32x8xbf16> to vector<32x8xbf16>
    %c0_359 = arith.constant 0 : index
    %c129_360 = arith.constant 129 : index
    %485 = vector.load %arg10[%c0_359, %c129_360] : memref<8x512xbf16, #tpu.memory_space<vmem>>, vector<8x256xbf16>
    %cst_361 = arith.constant 0.000000e+00 : bf16
    %486 = vector.broadcast %cst_361 : bf16 to vector<8x256xbf16>
    %487 = vector.shape_cast %20 : vector<1x256xi1> to vector<1x256xi1>
    %488 = vector.broadcast %487 : vector<1x256xi1> to vector<8x256xi1>
    %489 = arith.select %488, %485, %486 : vector<8x256xi1>, vector<8x256xbf16>
    %cst_362 = arith.constant dense<0.000000e+00> : vector<32x256xf32>
    %490 = tpu.matmul %484, %489, %cst_362 {dimension_numbers = #tpu.dot_dimension_numbers<[1], [0], [0], [1], [0, 0, 1, 1], [], []>} : vector<32x8xbf16>, vector<8x256xbf16>, vector<32x256xf32> -> vector<32x256xf32>
    %491 = arith.addf %482, %490 : vector<32x256xf32>
    %c6_363 = arith.constant 6 : index
    %c0_364 = arith.constant 0 : index
    %c0_365 = arith.constant 0 : index
    %492 = vector.load %arg6[%c6_363, %c0_364, %c0_365] : memref<9x32x8xbf16, #tpu.memory_space<vmem>>, vector<1x32x8xbf16>
    %493 = vector.shape_cast %492 : vector<1x32x8xbf16> to vector<32x8xbf16>
    %c0_366 = arith.constant 0 : index
    %c143_367 = arith.constant 143 : index
    %494 = vector.load %arg10[%c0_366, %c143_367] : memref<8x512xbf16, #tpu.memory_space<vmem>>, vector<8x256xbf16>
    %cst_368 = arith.constant 0.000000e+00 : bf16
    %495 = vector.broadcast %cst_368 : bf16 to vector<8x256xbf16>
    %496 = vector.shape_cast %18 : vector<1x256xi1> to vector<1x256xi1>
    %497 = vector.broadcast %496 : vector<1x256xi1> to vector<8x256xi1>
    %498 = arith.select %497, %494, %495 : vector<8x256xi1>, vector<8x256xbf16>
    %cst_369 = arith.constant dense<0.000000e+00> : vector<32x256xf32>
    %499 = tpu.matmul %493, %498, %cst_369 {dimension_numbers = #tpu.dot_dimension_numbers<[1], [0], [0], [1], [0, 0, 1, 1], [], []>} : vector<32x8xbf16>, vector<8x256xbf16>, vector<32x256xf32> -> vector<32x256xf32>
    %500 = arith.addf %491, %499 : vector<32x256xf32>
    %c7_370 = arith.constant 7 : index
    %c0_371 = arith.constant 0 : index
    %c0_372 = arith.constant 0 : index
    %501 = vector.load %arg6[%c7_370, %c0_371, %c0_372] : memref<9x32x8xbf16, #tpu.memory_space<vmem>>, vector<1x32x8xbf16>
    %502 = vector.shape_cast %501 : vector<1x32x8xbf16> to vector<32x8xbf16>
    %c0_373 = arith.constant 0 : index
    %c144_374 = arith.constant 144 : index
    %503 = vector.load %arg10[%c0_373, %c144_374] : memref<8x512xbf16, #tpu.memory_space<vmem>>, vector<8x256xbf16>
    %cst_375 = arith.constant dense<0.000000e+00> : vector<32x256xf32>
    %504 = tpu.matmul %502, %503, %cst_375 {dimension_numbers = #tpu.dot_dimension_numbers<[1], [0], [0], [1], [0, 0, 1, 1], [], []>} : vector<32x8xbf16>, vector<8x256xbf16>, vector<32x256xf32> -> vector<32x256xf32>
    %505 = arith.addf %500, %504 : vector<32x256xf32>
    %c8_376 = arith.constant 8 : index
    %c0_377 = arith.constant 0 : index
    %c0_378 = arith.constant 0 : index
    %506 = vector.load %arg6[%c8_376, %c0_377, %c0_378] : memref<9x32x8xbf16, #tpu.memory_space<vmem>>, vector<1x32x8xbf16>
    %507 = vector.shape_cast %506 : vector<1x32x8xbf16> to vector<32x8xbf16>
    %c0_379 = arith.constant 0 : index
    %c145_380 = arith.constant 145 : index
    %508 = vector.load %arg10[%c0_379, %c145_380] : memref<8x512xbf16, #tpu.memory_space<vmem>>, vector<8x256xbf16>
    %cst_381 = arith.constant 0.000000e+00 : bf16
    %509 = vector.broadcast %cst_381 : bf16 to vector<8x256xbf16>
    %510 = vector.shape_cast %20 : vector<1x256xi1> to vector<1x256xi1>
    %511 = vector.broadcast %510 : vector<1x256xi1> to vector<8x256xi1>
    %512 = arith.select %511, %508, %509 : vector<8x256xi1>, vector<8x256xbf16>
    %cst_382 = arith.constant dense<0.000000e+00> : vector<32x256xf32>
    %513 = tpu.matmul %507, %512, %cst_382 {dimension_numbers = #tpu.dot_dimension_numbers<[1], [0], [0], [1], [0, 0, 1, 1], [], []>} : vector<32x8xbf16>, vector<8x256xbf16>, vector<32x256xf32> -> vector<32x256xf32>
    %514 = arith.addf %505, %513 : vector<32x256xf32>
    %515 = vector.broadcast %26 : vector<32x1xf32> to vector<32x256xf32>
    %516 = arith.addf %514, %515 : vector<32x256xf32>
    %517 = vector.extract_strided_slice %516 {offsets = [0, 0], sizes = [24, 256], strides = [1, 1]} : vector<32x256xf32> to vector<24x256xf32>
    %518 = arith.negf %517 : vector<24x256xf32>
    %519 = math.exp %518 : vector<24x256xf32>
    %cst_383 = arith.constant 1.000000e+00 : f32
    %520 = vector.broadcast %cst_383 : f32 to vector<24x256xf32>
    %521 = arith.addf %520, %519 : vector<24x256xf32>
    %522 = arith.divf %520, %521 : vector<24x256xf32>
    %523 = vector.extract_strided_slice %522 {offsets = [0, 0], sizes = [8, 256], strides = [1, 1]} : vector<24x256xf32> to vector<8x256xf32>
    %524 = vector.extract_strided_slice %522 {offsets = [8, 0], sizes = [8, 256], strides = [1, 1]} : vector<24x256xf32> to vector<8x256xf32>
    %525 = vector.extract_strided_slice %522 {offsets = [16, 0], sizes = [8, 256], strides = [1, 1]} : vector<24x256xf32> to vector<8x256xf32>
    %526 = vector.extract_strided_slice %516 {offsets = [24, 0], sizes = [8, 256], strides = [1, 1]} : vector<32x256xf32> to vector<8x256xf32>
    %527 = math.tanh %526 : vector<8x256xf32>
    %528 = arith.mulf %524, %276 : vector<8x256xf32>
    %529 = arith.mulf %523, %527 : vector<8x256xf32>
    %530 = arith.addf %528, %529 : vector<8x256xf32>
    %531 = math.tanh %530 : vector<8x256xf32>
    %532 = arith.mulf %525, %531 : vector<8x256xf32>
    %533 = arith.truncf %532 : vector<8x256xf32> to vector<8x256xbf16>
    %c0_384 = arith.constant 0 : index
    %c128_385 = arith.constant 128 : index
    %534 = vector.load %arg10[%c0_384, %c128_385] : memref<8x512xbf16, #tpu.memory_space<vmem>>, vector<8x256xbf16>
    tpu.vector_store %arg10[%c0_384, %c128_385], %533 {strides = array<i32>} : memref<8x512xbf16, #tpu.memory_space<vmem>>, vector<8x256xbf16>,
    %c0_386 = arith.constant 0 : index
    %c8_387 = arith.constant 8 : index
    %c0_388 = arith.constant 0 : index
    %535 = vector.load %arg8[%c0_386, %c8_387, %c0_388] : memref<1x16x256xf32, #tpu.memory_space<vmem>>, vector<1x8x256xf32>
    %536 = vector.shape_cast %535 : vector<1x8x256xf32> to vector<8x256xf32>
    %537 = vector.shape_cast %532 : vector<8x256xf32> to vector<1x8x256xf32>
    tpu.vector_store %arg8[%c0_386, %c8_387, %c0_388], %537 {strides = array<i32>} : memref<1x16x256xf32, #tpu.memory_space<vmem>>, vector<1x8x256xf32>,
    return
  }
  func.func @transform_0(%arg0: i32) -> (i32, i32, i32, i32) {
    %c0_i32 = arith.constant 0 : i32
    %c0_i32_0 = arith.constant 0 : i32
    %c0_i32_1 = arith.constant 0 : i32
    %c0_i32_2 = arith.constant 0 : i32
    return %arg0, %c0_i32, %c0_i32_0, %c0_i32_1 : i32, i32, i32, i32
  }
  func.func @transform_1(%arg0: i32) -> (i32, i32) {
    %c0_i32 = arith.constant 0 : i32
    %c0_i32_0 = arith.constant 0 : i32
    %c0_i32_1 = arith.constant 0 : i32
    return %c0_i32, %c0_i32_0 : i32, i32
  }
  func.func @transform_2(%arg0: i32) -> (i32, i32, i32) {
    %c0_i32 = arith.constant 0 : i32
    %c0_i32_0 = arith.constant 0 : i32
    %c0_i32_1 = arith.constant 0 : i32
    %c0_i32_2 = arith.constant 0 : i32
    return %c0_i32, %c0_i32_0, %c0_i32_1 : i32, i32, i32
  }
  func.func @transform_3(%arg0: i32) -> (i32, i32) {
    %c0_i32 = arith.constant 0 : i32
    %c0_i32_0 = arith.constant 0 : i32
    %c0_i32_1 = arith.constant 0 : i32
    return %c0_i32, %c0_i32_0 : i32, i32
  }
  func.func @transform_4(%arg0: i32) -> (i32, i32, i32) {
    %c0_i32 = arith.constant 0 : i32
    %c0_i32_0 = arith.constant 0 : i32
    %c0_i32_1 = arith.constant 0 : i32
    %c0_i32_2 = arith.constant 0 : i32
    return %c0_i32, %c0_i32_0, %c0_i32_1 : i32, i32, i32
  }
  func.func @transform_5(%arg0: i32) -> (i32, i32, i32) {
    %c0_i32 = arith.constant 0 : i32
    %c0_i32_0 = arith.constant 0 : i32
    %c0_i32_1 = arith.constant 0 : i32
    %c0_i32_2 = arith.constant 0 : i32
    return %c0_i32, %c0_i32_0, %c0_i32_1 : i32, i32, i32
  }
  func.func @transform_6(%arg0: i32) -> (i32, i32) {
    %c0_i32 = arith.constant 0 : i32
    %c0_i32_0 = arith.constant 0 : i32
    %c0_i32_1 = arith.constant 0 : i32
    return %c0_i32, %c0_i32_0 : i32, i32
  }
  func.func @transform_7(%arg0: i32) -> (i32, i32, i32) {
    %c0_i32 = arith.constant 0 : i32
    %c0_i32_0 = arith.constant 0 : i32
    %c0_i32_1 = arith.constant 0 : i32
    return %arg0, %c0_i32, %c0_i32_0 : i32, i32, i32
  }
}

</mosaic_0001>

<bundles_post_ra>
// kernel: convlstm_forward.1
= control target key start
LH: loop header
LB: loop body
LE: loop exit
PB: predicated region body
PF: predicated region fallthrough
CT: control target
= control target key end

     0   :  { %s7984_s24 = smov 0   ;;  %s9419_s0 = inlined_call_operand.vmem [shape: bf16[2,2,36,256], index: 0, kind: input, shape index: {}]   ;;  %s9420_s1 = inlined_call_operand.vmem [shape: bf16[32,36], index: 1, kind: input, shape index: {}]   ;;  %s9421_s2 = inlined_call_operand.vmem [shape: bf16[9,32,8], index: 2, kind: input, shape index: {}]   ;;  %s9422_s3 = inlined_call_operand.vmem [shape: f32[32,1], index: 3, kind: input, shape index: {}]   ;;  %s9423_s4 = inlined_call_operand.vmem [shape: bf16[9,32,8], index: 4, kind: input, shape index: {}]   ;;  %s9424_s5 = inlined_call_operand.vmem [shape: bf16[9,32,8], index: 5, kind: input, shape index: {}]   ;;  %s9425_s6 = inlined_call_operand.vmem [shape: f32[32,1], index: 6, kind: input, shape index: {}]   ;;  %s9426_s7 = inlined_call_operand.vmem [shape: f32[2,16,256], index: 7, kind: output, shape index: {}]  }
   0x1 LB: > { %s6517_s25 = sadd.s32 4294967295, %s7933_s24   ;;  %p6521_p0 = scmp.ge.s32.totalorder %s7933_s24, 1  ;;  %s7933_s24 = sphi %s7984_s24, %s17_s24  }
   0x2   : > { %p237_p1 = scmp.lt.s32.totalorder %s7933_s24, 3 }
   0x4   : > { %p238_p2 = pnand %p6521_p0, %p237_p1 }
   0x5   : > { %v282_v0 = vlaneseq (!%p238_p2)  ;;  %v7935_v1 = vmov (!%p238_p2), 0   ;;  %s7936_s26 = smov (!%p238_p2), 111   ;;  %s7937_s27 = smov (!%p238_p2), 127   ;;  %vm9432_vm6 = vcmask (!%p238_p2), 908288   ;;  %vm9434_vm9 = vcmask (!%p238_p2), 924672   ;;  %v7640_v39 = vld [vmem:[%s9421_s2] sm:$0xff] (!%p238_p2)  }
   0x6   : > { %241 = sbr.rel (%p238_p2) target bundleno = 2063 (0x80f), region = 48  ;;  %313 = vst [vmem:[#allocation2] sm:$0xff] (!%p238_p2), %v7935_v1  ;;  %314 = vst [vmem:[#allocation2 + $0x8] sm:$0xff] (!%p238_p2), %v7935_v1  ;;  %428 = vmatprep.mubr.bf16.mxu0 (!%p238_p2), %v7935_v1  ;;  %7638 = vset.pattern.permute.xlu1 (!%p238_p2), %v7935_v1  ;;  %s7938_s28 = smov (!%p238_p2), 113   ;;  %v8027_v14 = vcombine.high (!%p238_p2), %v7935_v1, %v7935_v1  ;;  %v8031_v15 = vcombine.low (!%p238_p2), %v7935_v1, %v7935_v1  ;;  %vm784_vm10 = vcmask (!%p238_p2), 1039360   ;;  %vm379_vm15 = vcmask (!%p238_p2), 138240  }
   0x7   : > { %315 = vst [vmem:[#allocation3] sm:$0xff] (!%p238_p2), %v7935_v1  ;;  %316 = vst [vmem:[#allocation3 + $0x8] sm:$0xff] (!%p238_p2), %v7935_v1  ;;  %v283_v2 = vand.u32 (!%p238_p2), 127, %v282_v0  ;;  %7637 = vset.pattern.permute.xlu0 (!%p238_p2), %v7935_v1  ;;  %2408 = vmatprep.mubr.bf16.mxu1 (!%p238_p2), %v7935_v1  ;;  %p269_p3 = scmp.lt.s32.totalorder (!%p238_p2), %s6517_s25, 1  ;;  %s7939_s10 = smov (!%p238_p2), 17   ;;  %v7647_v60 = vld [vmem:[%s9421_s2 + $0x8] sm:$0xff] (!%p238_p2)  }
   0x8   : > { %s7940_s11 = smov (!%p238_p2), 1   ;;  %s7941_s12 = smov (!%p238_p2), 16   ;;  %vm9429_vm11 = vcmask (!%p238_p2), 130048  }
   0x9   : > { %v284_v3 = vadd.s32 (!%p238_p2), 128, %v283_v2  ;;  %v289_v4 = vand.u32 (!%p238_p2), 15, %v283_v2  ;;  %s7942_s13 = smov (!%p238_p2), 15   ;;  %s7943_s20 = smov (!%p238_p2), 112  }
   0xb   : > { %v296_v5 = vand.u32 (!%p238_p2), 15, %v284_v3  ;;  %vm309_vm0 = vcmp.ge.s32.totalorder (!%p238_p2), %v289_v4, 1  ;;  %vm311_vm1 = vcmp.le.s32.totalorder (!%p238_p2), %v289_v4, 14 }
   0xd   : > { %vm310_vm2 = vcmp.ge.s32.totalorder %v296_v5, 1  ;;  %vm312_vm3 = vcmp.le.s32.totalorder %v296_v5, 14  ;;  %s9505_s25 = smov (!%p269_p3, %s6517_s25), 1  ;;  %v339_v12 = vld [vmem:[#allocation2 + $0x8] sm:$0xf] }
   0xe   : > { %vm344_vm4 = vmpackc.low %vm310_vm2, %vm309_vm0  ;;  %s7619_s29 = smul.u32 80, %s9505_s25  ;;  %v6552_v23 = vcombine.low %v339_v12, %v339_v12  ;;  %vm389_vm0 = vcmask 1043456   ;;  %v8086_v40 = vld [vmem:[#allocation2 + $0x4] sm:$0xff]  ;;  %vm382_vm2 = vcmask 64512   ;;  %v8097_v46 = vld [vmem:[#allocation2 + $0xc] sm:$0xf] }
   0xf   : > { %v345_v6 = vsel %vm344_vm4, 65537, %v7935_v1  ;;  %vm665_vm5 = vmpackc.low %vm312_vm3, %vm311_vm1  ;;  %vm814_vm1 = vcmask 7168  }
  0x10   : > { %346 = vrot.lane.b32.xlu0 %v345_v6, %s7936_s26  ;;  %v666_v7 = vsel %vm665_vm5, 65537, %v7935_v1  ;;  %781 = vrot.lane.b32.xlu1 %v345_v6, %s7937_s27  ;;  %s8015_s9 = scalar_lea.vmem %s9419_s0, %s7619_s29  ;;  %vm700_vm5 = vcmask 121856   ;;  %s7198_s29 = sshll.u32 %s9505_s25, 5 }
  0x11   : > { %v7643_v35 = vld [vmem:[%s8015_s9 + $0x4] ss:$8 sps:$4 sm:$0xff]   ;;  %v7641_v42 = vld [vmem:[%s8015_s9] ss:$8 sps:$4 sm:$0xff]   ;;  %v7646_v48 = vld [vmem:[%s8015_s9 + $0x14] ss:$8 sps:$4 sm:$0xff]  }
  0x12   : > { %v333_v49 = vld [vmem:[%s8015_s9 + $0x20] sm:$0x33]  ;;  %v7644_v52 = vld [vmem:[%s8015_s9 + $0x10] ss:$8 sps:$4 sm:$0xff]  }
  0x13   : > { %v6540_v56 = vcombine.high %v333_v49, %v333_v49  ;;  %v6539_v57 = vcombine.low %v333_v49, %v333_v49  ;;  %v317_v49 = vld [vmem:[%s9422_s3] sm:$0xff] }
  0x14   : > { %667 = vrot.lane.b32.xlu0 %v666_v7, %s7938_s28  ;;  %373 = vrot.lane.b32.xlu1 %v8031_v15, %s7939_s10 }
  0x18   : > { %375 = vrot.lane.b32.xlu0 %v8027_v14, %s7939_s10 }
  0x1c   : > { %991 = vrot.lane.b32.xlu0 %v666_v7, %s7940_s11 }
  0x20   : > { %576 = vrot.lane.b32.xlu0 %v8027_v14, %s7941_s12 }
  0x24   : > { %1103 = vrot.lane.b32.xlu0 %v345_v6, %s7942_s13 }
  0x28   : > { %696 = vrot.lane.b32.xlu0 %v8027_v14, %s7942_s13 }
  0x2c   : > { %808 = vrot.lane.b32.xlu0 %v8031_v15, %s7940_s11 }
  0x82   : > { %v347_v8 = vpop.permute.xlu0 %346  ;;  %v782_v18 = vpop.permute.xlu1 %781 }
  0x83   : > { %v348_v9 = vrot.slane %v347_v8, 4  ;;  %v783_v21 = vrot.slane %v782_v18, 4 }
  0x85   : > { %v8018_v10 = vsel %vm9432_vm6, %v348_v9, %v347_v8  ;;  %vm8021_vm8 = vcmp.ne.s16.totalorder %v348_v9, 0  ;;  %v8046_v22 = vsel %vm784_vm10, %v783_v21, %v782_v18  ;;  %vm8061_vm14 = vcmp.ne.s16.totalorder %v783_v21, 0 }
  0x86   : > { %v668_v13 = vpop.permute.xlu0 %667  ;;  %v354_v16 = vsel %vm8021_vm8, %v339_v12, 0  ;;  %v789_v28 = vsel %vm8061_vm14, %v339_v12, 0  ;;  %v374_v30 = vpop.permute.xlu1 %373  ;;  %v8140_v9 = vcombine.low %v8086_v40, %v8086_v40  ;;  %v6622_v18 = vcombine.high %v8086_v40, %v8086_v40 }
  0x87   : > { %v669_v17 = vrot.slane %v668_v13, 4  ;;  %v6529_v19 = vcombine.low %v354_v16, %v354_v16  ;;  %v6576_v29 = vcombine.low %v789_v28, %v789_v28  ;;  %v6623_v21 = vcombine.low %v8097_v46, %v8097_v46  ;;  %v7651_v28 = vld [vmem:[%s9420_s1 + $0x8] sm:$0xff]  }
  0x89   : > { %v8040_v20 = vsel %vm9434_vm9, %v669_v17, %v668_v13  ;;  %377 = vrot.lane.b32.xlu1 %v6529_v19, %s7939_s10  ;;  %vm8052_vm12 = vcmp.ne.s16.totalorder %v669_v17, 0  ;;  %812 = vrot.lane.b32.xlu0 %v6576_v29, %s7940_s11 }
  0x8a   : > { %v675_v25 = vsel %vm8052_vm12, %v339_v12, 0  ;;  %v376_v31 = vpop.permute.xlu0 %375  ;;  %v7650_v12 = vld [vmem:[%s9420_s1] sm:$0xff]  }
  0x8b   : > { %v6564_v27 = vcombine.low %v675_v25, %v675_v25  ;;  %v380_v32 = vsel %vm379_vm15, %v374_v30, %v376_v31  ;;  %v7769_v30 = vld [vmem:[%s9423_s4 + $0x80] sm:$0xff]  }
  0x8c   : > { %v391_v38 = vsel %vm389_vm0, %v380_v32, 0 }
  0x8d   : > { %574 = vrot.lane.b32.xlu1 %v8031_v15, %s7941_s12 }
  0x8e   : > { %v992_v34 = vpop.permute.xlu0 %991 }
  0x8f   : > { %v993_v36 = vrot.slane %v992_v34, 4 }
  0x91   : > { %578 = vrot.lane.b32.xlu1 %v6552_v23, %s7941_s12  ;;  %v8089_v41 = vsel %vm814_vm1, %v993_v36, %v992_v34  ;;  %vm8093_vm4 = vcmp.ne.s16.totalorder %v993_v36, 0 }
  0x92   : > { %vm9427_vm3 = vcmp.ne.s16.totalorder %v8089_v41, 0  ;;  %v577_v44 = vpop.permute.xlu0 %576  ;;  %v998_v53 = vsel %vm8093_vm4, %v8097_v46, 0 }
  0x93   : > { %v997_v47 = vsel %vm9427_vm3, %v8086_v40, 0  ;;  %vm9428_vm3 = vcmask 1041408   ;;  %v6599_v59 = vcombine.low %v998_v53, %v998_v53  ;;  %v7659_v53 = vld [vmem:[%s9421_s2 + $0x30] sm:$0xff]  }
  0x94   : > { %v6598_v50 = vcombine.high %v997_v47, %v997_v47  ;;  %v6597_v51 = vcombine.low %v997_v47, %v997_v47  ;;  %v493_v63 = vsel %vm9428_vm3, %v6539_v57, 0  ;;  %v7662_v57 = vld [vmem:[%s9421_s2 + $0x48] sm:$0xff]  }
  0x95   : > { %694 = vrot.lane.b32.xlu1 %v8031_v15, %s7942_s13 }
  0x96   : > { %1017 = vrot.lane.b32.xlu0 %v6597_v51, %s7937_s27  ;;  %v1104_v54 = vpop.permute.xlu0 %1103  ;;  %v320_v51 = vld [vmem:[%s9422_s3 + $0x18] sm:$0xff] }
  0x97   : > { %v1105_v58 = vrot.slane %v1104_v54, 4 }
  0x99   : > { %698 = vrot.lane.b32.xlu1 %v6564_v27, %s7942_s13  ;;  %v8116_v61 = vsel %vm700_vm5, %v1105_v58, %v1104_v54  ;;  %vm8118_vm13 = vcmp.ne.s16.totalorder %v1105_v58, 0  ;;  %v918_v54 = vsel %vm389_vm0, %v8140_v9, 0 }
  0x9a   : > { %vm9430_vm7 = vcmp.ne.s16.totalorder %v8116_v61, 0  ;;  %1021 = vrot.lane.b32.xlu0 %v6599_v59, %s7937_s27  ;;  %v1110_v3 = vsel %vm8118_vm13, %v8097_v46, 0  ;;  %v697_v13 = vpop.permute.xlu0 %696 }
  0x9b   : > { %v1109_v2 = vsel %vm9430_vm7, %v8086_v40, 0 }
  0x9c   : > { %v6609_v4 = vcombine.low %v1109_v2, %v1109_v2  ;;  %v6610_v5 = vcombine.high %v1109_v2, %v1109_v2 }
  0x9d   : > { %810 = vrot.lane.b32.xlu1 %v8027_v14, %s7940_s11 }
  0x9e   : > { %1131 = vrot.lane.b32.xlu0 %v6610_v5, %s7938_s28 }
  0xa1   : > { %1320 = vrot.lane.b32.xlu1 %v666_v7, %s7939_s10  ;;  %v6611_v7 = vcombine.low %v1110_v3, %v1110_v3  ;;  %v7663_v3 = vld [vmem:[%s9421_s2 + $0x50] sm:$0xff]  }
  0xa2   : > { %1233 = vrot.lane.b32.xlu0 %v8140_v9, %s7943_s20 }
  0xa5   : > { %1019 = vrot.lane.b32.xlu1 %v6598_v50, %s7937_s27  ;;  %v318_v50 = vld [vmem:[%s9422_s3 + $0x8] sm:$0xff] }
  0xa6   : > { %1237 = vrot.lane.b32.xlu0 %v6623_v21, %s7943_s20  ;;  %v7665_v21 = vld [vmem:[%s9421_s2 + $0x60] sm:$0xff]  }
  0xa9   : > { %1129 = vrot.lane.b32.xlu1 %v6609_v4, %s7938_s28 }
  0xad   : > { %1133 = vrot.lane.b32.xlu1 %v6611_v7, %s7938_s28 }
  0xb1   : > { %1235 = vrot.lane.b32.xlu1 %v6622_v18, %s7943_s20 }
  0xfb   : > { %v378_v33 = vpop.permute.xlu1 %377 }
  0xfc   : > { %v381_v37 = vsel %vm379_vm15, %v376_v31, %v378_v33  ;;  %v809_v31 = vpop.permute.xlu0 %808 }
  0xfd   : > { %6530 = vmatprep.subr.msk.bf16.mxu0 %vm389_vm0, %v381_v37 }
  0xfe   : > { %397 = vmatpush1.bf16.msra.mxu0 %v391_v38  ;;  %v7653_v38 = vld [vmem:[%s9421_s2 + $0x10] sm:$0xff]  }
  0xff   : > { %498 = vmatprep.subr.bf16.mxu0 %v7643_v35  ;;  %v575_v45 = vpop.permute.xlu1 %574 }
 0x100   : > { %v581_v16 = vsel %vm9429_vm11, %v575_v45, %v577_v44  ;;  %v7657_v45 = vld [vmem:[%s9421_s2 + $0x20] sm:$0xff]  }
 0x101   : > { %6531 = vmatmul.mubr.msk.bf16.vlgmr.msra.gmra.mrb[0].mxu0 %vm382_vm2, %v7640_v39  ;;  %v590_v23 = vsel %vm389_vm0, %v581_v16, 0  ;;  %v813_v39 = vpop.permute.xlu0 %812 }
 0x102   : > { %499 = vmatpush1.bf16.msra.mxu0 %v7641_v42  ;;  %438 = vmatprep.mubr.bf16.mxu0 %v7935_v1 }
 0x103   : > { %v579_v55 = vpop.permute.xlu1 %578  ;;  %500 = vmatprep.subr.bf16.mxu0 %v7646_v48  ;;  %v7658_v48 = vld [vmem:[%s9421_s2 + $0x28] sm:$0xff]  }
 0x104   : > { %v582_v6 = vsel %vm9429_vm11, %v577_v44, %v579_v55  ;;  %v7656_v44 = vld [vmem:[%s9421_s2 + $0x18] sm:$0xff]  }
 0x105   : > { %v7660_v55 = vld [vmem:[%s9421_s2 + $0x38] sm:$0xff]  }
 0x106   : > { %501 = vmatpush1.bf16.msra.mxu0 %v7644_v52  ;;  %v319_v52 = vld [vmem:[%s9422_s3 + $0x10] sm:$0xff] }
 0x107   : > { %6541 = vmatprep.subr.msk.bf16.mxu0 %vm9428_vm3, %v6540_v56  ;;  %v695_v0 = vpop.permute.xlu1 %694  ;;  %vm9431_vm3 = vcmask 293888   ;;  %v7661_v56 = vld [vmem:[%s9421_s2 + $0x40] sm:$0xff]  }
 0x108   : > { %v701_v37 = vsel %vm700_vm5, %v695_v0, %v697_v13  ;;  %v1018_v59 = vpop.permute.xlu0 %1017 }
 0x109   : > { %6532 = vmatmul.mubr.msk.bf16.gmra.mrb[4].mxu0 %vm382_vm2, %v7647_v60 }
 0x10a   : > { %503 = vmatpush1.bf16.msra.mxu0 %v493_v63  ;;  %530 = vmatprep.mubr.bf16.mxu0 %v7935_v1 }
 0x10b   : > { %6553 = vmatprep.subr.msk.bf16.mxu0 %vm389_vm0, %v582_v6  ;;  %v699_v8 = vpop.permute.xlu1 %698 }
 0x10c   : > { %v702_v19 = vsel %vm700_vm5, %v697_v13, %v699_v8  ;;  %v1022_v63 = vpop.permute.xlu0 %1021  ;;  %v7664_v13 = vld [vmem:[%s9421_s2 + $0x58] sm:$0xff]  }
 0x10f   : > { %v811_v17 = vpop.permute.xlu1 %810 }
 0x110   : > { %v816_v42 = vsel %vm814_vm1, %v811_v17, %v813_v39  ;;  %v1132_v5 = vpop.permute.xlu0 %1131 }
 0x111   : > { %6542 = vmatmul.mubr.msk.bf16.vlgmr.msra.gmra.mrb[0].mxu0 %vm9431_vm3, %v7650_v12 }
 0x112   : > { %596 = vmatpush1.bf16.msra.mxu0 %v590_v23  ;;  %540 = vmatprep.mubr.bf16.mxu0 %v7935_v1 }
 0x113   : > { %6565 = vmatprep.subr.msk.bf16.mxu0 %vm389_vm0, %v702_v19  ;;  %v1321_v25 = vpop.permute.xlu1 %1320 }
 0x114   : > { %v1322_v27 = vrot.slane %v1321_v25, 4  ;;  %v1234_v12 = vpop.permute.xlu0 %1233 }
 0x116   : > { %v8164_v29 = vsel %vm379_vm15, %v1322_v27, %v1321_v25  ;;  %vm8166_vm11 = vcmp.ne.s16.totalorder %v1322_v27, 0 }
 0x117   : > { %vm1324_vm7 = vcmp.ne.s16.totalorder %v8164_v29, 0  ;;  %v1327_v33 = vsel %vm8166_vm11, %v8097_v46, 0  ;;  %v815_v46 = vsel %vm814_vm1, %v809_v31, %v811_v17  ;;  %v1020_v58 = vpop.permute.xlu1 %1019  ;;  %v7768_v29 = vld [vmem:[%s9423_s4 + $0x78] sm:$0xff]  }
 0x118   : > { %v1326_v32 = vsel %vm1324_vm7, %v8086_v40, 0  ;;  %v6635_v36 = vcombine.low %v1327_v33, %v1327_v33  ;;  %v710_v40 = vsel %vm389_vm0, %v701_v37, 0  ;;  %v824_v47 = vsel %vm389_vm0, %v815_v46, 0  ;;  %v1238_v17 = vpop.permute.xlu0 %1237  ;;  %v8288_v37 = vld [vmem:[#allocation2] sm:$0xff] }
 0x119   : > { %6543 = vmatmul.mubr.msk.bf16.gmra.mrb[4].mxu0 %vm9431_vm3, %v7651_v28  ;;  %v6633_v34 = vcombine.low %v1326_v32, %v1326_v32  ;;  %v6634_v35 = vcombine.high %v1326_v32, %v1326_v32  ;;  %v1023_v60 = vsel %vm784_vm10, %v1018_v59, %v1020_v58  ;;  %v1024_v0 = vsel %vm784_vm10, %v1020_v58, %v1022_v63  ;;  %v7666_v32 = vld [vmem:[%s9421_s2 + $0x68] sm:$0xff]  }
 0x11a   : > { %627 = vmatprep.mubr.bf16.mxu0 %v7935_v1  ;;  %v1032_v2 = vsel %vm389_vm0, %v1023_v60, 0  ;;  %vm9433_vm3 = vcmask 916480  }
 0x11b   : > { %1346 = vrot.lane.b32.xlu1 %v6633_v34, %s7936_s26  ;;  %1348 = vrot.lane.b32.xlu0 %v6634_v35, %s7936_s26  ;;  %v1130_v4 = vpop.permute.xlu1 %1129  ;;  %v7667_v34 = vld [vmem:[%s9421_s2 + $0x70] sm:$0xff]  }
 0x11c   : > { %v1135_v6 = vsel %vm9434_vm9, %v1130_v4, %v1132_v5 }
 0x11d   : > { %v1144_v8 = vsel %vm389_vm0, %v1135_v6, 0 }
 0x11f   : > { %1350 = vrot.lane.b32.xlu1 %v6635_v36, %s7936_s26  ;;  %1429 = vperm.xlu0 %7637, %v317_v49   ;;  %v1134_v7 = vpop.permute.xlu1 %1133  ;;  %v7668_v36 = vld [vmem:[%s9421_s2 + $0x78] sm:$0xff]  }
 0x120   : > { %v1136_v9 = vsel %vm9434_vm9, %v1132_v5, %v1134_v7 }
 0x121   : > { %6554 = vmatmul.mubr.msk.bf16.vlgmr.msra.gmra.mrb[0].mxu0 %vm382_vm2, %v7653_v38  ;;  %v7669_v38 = vld [vmem:[%s9421_s2 + $0x80] sm:$0xff]  }
 0x122   : > { %716 = vmatpush1.bf16.msra.mxu0 %v710_v40  ;;  %637 = vmatprep.mubr.bf16.mxu0 %v7935_v1 }
 0x123   : > { %6577 = vmatprep.subr.msk.bf16.mxu0 %vm389_vm0, %v816_v42  ;;  %1434 = vperm.xlu1 %7638, %v318_v50   ;;  %v1236_v16 = vpop.permute.xlu1 %1235 }
 0x124   : > { %1444 = vperm.xlu0 %7637, %v320_v51   ;;  %v1240_v19 = vsel %vm9433_vm3, %v1234_v12, %v1236_v16 }
 0x125   : > { %v1249_v23 = vsel %vm389_vm0, %v1240_v19, 0 }
 0x127   : > { %1439 = vperm.xlu1 %7638, %v319_v52  }
 0x129   : > { %6555 = vmatmul.mubr.msk.bf16.gmra.mrb[4].mxu0 %vm382_vm2, %v7656_v44 }
 0x12a   : > { %747 = vmatprep.mubr.bf16.mxu0 %v7935_v1 }
 0x131   : > { %6566 = vmatmul.mubr.msk.bf16.vlgmr.msra.gmra.mrb[0].mxu0 %vm382_vm2, %v7657_v45 }
 0x132   : > { %830 = vmatpush1.bf16.msra.mxu0 %v824_v47  ;;  %757 = vmatprep.mubr.bf16.mxu0 %v7935_v1 }
 0x133   : > { %6588 = vmatprep.subr.msk.bf16.mxu0 %vm389_vm0, %v6622_v18  ;;  %v1241_v18 = vsel %vm9433_vm3, %v1236_v16, %v1238_v17  ;;  %vm9448_vm3 = vcmp.ne.s16.totalorder %v8040_v20, 0 }
 0x139   : > { %6567 = vmatmul.mubr.msk.bf16.gmra.mrb[4].mxu0 %vm382_vm2, %v7658_v48 }
 0x13a   : > { %861 = vmatprep.mubr.bf16.mxu0 %v7935_v1 }
 0x141   : > { %6578 = vmatmul.mubr.msk.bf16.vlgmr.msra.gmra.mrb[0].mxu0 %vm382_vm2, %v7659_v53 }
 0x142   : > { %871 = vmatprep.mubr.bf16.mxu0 %v7935_v1  ;;  %924 = vmatpush1.bf16.msra.mxu0 %v918_v54 }
 0x143   : > { %6600 = vmatprep.subr.msk.bf16.mxu0 %vm389_vm0, %v1024_v0 }
 0x149   : > { %6579 = vmatmul.mubr.msk.bf16.gmra.mrb[4].mxu0 %vm382_vm2, %v7660_v55 }
 0x14a   : > { %955 = vmatprep.mubr.bf16.mxu0 %v7935_v1 }
 0x151   : > { %6589 = vmatmul.mubr.msk.bf16.vlgmr.msra.gmra.mrb[0].mxu0 %vm382_vm2, %v7661_v56 }
 0x152   : > { %965 = vmatprep.mubr.bf16.mxu0 %v7935_v1  ;;  %1038 = vmatpush1.bf16.msra.mxu0 %v1032_v2 }
 0x153   : > { %6612 = vmatprep.subr.msk.bf16.mxu0 %vm389_vm0, %v1136_v9 }
 0x159   : > { %6590 = vmatmul.mubr.msk.bf16.gmra.mrb[4].mxu0 %vm382_vm2, %v7662_v57 }
 0x15a   : > { %1069 = vmatprep.mubr.bf16.mxu0 %v7935_v1 }
 0x161   : > { %6601 = vmatmul.mubr.msk.bf16.vlgmr.msra.gmra.mrb[0].mxu0 %vm382_vm2, %v7663_v3 }
 0x162   : > { %1079 = vmatprep.mubr.bf16.mxu0 %v7935_v1  ;;  %1150 = vmatpush1.bf16.msra.mxu0 %v1144_v8 }
 0x163   : > { %6624 = vmatprep.subr.msk.bf16.mxu0 %vm389_vm0, %v1241_v18 }
 0x169   : > { %6602 = vmatmul.mubr.msk.bf16.gmra.mrb[4].mxu0 %vm382_vm2, %v7664_v13 }
 0x16a   : > { %1181 = vmatprep.mubr.bf16.mxu0 %v7935_v1 }
 0x171   : > { %6613 = vmatmul.mubr.msk.bf16.vlgmr.msra.gmra.mrb[0].mxu0 %vm382_vm2, %v7665_v21 }
 0x172   : > { %1191 = vmatprep.mubr.bf16.mxu0 %v7935_v1  ;;  %1255 = vmatpush1.bf16.msra.mxu0 %v1249_v23 }
 0x179   : > { %6614 = vmatmul.mubr.msk.bf16.gmra.mrb[4].mxu0 %vm382_vm2, %v7666_v32 }
 0x17a   : > { %1286 = vmatprep.mubr.bf16.mxu0 %v7935_v1 }
 0x181   : > { %6625 = vmatmul.mubr.msk.bf16.vlgmr.msra.gmra.mrb[0].mxu0 %vm382_vm2, %v7667_v34 }
 0x182   : > { %1296 = vmatprep.mubr.bf16.mxu0 %v7935_v1  ;;  %v7670_v1 = vld [vmem:[%s9421_s2 + $0x88] sm:$0xff]  }
 0x189   : > { %6626 = vmatmul.mubr.msk.bf16.gmra.mrb[4].mxu0 %vm382_vm2, %v7668_v36 }
 0x18a   : > { %1398 = vmatprep.mubr.bf16.mxu0 %v8288_v37 }
 0x18d   : > { %v1347_v25 = vpop.permute.xlu1 %1346  ;;  %v1349_v27 = vpop.permute.xlu0 %1348 }
 0x18e   : > { %v1352_v33 = vsel %vm9432_vm6, %v1347_v25, %v1349_v27 }
 0x18f   : > { %v1361_v35 = vsel %vm389_vm0, %v1352_v33, 0 }
 0x191   : > { %v1351_v28 = vpop.permute.xlu1 %1350 }
 0x192   : > { %v1353_v31 = vsel %vm9432_vm6, %v1349_v27, %v1351_v28  ;;  %vm9447_vm6 = vcmp.ne.s16.totalorder %v8018_v10, 0 }
 0x193   : > { %6636 = vmatprep.subr.msk.bf16.mxu0 %vm389_vm0, %v1353_v31 }
 0x194   : > { %1367 = vmatpush1.bf16.msra.mxu0 %v1361_v35 }
 0x197   : > { %6637 = vmatmul.mubr.msk.bf16.vlgmr.msra.gmra.mrb[0].mxu0 %vm382_vm2, %v7669_v38 }
 0x198   : > { %1408 = vmatprep.mubr.bf16.mxu0 %v8288_v37 }
 0x19e   : > { %v8301_v39 = vpop.permute.xlu0 %1429 }
 0x19f   : > { %6638 = vmatmul.mubr.msk.bf16.gmra.mrb[4].mxu0 %vm382_vm2, %v7670_v1 }
 0x1a0   : > { %1595 = vmatprep.mubr.bf16.mxu0 %v8288_v37 }
 0x1a2   : > { %v8304_v45 = vpop.permute.xlu1 %1434 }
 0x1a3   : > { %v8313_v63 = vpop.permute.xlu0 %1444 }
 0x1a6   : > { %v8309_v55 = vpop.permute.xlu1 %1439 }
 0x26a   : > { %v1400_v40 = vpop.f32.mrb[0].mxu0 }
 0x26b   : > { %v1447_v42 = vadd.f32 %v8301_v39, %v1400_v40  ;;  %v1402_v44 = vpop.f32.mrb[1].mxu0 }
 0x26c   : > { %v1448_v46 = vadd.f32 %v8301_v39, %v1402_v44  ;;  %v1404_v47 = vpop.f32.mrb[2].mxu0 }
 0x26d   : > { %v6639_v48 = vmul.f32 -1.442695, %v1447_v42  ;;  %v1449_v49 = vadd.f32 %v8304_v45, %v1404_v47  ;;  %v1406_v50 = vpop.f32.mrb[3].mxu0 }
 0x26e   : > { %v6640_v51 = vmul.f32 -1.442695, %v1448_v46  ;;  %v1450_v52 = vadd.f32 %v8304_v45, %v1406_v50 }
 0x26f   : > { %7789 = vpow2.f32 %v6639_v48  ;;  %v6641_v53 = vmul.f32 -1.442695, %v1449_v49 }
 0x270   : > { %7791 = vpow2.f32 %v6640_v51  ;;  %v6642_v54 = vmul.f32 -1.442695, %v1450_v52 }
 0x271   : > { %7793 = vpow2.f32 %v6641_v53 }
 0x272   : > { %7795 = vpow2.f32 %v6642_v54  ;;  %v1410_v56 = vpop.f32.mrb[4].mxu0 }
 0x273   : > { %v1451_v57 = vadd.f32 %v8309_v55, %v1410_v56  ;;  %v1412_v58 = vpop.f32.mrb[5].mxu0 }
 0x274   : > { %v1452_v59 = vadd.f32 %v8309_v55, %v1412_v58  ;;  %v1414_v60 = vpop.f32.mrb[6].mxu0 }
 0x275   : > { %v6643_v0 = vmul.f32 -1.442695, %v1451_v57  ;;  %v1416_v2 = vpop.f32.mrb[7].mxu0  ;;  %v1453_v4 = vadd.f32 %v8313_v63, %v1414_v60 }
 0x276   : > { %v6644_v3 = vmul.f32 -1.442695, %v1452_v59  ;;  %v1454_v5 = vadd.f32 %v8313_v63, %v1416_v2 }
 0x277   : > { %7797 = vpow2.f32 %v6643_v0 }
 0x278   : > { %7799 = vpow2.f32 %v6644_v3 }
 0x279   : > { %v7790_v6 = vpop.eup %7789  ;;  %7801 = vtanh.f32 %v1453_v4 }
 0x27a   : > { %v7792_v7 = vpop.eup %7791  ;;  %v1473_v8 = vadd.f32 1.0, %v7790_v6  ;;  %7803 = vtanh.f32 %v1454_v5 }
 0x27b   : > { %v7794_v9 = vpop.eup %7793  ;;  %v1474_v12 = vadd.f32 1.0, %v7792_v7 }
 0x27c   : > { %v7796_v13 = vpop.eup %7795  ;;  %7805 = vrcp.f32 %v1473_v8  ;;  %v1475_v16 = vadd.f32 1.0, %v7794_v9 }
 0x27d   : > { %7807 = vrcp.f32 %v1474_v12  ;;  %v1476_v17 = vadd.f32 1.0, %v7796_v13 }
 0x27e   : > { %7809 = vrcp.f32 %v1475_v16 }
 0x27f   : > { %7811 = vrcp.f32 %v1476_v17  ;;  %v2019_v17 = vld [vmem:[#allocation2 + $0xc] sm:$0xf] }
 0x281   : > { %v7798_v18 = vpop.eup %7797 }
 0x282   : > { %v7800_v19 = vpop.eup %7799  ;;  %v1477_v28 = vadd.f32 1.0, %v7798_v18 }
 0x283   : > { %v7802_v21 = vpop.eup %7801  ;;  %v1478_v33 = vadd.f32 1.0, %v7800_v19 }
 0x284   : > { %v7804_v23 = vpop.eup %7803  ;;  %7813 = vrcp.f32 %v1477_v28  ;;  %v2127_v28 = vsel %vm8118_vm13, %v2019_v17, 0 }
 0x285   : > { %7815 = vrcp.f32 %v1478_v33 }
 0x286   : > { %v7806_v25 = vpop.eup %7805 }
 0x287   : > { %v7808_v27 = vpop.eup %7807  ;;  %v1495_v31 = vmul.f32 %v7806_v25, %v7802_v21  ;;  %v2021_v21 = vsel %vm8093_vm4, %v2019_v17, 0 }
 0x288   : > { %v7810_v32 = vpop.eup %7809  ;;  %v1496_v34 = vmul.f32 %v7808_v27, %v7804_v23  ;;  %v6709_v25 = vcombine.low %v2021_v21, %v2021_v21  ;;  %v2960_v21 = vld [vmem:[#allocation3 + $0xc] sm:$0xf] }
 0x289   : > { %v7812_v35 = vpop.eup %7811  ;;  %v1493_v36 = vmul.f32 0.0, %v7810_v32  ;;  %v6721_v32 = vcombine.low %v2127_v28, %v2127_v28 }
 0x28a   : > { %v1494_v38 = vmul.f32 0.0, %v7812_v35  ;;  %v6733_v35 = vcombine.low %v2019_v17, %v2019_v17 }
 0x28b   : > { %v8317_v1 = vadd.f32 %v1495_v31, %v1493_v36 }
 0x28c   : > { %v8319_v40 = vadd.f32 %v1496_v34, %v1494_v38 }
 0x28d   : > { %7817 = vtanh.f32 %v8317_v1 }
 0x28e   : > { %7819 = vtanh.f32 %v8319_v40  ;;  %v7814_v42 = vpop.eup %7813 }
 0x28f   : > { %v7816_v44 = vpop.eup %7815 }
 0x297   : > { %v7818_v46 = vpop.eup %7817 }
 0x298   : > { %v7820_v47 = vpop.eup %7819  ;;  %v1501_v48 = vmul.f32 %v7818_v46, %v7814_v42 }
 0x299   : > { %v1502_v49 = vmul.f32 %v7820_v47, %v7816_v44 }
 0x29a   : > { %v8366_v33 = vpack.c.bf16 %v1501_v48, %v1501_v48 }
 0x29b   : > { %v8323_v50 = vpack.c.bf16 %v1502_v49, %v1501_v48  ;;  %v8368_v34 = vpack.c.bf16 %v1502_v49, %v1502_v49  ;;  %v4065_v49 = vld [vmem:[#allocation2 + $0xc] sm:$0xf] }
 0x29d   : > { %1511 = vst [vmem:[#allocation2 + $0x4] sm:$0xff] %v8323_v50 }
 0x2a4   : > { %v1516_v51 = vld [vmem:[#allocation2] sm:$0xff]  ;;  %v1517_v54 = vld [vmem:[#allocation2 + $0x8] sm:$0xf] }
 0x2a5   : > { %v6653_v52 = vcombine.high %v1516_v51, %v1516_v51  ;;  %v6652_v53 = vcombine.low %v1516_v51, %v1516_v51  ;;  %v1518_v56 = vsel %vm9447_vm6, %v1516_v51, 0  ;;  %v6654_v57 = vcombine.low %v1517_v54, %v1517_v54  ;;  %v3476_v36 = vld [vmem:[#allocation2 + $0x8] sm:$0xf] }
 0x2a6   : > { %v6660_v58 = vcombine.low %v1518_v56, %v1518_v56  ;;  %v1519_v59 = vsel %vm8021_vm8, %v1517_v54, 0  ;;  %v6661_v60 = vcombine.high %v1518_v56, %v1518_v56  ;;  %v1712_v2 = vsel %vm9448_vm3, %v1516_v51, 0 }
 0x2a7   : > { %1545 = vrot.lane.b32.xlu0 %v6653_v52, %s7941_s12  ;;  %1543 = vrot.lane.b32.xlu1 %v6652_v53, %s7941_s12  ;;  %v6662_v0 = vcombine.low %v1519_v59, %v1519_v59  ;;  %v6672_v3 = vcombine.low %v1712_v2, %v1712_v2  ;;  %v6673_v4 = vcombine.high %v1712_v2, %v1712_v2  ;;  %v1713_v5 = vsel %vm8052_vm12, %v1517_v54, 0 }
 0x2a8   : > { %vm9449_vm6 = vcmp.ne.s16.totalorder %v8046_v22, 0  ;;  %v6674_v7 = vcombine.low %v1713_v5, %v1713_v5  ;;  %v1819_v9 = vsel %vm8061_vm14, %v1517_v54, 0  ;;  %vm9450_vm3 = vcmp.ne.s16.totalorder %v8089_v41, 0 }
 0x2a9   : > { %v1818_v6 = vsel %vm9449_vm6, %v1516_v51, 0  ;;  %v6686_v13 = vcombine.low %v1819_v9, %v1819_v9  ;;  %v2020_v16 = vsel %vm9450_vm3, %v8323_v50, 0  ;;  %vm9451_vm6 = vcmp.ne.s16.totalorder %v8116_v61, 0 }
 0x2aa   : > { %v6684_v8 = vcombine.low %v1818_v6, %v1818_v6  ;;  %v6685_v12 = vcombine.high %v1818_v6, %v1818_v6  ;;  %v6707_v18 = vcombine.low %v2020_v16, %v2020_v16  ;;  %v6708_v19 = vcombine.high %v2020_v16, %v2020_v16 }
 0x2ab   : > { %1547 = vrot.lane.b32.xlu1 %v6654_v57, %s7941_s12  ;;  %1634 = vrot.lane.b32.xlu0 %v6660_v58, %s7939_s10  ;;  %v2126_v23 = vsel %vm9451_vm6, %v8323_v50, 0  ;;  %v3478_v38 = vsel %vm8021_vm8, %v3476_v36, 0  ;;  %v6889_v44 = vcombine.low %v3476_v36, %v3476_v36  ;;  %v3762_v46 = vsel %vm8052_vm12, %v3476_v36, 0 }
 0x2ac   : > { %v6719_v27 = vcombine.low %v2126_v23, %v2126_v23  ;;  %v6720_v31 = vcombine.high %v2126_v23, %v2126_v23  ;;  %v6868_v42 = vcombine.low %v3478_v38, %v3478_v38  ;;  %v6901_v47 = vcombine.low %v3762_v46, %v3762_v46 }
 0x2ad   : > { %v3867_v48 = vsel %vm8061_vm14, %v3476_v36, 0  ;;  %v4172_v54 = vsel %vm8118_vm13, %v4065_v49, 0  ;;  %v6960_v57 = vcombine.low %v4065_v49, %v4065_v49  ;;  %v2336_v59 = vsel %vm1324_vm7, %v8323_v50, 0 }
 0x2ae   : > { %v6913_v51 = vcombine.low %v3867_v48, %v3867_v48  ;;  %v6948_v56 = vcombine.low %v4172_v54, %v4172_v54  ;;  %v6743_v2 = vcombine.low %v2336_v59, %v2336_v59  ;;  %vm9452_vm6 = vcmask 130048  }
 0x2af   : > { %1636 = vrot.lane.b32.xlu1 %v6661_v60, %s7939_s10  ;;  %1638 = vrot.lane.b32.xlu0 %v6662_v0, %s7939_s10  ;;  %v6744_v0 = vcombine.high %v2336_v59, %v2336_v59  ;;  %vm9453_vm9 = vmmov %vm9452_vm6 }
 0x2b3   : > { %1732 = vrot.lane.b32.xlu1 %v6672_v3, %s7942_s13  ;;  %1734 = vrot.lane.b32.xlu0 %v6673_v4, %s7942_s13 }
 0x2b7   : > { %1736 = vrot.lane.b32.xlu1 %v6674_v7, %s7942_s13  ;;  %1838 = vrot.lane.b32.xlu0 %v6684_v8, %s7940_s11 }
 0x2bb   : > { %1840 = vrot.lane.b32.xlu1 %v6685_v12, %s7940_s11  ;;  %1842 = vrot.lane.b32.xlu0 %v6686_v13, %s7940_s11  ;;  %v2959_v13 = vld [vmem:[#allocation3 + $0x4] sm:$0xff] }
 0x2bc   : > { %v8479_v59 = vcombine.high %v2959_v13, %v2959_v13 }
 0x2bf   : > { %2040 = vrot.lane.b32.xlu1 %v6707_v18, %s7937_s27  ;;  %2042 = vrot.lane.b32.xlu0 %v6708_v19, %s7937_s27 }
 0x2c3   : > { %2044 = vrot.lane.b32.xlu1 %v6709_v25, %s7937_s27  ;;  %2146 = vrot.lane.b32.xlu0 %v6719_v27, %s7938_s28 }
 0x2c7   : > { %2148 = vrot.lane.b32.xlu1 %v6720_v31, %s7938_s28  ;;  %2150 = vrot.lane.b32.xlu0 %v6721_v32, %s7938_s28  ;;  %v2962_v32 = vsel %vm8093_vm4, %v2960_v21, 0 }
 0x2cb   : > { %2250 = vrot.lane.b32.xlu1 %v8366_v33, %s7943_s20  ;;  %2252 = vrot.lane.b32.xlu0 %v8368_v34, %s7943_s20 }
 0x2cf   : > { %2254 = vrot.lane.b32.xlu1 %v6733_v35, %s7943_s20  ;;  %3497 = vrot.lane.b32.xlu0 %v6660_v58, %s7939_s10  ;;  %v2337_v58 = vsel %vm8166_vm11, %v2019_v17, 0 }
 0x2d3   : > { %3499 = vrot.lane.b32.xlu1 %v6661_v60, %s7939_s10  ;;  %3501 = vrot.lane.b32.xlu0 %v6868_v42, %s7939_s10  ;;  %v6745_v60 = vcombine.low %v2337_v58, %v2337_v58  ;;  %v8476_v58 = vcombine.low %v2959_v13, %v2959_v13 }
 0x2d7   : > { %3676 = vrot.lane.b32.xlu1 %v6652_v53, %s7941_s12  ;;  %3678 = vrot.lane.b32.xlu0 %v6653_v52, %s7941_s12  ;;  %v4067_v52 = vsel %vm8093_vm4, %v4065_v49, 0 }
 0x2d8   : > { %v6936_v53 = vcombine.low %v4067_v52, %v4067_v52 }
 0x2db   : > { %3680 = vrot.lane.b32.xlu1 %v6889_v44, %s7941_s12  ;;  %3781 = vrot.lane.b32.xlu0 %v6672_v3, %s7942_s13  ;;  %v4380_v3 = vsel %vm8166_vm11, %v4065_v49, 0  ;;  %v6812_v44 = vcombine.low %v2962_v32, %v2962_v32  ;;  %v7685_v32 = vld [vmem:[%s9423_s4 + $0x20] sm:$0xff]  }
 0x2dc   : > { %v6972_v50 = vcombine.low %v4380_v3, %v4380_v3  ;;  %v6836_v3 = vcombine.low %v2960_v21, %v2960_v21 }
 0x2df   : > { %3783 = vrot.lane.b32.xlu1 %v6673_v4, %s7942_s13  ;;  %3785 = vrot.lane.b32.xlu0 %v6901_v47, %s7942_s13  ;;  %v2442_v4 = vld [vmem:[#allocation3 + $0x8] sm:$0xf] }
 0x2e0   : > { %v2444_v5 = vsel %vm8021_vm8, %v2442_v4, 0  ;;  %v6765_v7 = vcombine.low %v2442_v4, %v2442_v4 }
 0x2e1   : > { %v6753_v6 = vcombine.low %v2444_v5, %v2444_v5 }
 0x2e3   : > { %3886 = vrot.lane.b32.xlu1 %v6684_v8, %s7940_s11  ;;  %3888 = vrot.lane.b32.xlu0 %v6685_v12, %s7940_s11  ;;  %v2654_v8 = vsel %vm8052_vm12, %v2442_v4, 0  ;;  %v2760_v12 = vsel %vm8061_vm14, %v2442_v4, 0 }
 0x2e4   : > { %v6777_v9 = vcombine.low %v2654_v8, %v2654_v8  ;;  %v7683_v8 = vld [vmem:[%s9423_s4] sm:$0xff]  }
 0x2e7   : > { %3890 = vrot.lane.b32.xlu1 %v6913_v51, %s7940_s11  ;;  %4086 = vrot.lane.b32.xlu0 %v6707_v18, %s7937_s27  ;;  %v6789_v18 = vcombine.low %v2760_v12, %v2760_v12  ;;  %v3068_v51 = vsel %vm8118_vm13, %v2960_v21, 0 }
 0x2eb   : > { %4088 = vrot.lane.b32.xlu1 %v6708_v19, %s7937_s27  ;;  %4090 = vrot.lane.b32.xlu0 %v6936_v53, %s7937_s27  ;;  %v2961_v19 = vsel %vm9450_vm3, %v2959_v13, 0  ;;  %vm9454_vm3 = vcmp.ne.s16.totalorder %v8116_v61, 0 }
 0x2ec   : > { %v6810_v28 = vcombine.low %v2961_v19, %v2961_v19  ;;  %v3067_v36 = vsel %vm9454_vm3, %v2959_v13, 0 }
 0x2ed   : > { %v6822_v48 = vcombine.low %v3067_v36, %v3067_v36  ;;  %v6823_v52 = vcombine.high %v3067_v36, %v3067_v36 }
 0x2ef   : > { %4191 = vrot.lane.b32.xlu1 %v6719_v27, %s7938_s28  ;;  %4193 = vrot.lane.b32.xlu0 %v6720_v31, %s7938_s28  ;;  %v6811_v31 = vcombine.high %v2961_v19, %v2961_v19 }
 0x2f3   : > { %4195 = vrot.lane.b32.xlu1 %v6948_v56, %s7938_s28  ;;  %4294 = vrot.lane.b32.xlu0 %v8366_v33, %s7943_s20  ;;  %v6824_v56 = vcombine.low %v3068_v51, %v3068_v51 }
 0x2f7   : > { %4296 = vrot.lane.b32.xlu1 %v8368_v34, %s7943_s20  ;;  %4298 = vrot.lane.b32.xlu0 %v6960_v57, %s7943_s20  ;;  %v7679_v57 = vld [vmem:[%s9423_s4 + $0x18] sm:$0xff]  }
 0x2fb   : > { %2360 = vrot.lane.b32.xlu1 %v6745_v60, %s7936_s26  ;;  %2358 = vrot.lane.b32.xlu0 %v6744_v0, %s7936_s26 }
 0x2ff   : > { %2356 = vrot.lane.b32.xlu1 %v6743_v2, %s7936_s26  ;;  %4399 = vrot.lane.b32.xlu0 %v6743_v2, %s7936_s26 }
 0x303   : > { %4401 = vrot.lane.b32.xlu1 %v6744_v0, %s7936_s26  ;;  %4403 = vrot.lane.b32.xlu0 %v6972_v50, %s7936_s26  ;;  %v3277_v50 = vsel %vm1324_vm7, %v2959_v13, 0 }
 0x307   : > { %2463 = vrot.lane.b32.xlu1 %v8031_v15, %s7939_s10  ;;  %2465 = vrot.lane.b32.xlu0 %v8027_v14, %s7939_s10 }
 0x30b   : > { %2467 = vrot.lane.b32.xlu1 %v6753_v6, %s7939_s10  ;;  %2567 = vrot.lane.b32.xlu0 %v8031_v15, %s7941_s12  ;;  %v6846_v6 = vcombine.low %v3277_v50, %v3277_v50 }
 0x30f   : > { %2569 = vrot.lane.b32.xlu1 %v8027_v14, %s7941_s12  ;;  %2571 = vrot.lane.b32.xlu0 %v6765_v7, %s7941_s12  ;;  %v3278_v7 = vsel %vm8166_vm11, %v2960_v21, 0 }
 0x313   : > { %2673 = vrot.lane.b32.xlu1 %v8031_v15, %s7942_s13  ;;  %2675 = vrot.lane.b32.xlu0 %v8027_v14, %s7942_s13 }
 0x317   : > { %2677 = vrot.lane.b32.xlu1 %v6777_v9, %s7942_s13  ;;  %2779 = vrot.lane.b32.xlu0 %v8031_v15, %s7940_s11 }
 0x319   : > { %v1546_v16 = vpop.permute.xlu0 %1545  ;;  %v1544_v17 = vpop.permute.xlu1 %1543 }
 0x31a   : > { %v1549_v23 = vsel %vm9452_vm6, %v1544_v17, %v1546_v16  ;;  %v6848_v17 = vcombine.low %v3278_v7, %v3278_v7 }
 0x31b   : > { %2781 = vrot.lane.b32.xlu1 %v8027_v14, %s7940_s11  ;;  %2783 = vrot.lane.b32.xlu0 %v6789_v18, %s7940_s11  ;;  %v1558_v35 = vsel %vm389_vm0, %v1549_v23, 0  ;;  %v7678_v14 = vld [vmem:[%s9423_s4 + $0x10] sm:$0xff]  }
 0x31d   : > { %v1548_v25 = vpop.permute.xlu1 %1547  ;;  %v1635_v27 = vpop.permute.xlu0 %1634 }
 0x31e   : > { %v1550_v15 = vsel %vm9453_vm9, %v1546_v16, %v1548_v25  ;;  %v6847_v16 = vcombine.high %v3277_v50, %v3277_v50  ;;  %v7684_v25 = vld [vmem:[%s9423_s4 + $0x8] sm:$0xff]   ;;  %v7688_v50 = vld [vmem:[%s9423_s4 + $0x38] sm:$0xff]   ;;  %vm9455_vm9 = vcmask 924672  }
 0x31f   : > { %6655 = vmatprep.subr.msk.bf16.mxu0 %vm389_vm0, %v1550_v15  ;;  %2981 = vrot.lane.b32.xlu1 %v6810_v28, %s7937_s27  ;;  %vm9456_vm6 = vmmov %vm9455_vm9 }
 0x320   : > { %2983 = vrot.lane.b32.xlu0 %v6811_v31, %s7937_s27  ;;  %1564 = vmatpush1.bf16.msra.mxu0 %v1558_v35  ;;  %vm9457_vm3 = vmmov %vm9456_vm6 }
 0x321   : > { %v1637_v38 = vpop.permute.xlu1 %1636  ;;  %v1639_v42 = vpop.permute.xlu0 %1638 }
 0x322   : > { %v1640_v46 = vsel %vm379_vm15, %v1635_v27, %v1637_v38  ;;  %v1641_v47 = vsel %vm379_vm15, %v1637_v38, %v1639_v42 }
 0x323   : > { %6656 = vmatmul.mubr.msk.bf16.vlgmr.msra.gmra.mrb[8].mxu0 %vm382_vm2, %v7678_v14  ;;  %2985 = vrot.lane.b32.xlu1 %v6812_v44, %s7937_s27  ;;  %v1649_v49 = vsel %vm389_vm0, %v1640_v46, 0  ;;  %v7686_v46 = vld [vmem:[%s9423_s4 + $0x28] sm:$0xff]  }
 0x324   : > { %3087 = vrot.lane.b32.xlu0 %v6822_v48, %s7938_s28  ;;  %6663 = vmatprep.subr.msk.bf16.mxu0 %vm389_vm0, %v1641_v47 }
 0x325   : > { %1655 = vmatpush1.bf16.msra.mxu0 %v1649_v49  ;;  %v1733_v53 = vpop.permute.xlu1 %1732  ;;  %v1735_v54 = vpop.permute.xlu0 %1734  ;;  %1605 = vmatprep.mubr.bf16.mxu0 %v8288_v37 }
 0x326   : > { %v1738_v9 = vsel %vm700_vm5, %v1733_v53, %v1735_v54 }
 0x327   : > { %3089 = vrot.lane.b32.xlu1 %v6823_v52, %s7938_s28  ;;  %v1747_v18 = vsel %vm389_vm0, %v1738_v9, 0 }
 0x328   : > { %3091 = vrot.lane.b32.xlu0 %v6824_v56, %s7938_s28 }
 0x329   : > { %v1737_v60 = vpop.permute.xlu1 %1736  ;;  %v1839_v0 = vpop.permute.xlu0 %1838 }
 0x32a   : > { %v1739_v2 = vsel %vm700_vm5, %v1735_v54, %v1737_v60 }
 0x32b   : > { %6657 = vmatmul.mubr.msk.bf16.gmra.mrb[12].mxu0 %vm382_vm2, %v7679_v57  ;;  %3191 = vrot.lane.b32.xlu1 %v8476_v58, %s7943_s20  ;;  %v1947_v57 = vsel %vm389_vm0, %v8366_v33, 0 }
 0x32c   : > { %3193 = vrot.lane.b32.xlu0 %v8479_v59, %s7943_s20  ;;  %6675 = vmatprep.subr.msk.bf16.mxu0 %vm389_vm0, %v1739_v2 }
 0x32d   : > { %v1841_v4 = vpop.permute.xlu1 %1840  ;;  %v1843_v5 = vpop.permute.xlu0 %1842  ;;  %1686 = vmatprep.mubr.bf16.mxu0 %v8288_v37 }
 0x32e   : > { %v1845_v19 = vsel %vm814_vm1, %v1841_v4, %v1843_v5  ;;  %v1844_v35 = vsel %vm814_vm1, %v1839_v0, %v1841_v4 }
 0x32f   : > { %3195 = vrot.lane.b32.xlu1 %v6836_v3, %s7943_s20  ;;  %v1853_v38 = vsel %vm389_vm0, %v1844_v35, 0 }
 0x330   : > { %3297 = vrot.lane.b32.xlu0 %v6846_v6, %s7936_s26 }
 0x331   : > { %v8499_v12 = vpop.permute.xlu1 %2040  ;;  %v8501_v13 = vpop.permute.xlu0 %2042 }
 0x333   : > { %3299 = vrot.lane.b32.xlu1 %v6847_v16, %s7936_s26  ;;  %6664 = vmatmul.mubr.msk.bf16.vlgmr.msra.gmra.mrb[8].mxu0 %vm382_vm2, %v7683_v8  ;;  %v7689_v16 = vld [vmem:[%s9423_s4 + $0x40] sm:$0xff]  }
 0x334   : > { %3301 = vrot.lane.b32.xlu0 %v6848_v17, %s7936_s26  ;;  %1753 = vmatpush1.bf16.msra.mxu0 %v1747_v18  ;;  %v2046_v17 = vsel %vm784_vm10, %v8499_v12, %v8501_v13 }
 0x335   : > { %6687 = vmatprep.subr.msk.bf16.mxu0 %vm389_vm0, %v1845_v19  ;;  %v2045_v21 = vpop.permute.xlu1 %2044  ;;  %v8509_v23 = vpop.permute.xlu0 %2146  ;;  %1696 = vmatprep.mubr.bf16.mxu0 %v8288_v37 }
 0x336   : > { %v2047_v60 = vsel %vm784_vm10, %v8501_v13, %v2045_v21  ;;  %v7690_v13 = vld [vmem:[%s9423_s4 + $0x48] sm:$0xff]  }
 0x339   : > { %v8515_v27 = vpop.permute.xlu1 %2148  ;;  %v2151_v28 = vpop.permute.xlu0 %2150 }
 0x33b   : > { %6665 = vmatmul.mubr.msk.bf16.gmra.mrb[12].mxu0 %vm382_vm2, %v7684_v25  ;;  %v2055_v25 = vsel %vm389_vm0, %v2046_v17, 0 }
 0x33c   : > { %1784 = vmatprep.mubr.bf16.mxu0 %v8288_v37 }
 0x33d   : > { %v8519_v15 = vpop.permute.xlu1 %2250  ;;  %v8521_v31 = vpop.permute.xlu0 %2252 }
 0x341   : > { %v8527_v14 = vpop.permute.xlu1 %2254  ;;  %v8529_v36 = vpop.permute.xlu0 %3497 }
 0x343   : > { %6676 = vmatmul.mubr.msk.bf16.vlgmr.msra.gmra.mrb[8].mxu0 %vm382_vm2, %v7685_v32  ;;  %v2153_v32 = vsel %vm9456_vm6, %v8515_v27, %v2151_v28 }
 0x344   : > { %1859 = vmatpush1.bf16.msra.mxu0 %v1853_v38  ;;  %1794 = vmatprep.mubr.bf16.mxu0 %v8288_v37 }
 0x345   : > { %6698 = vmatprep.subr.msk.bf16.mxu0 %vm389_vm0, %v8368_v34  ;;  %v8536_v42 = vpop.permute.xlu1 %3499  ;;  %v8538_v44 = vpop.permute.xlu0 %3501  ;;  %v7687_v34 = vld [vmem:[%s9423_s4 + $0x30] sm:$0xff]  }
 0x349   : > { %v8543_v47 = vpop.permute.xlu1 %3676  ;;  %v8545_v48 = vpop.permute.xlu0 %3678 }
 0x34b   : > { %6677 = vmatmul.mubr.msk.bf16.gmra.mrb[12].mxu0 %vm382_vm2, %v7686_v46 }
 0x34c   : > { %1890 = vmatprep.mubr.bf16.mxu0 %v8288_v37 }
 0x34d   : > { %v8549_v49 = vpop.permute.xlu1 %3680  ;;  %v3782_v51 = vpop.permute.xlu0 %3781 }
 0x351   : > { %v3784_v52 = vpop.permute.xlu1 %3783  ;;  %v3786_v53 = vpop.permute.xlu0 %3785 }
 0x352   : > { %v8555_v54 = vsel %vm700_vm5, %v3782_v51, %v3784_v52  ;;  %v8558_v56 = vsel %vm700_vm5, %v3784_v52, %v3786_v53 }
 0x353   : > { %6688 = vmatmul.mubr.msk.bf16.vlgmr.msra.gmra.mrb[8].mxu0 %vm382_vm2, %v7687_v34 }
 0x354   : > { %1953 = vmatpush1.bf16.msra.mxu0 %v1947_v57  ;;  %1900 = vmatprep.mubr.bf16.mxu0 %v8288_v37 }
 0x355   : > { %6710 = vmatprep.subr.msk.bf16.mxu0 %vm389_vm0, %v2047_v60  ;;  %v3887_v0 = vpop.permute.xlu1 %3886  ;;  %v3889_v2 = vpop.permute.xlu0 %3888  ;;  %v7691_v60 = vld [vmem:[%s9423_s4 + $0x50] sm:$0xff]  }
 0x356   : > { %v8568_v3 = vsel %vm814_vm1, %v3887_v0, %v3889_v2 }
 0x359   : > { %v3891_v4 = vpop.permute.xlu1 %3890  ;;  %v4087_v5 = vpop.permute.xlu0 %4086 }
 0x35a   : > { %v8574_v33 = vsel %vm814_vm1, %v3889_v2, %v3891_v4 }
 0x35b   : > { %6689 = vmatmul.mubr.msk.bf16.gmra.mrb[12].mxu0 %vm382_vm2, %v7688_v50 }
 0x35c   : > { %1984 = vmatprep.mubr.bf16.mxu0 %v8288_v37 }
 0x35d   : > { %v4089_v6 = vpop.permute.xlu1 %4088  ;;  %v4091_v7 = vpop.permute.xlu0 %4090 }
 0x35e   : > { %v8579_v8 = vsel %vm784_vm10, %v4087_v5, %v4089_v6  ;;  %v8582_v9 = vsel %vm784_vm10, %v4089_v6, %v4091_v7  ;;  %v7692_v7 = vld [vmem:[%s9423_s4 + $0x80] sm:$0xff]  }
 0x361   : > { %v4192_v18 = vpop.permute.xlu1 %4191  ;;  %v4194_v19 = vpop.permute.xlu0 %4193 }
 0x362   : > { %v8591_v21 = vsel %vm9455_vm9, %v4192_v18, %v4194_v19  ;;  %vm9458_vm9 = vcmask 916480  }
 0x363   : > { %6699 = vmatmul.mubr.msk.bf16.vlgmr.msra.gmra.mrb[8].mxu0 %vm382_vm2, %v7689_v16  ;;  %vm9459_vm6 = vmmov %vm9458_vm9 }
 0x364   : > { %2061 = vmatpush1.bf16.msra.mxu0 %v2055_v25  ;;  %1994 = vmatprep.mubr.bf16.mxu0 %v8288_v37 }
 0x365   : > { %6722 = vmatprep.subr.msk.bf16.mxu0 %vm389_vm0, %v2153_v32  ;;  %v4196_v35 = vpop.permute.xlu1 %4195  ;;  %v4295_v38 = vpop.permute.xlu0 %4294  ;;  %v7694_v32 = vld [vmem:[%s9423_s4 + $0x88] sm:$0xff]  }
 0x366   : > { %v8600_v12 = vsel %vm9457_vm3, %v4194_v19, %v4196_v35  ;;  %vm9460_vm3 = vcmask 908288  }
 0x369   : > { %v4297_v46 = vpop.permute.xlu1 %4296  ;;  %v4299_v51 = vpop.permute.xlu0 %4298 }
 0x36a   : > { %v8606_v34 = vsel %vm9458_vm9, %v4295_v38, %v4297_v46  ;;  %v8609_v28 = vsel %vm9459_vm6, %v4297_v46, %v4299_v51  ;;  %vm9461_vm9 = vcmask 924672   ;;  %vm9462_vm6 = vmmov %vm9460_vm3 }
 0x36b   : > { %6700 = vmatmul.mubr.msk.bf16.gmra.mrb[12].mxu0 %vm382_vm2, %v7690_v13  ;;  %v2152_v0 = vsel %vm9461_vm9, %v8509_v23, %v8515_v27  ;;  %vm9464_vm9 = vmmov %vm9462_vm6 }
 0x36c   : > { %2092 = vmatprep.mubr.bf16.mxu0 %v8288_v37  ;;  %v2161_v5 = vsel %vm389_vm0, %v2152_v0, 0 }
 0x36d   : > { %v2361_v52 = vpop.permute.xlu1 %2360  ;;  %v2359_v53 = vpop.permute.xlu0 %2358 }
 0x36e   : > { %v2363_v57 = vsel %vm9460_vm3, %v2359_v53, %v2361_v52  ;;  %vm9463_vm3 = vcmask 916480   ;;  %v7695_v52 = vld [vmem:[%s9423_s4 + $0x60] sm:$0xff]  }
 0x36f   : > { %6746 = vmatprep.subr.msk.bf16.mxu1 %vm389_vm0, %v2363_v57  ;;  %v2257_v16 = vsel %vm9463_vm3, %v8521_v31, %v8527_v14  ;;  %v7693_v14 = vld [vmem:[%s9423_s4 + $0x58] sm:$0xff]  }
 0x371   : > { %v2357_v2 = vpop.permute.xlu1 %2356  ;;  %v4400_v50 = vpop.permute.xlu0 %4399 }
 0x372   : > { %v2362_v4 = vsel %vm9462_vm6, %v2357_v2, %v2359_v53  ;;  %v2256_v53 = vsel %vm9463_vm3, %v8519_v15, %v8521_v31  ;;  %v3504_v15 = vsel %vm379_vm15, %v8536_v42, %v8538_v44  ;;  %vm9467_vm3 = vcmask 1041408  }
 0x373   : > { %6711 = vmatmul.mubr.msk.bf16.vlgmr.msra.gmra.mrb[8].mxu0 %vm382_vm2, %v7691_v60  ;;  %v2371_v6 = vsel %vm389_vm0, %v2362_v4, 0  ;;  %v7696_v4 = vld [vmem:[%s9424_s5] sm:$0xff]  }
 0x374   : > { %2167 = vmatpush1.bf16.msra.mxu0 %v2161_v5  ;;  %2377 = vmatpush1.bf16.msra.mxu1 %v2371_v6  ;;  %v7697_v6 = vld [vmem:[%s9423_s4 + $0x68] sm:$0xff]  }
 0x375   : > { %6734 = vmatprep.subr.msk.bf16.mxu0 %vm389_vm0, %v2257_v16  ;;  %v4402_v23 = vpop.permute.xlu1 %4401  ;;  %v4404_v27 = vpop.permute.xlu0 %4403  ;;  %2102 = vmatprep.mubr.bf16.mxu0 %v8288_v37 }
 0x376   : > { %v8634_v17 = vsel %vm9464_vm9, %v4400_v50, %v4402_v23  ;;  %v8637_v18 = vsel %vm9462_vm6, %v4402_v23, %v4404_v27  ;;  %vm9465_vm9 = vcmask 130048   ;;  %v2265_v50 = vsel %vm389_vm0, %v2256_v53, 0  ;;  %v7698_v23 = vld [vmem:[%s9424_s5 + $0x8] sm:$0xff]   ;;  %v7706_v53 = vld [vmem:[%s9421_s2] sm:$0xff]  }
 0x377   : > { %6747 = vmatmul.mubr.msk.bf16.vlgmr.msra.gmra.mrb[0].mxu1 %vm382_vm2, %v7692_v7  ;;  %vm9466_vm6 = vmmov %vm9465_vm9 }
 0x378   : > { %2418 = vmatprep.mubr.bf16.mxu1 %v8288_v37 }
 0x379   : > { %v2464_v19 = vpop.permute.xlu1 %2463  ;;  %v2466_v25 = vpop.permute.xlu0 %2465 }
 0x37a   : > { %v2469_v35 = vsel %vm379_vm15, %v2464_v19, %v2466_v25  ;;  %v3503_v19 = vsel %vm379_vm15, %v8529_v36, %v8536_v42  ;;  %v7701_v42 = vld [vmem:[%s9423_s4 + $0x78] sm:$0xff]  }
 0x37b   : > { %6712 = vmatmul.mubr.msk.bf16.gmra.mrb[12].mxu0 %vm382_vm2, %v7693_v14  ;;  %v2478_v51 = vsel %vm389_vm0, %v2469_v35, 0  ;;  %v7699_v14 = vld [vmem:[%s9423_s4 + $0x70] sm:$0xff]  }
 0x37c   : > { %2198 = vmatprep.mubr.bf16.mxu0 %v8288_v37  ;;  %v7700_v35 = vld [vmem:[%s9424_s5 + $0x10] sm:$0xff]  }
 0x37d   : > { %v2468_v38 = vpop.permute.xlu1 %2467  ;;  %v2568_v13 = vpop.permute.xlu0 %2567 }
 0x37e   : > { %v2470_v46 = vsel %vm379_vm15, %v2466_v25, %v2468_v38  ;;  %v7705_v25 = vld [vmem:[%s8015_s9 + $0x2c] ss:$8 sps:$4 sm:$0xff]  }
 0x37f   : > { %6748 = vmatmul.mubr.msk.bf16.gmra.mrb[4].mxu1 %vm382_vm2, %v7694_v32  ;;  %6754 = vmatprep.subr.msk.bf16.mxu1 %vm389_vm0, %v2470_v46  ;;  %v3512_v32 = vsel %vm389_vm0, %v3503_v19, 0 }
 0x380   : > { %2484 = vmatpush1.bf16.msra.mxu1 %v2478_v51  ;;  %2515 = vmatprep.mubr.bf16.mxu1 %v8288_v37 }
 0x381   : > { %v2570_v57 = vpop.permute.xlu1 %2569  ;;  %v2572_v60 = vpop.permute.xlu0 %2571 }
 0x382   : > { %v2573_v0 = vsel %vm9465_vm9, %v2568_v13, %v2570_v57  ;;  %v2574_v2 = vsel %vm9466_vm6, %v2570_v57, %v2572_v60  ;;  %v7703_v57 = vld [vmem:[%s8015_s9 + $0x28] ss:$8 sps:$4 sm:$0xff]   ;;  %v7709_v60 = vld [vmem:[%s8015_s9 + $0x3c] ss:$8 sps:$4 sm:$0xff]   ;;  %vm9468_vm9 = vmmov %vm9467_vm3 }
 0x383   : > { %6723 = vmatmul.mubr.msk.bf16.vlgmr.msra.gmra.mrb[8].mxu0 %vm382_vm2, %v7695_v52  ;;  %6766 = vmatprep.subr.msk.bf16.mxu1 %vm389_vm0, %v2574_v2  ;;  %v2582_v31 = vsel %vm389_vm0, %v2573_v0, 0  ;;  %v7702_v52 = vld [vmem:[%s9424_s5 + $0x18] sm:$0xff]   ;;  %v6863_v0 = vld [vmem:[%s8015_s9 + $0x48] sm:$0x33]  ;;  %v7710_v2 = vld [vmem:[%s9424_s5 + $0x20] sm:$0xff]  }
 0x384   : > { %2271 = vmatpush1.bf16.msra.mxu0 %v2265_v50  ;;  %2208 = vmatprep.mubr.bf16.mxu0 %v8288_v37 }
 0x385   : > { %6869 = vmatprep.subr.msk.bf16.mxu0 %vm389_vm0, %v3504_v15  ;;  %v2674_v5 = vpop.permute.xlu1 %2673  ;;  %v2676_v7 = vpop.permute.xlu0 %2675  ;;  %v6877_v15 = vcombine.high %v6863_v0, %v6863_v0 }
 0x386   : > { %v2679_v38 = vsel %vm700_vm5, %v2674_v5, %v2676_v7 }
 0x387   : > { %6755 = vmatmul.mubr.msk.bf16.vlgmr.msra.gmra.mrb[0].mxu1 %vm382_vm2, %v7696_v4  ;;  %v2688_v36 = vsel %vm389_vm0, %v2679_v38, 0  ;;  %v7707_v4 = vld [vmem:[%s8015_s9 + $0x38] ss:$8 sps:$4 sm:$0xff]   ;;  %v3796_v38 = vsel %vm389_vm0, %v8555_v54, 0  ;;  %s9142_s9 = scalar_lea.vmem %s9426_s7, %s7198_s29 }
 0x388   : > { %2588 = vmatpush1.bf16.msra.mxu1 %v2582_v31  ;;  %2525 = vmatprep.mubr.bf16.mxu1 %v8288_v37  ;;  %v6876_v31 = vcombine.low %v6863_v0, %v6863_v0  ;;  %v7719_v54 = vld [vmem:[%s9421_s2 + $0x18] sm:$0xff]   ;;  %v3901_v0 = vsel %vm389_vm0, %v8568_v3, 0 }
 0x389   : > { %v2678_v44 = vpop.permute.xlu1 %2677  ;;  %v2780_v27 = vpop.permute.xlu0 %2779 }
 0x38a   : > { %v2680_v16 = vsel %vm700_vm5, %v2676_v7, %v2678_v44  ;;  %v3596_v7 = vsel %vm9468_vm9, %v6876_v31, 0  ;;  %v7714_v44 = vld [vmem:[%s9424_s5 + $0x28] sm:$0xff]   ;;  %vm9470_vm9 = vcmask 293888  }
 0x38b   : > { %6724 = vmatmul.mubr.msk.bf16.gmra.mrb[12].mxu0 %vm382_vm2, %v7697_v6  ;;  %6778 = vmatprep.subr.msk.bf16.mxu1 %vm389_vm0, %v2680_v16  ;;  %v7712_v6 = vld [vmem:[%s9421_s2 + $0x8] sm:$0xff]   ;;  %v3683_v16 = vsel %vm9466_vm6, %v8545_v48, %v8549_v49 }
 0x38c   : > { %2302 = vmatprep.mubr.bf16.mxu0 %v8288_v37 }
 0x38d   : > { %v2782_v13 = vpop.permute.xlu1 %2781  ;;  %v2784_v46 = vpop.permute.xlu0 %2783 }
 0x38e   : > { %v2786_v51 = vsel %vm814_vm1, %v2782_v13, %v2784_v46  ;;  %v2785_v50 = vsel %vm814_vm1, %v2780_v27, %v2782_v13  ;;  %v7918_v27 = vld [vmem:[%s9420_s1] sm:$0xff]  }
 0x38f   : > { %6756 = vmatmul.mubr.msk.bf16.gmra.mrb[4].mxu1 %vm382_vm2, %v7698_v23  ;;  %v2794_v5 = vsel %vm389_vm0, %v2785_v50, 0  ;;  %v7718_v13 = vld [vmem:[%s9424_s5 + $0x40] sm:$0xff]   ;;  %v7723_v50 = vld [vmem:[%s9424_s5 + $0x50] sm:$0xff]  }
 0x390   : > { %2619 = vmatprep.mubr.bf16.mxu1 %v8288_v37 }
 0x391   : > { %v2982_v23 = vpop.permute.xlu1 %2981 }
 0x393   : > { %6735 = vmatmul.mubr.msk.bf16.vlgmr.msra.gmra.mrb[8].mxu0 %vm382_vm2, %v7699_v14  ;;  %v7715_v14 = vld [vmem:[%s9424_s5 + $0x30] sm:$0xff]  }
 0x394   : > { %3518 = vmatpush1.bf16.msra.mxu0 %v3512_v32  ;;  %2312 = vmatprep.mubr.bf16.mxu0 %v8288_v37  ;;  %v7919_v32 = vld [vmem:[%s9420_s1 + $0x8] sm:$0xff]  }
 0x395   : > { %3601 = vmatprep.subr.bf16.mxu0 %v7705_v25  ;;  %v2986_v19 = vpop.permute.xlu1 %2985 }
 0x397   : > { %6767 = vmatmul.mubr.msk.bf16.vlgmr.msra.gmra.mrb[0].mxu1 %vm382_vm2, %v7700_v35  ;;  %v7717_v35 = vld [vmem:[%s9421_s2 + $0x10] sm:$0xff]  }
 0x398   : > { %2694 = vmatpush1.bf16.msra.mxu1 %v2688_v36  ;;  %2629 = vmatprep.mubr.bf16.mxu1 %v8288_v37 }
 0x399   : > { %6790 = vmatprep.subr.msk.bf16.mxu1 %vm389_vm0, %v2786_v51  ;;  %v3090_v36 = vpop.permute.xlu1 %3089 }
 0x39b   : > { %6736 = vmatmul.mubr.msk.bf16.gmra.mrb[12].mxu0 %vm382_vm2, %v7701_v42 }
 0x39c   : > { %3549 = vmatprep.mubr.bf16.mxu0 %v8288_v37 }
 0x39f   : > { %6768 = vmatmul.mubr.msk.bf16.gmra.mrb[4].mxu1 %vm382_vm2, %v7702_v52 }
 0x3a0   : > { %2725 = vmatprep.mubr.bf16.mxu1 %v8288_v37 }
 0x3a3   : > { %6870 = vmatmul.mubr.msk.bf16.vlgmr.msra.gmra.mrb[16].mxu0 %vm382_vm2, %v7706_v53  ;;  %v8807_v53 = vld [vmem:[#allocation3] sm:$0xff] }
 0x3a4   : > { %3602 = vmatpush1.bf16.msra.mxu0 %v7703_v57  ;;  %3559 = vmatprep.mubr.bf16.mxu0 %v8288_v37  ;;  %v3192_v57 = vpop.permute.xlu1 %3191 }
 0x3a5   : > { %3603 = vmatprep.subr.bf16.mxu0 %v7709_v60  ;;  %v7721_v60 = vld [vmem:[%s9421_s2 + $0x20] sm:$0xff]  }
 0x3a7   : > { %6779 = vmatmul.mubr.msk.bf16.vlgmr.msra.gmra.mrb[0].mxu1 %vm382_vm2, %v7710_v2 }
 0x3a8   : > { %2800 = vmatpush1.bf16.msra.mxu1 %v2794_v5  ;;  %3604 = vmatpush1.bf16.msra.mxu0 %v7707_v4  ;;  %v3196_v31 = vpop.permute.xlu1 %3195 }
 0x3a9   : > { %6878 = vmatprep.subr.msk.bf16.mxu0 %vm9467_vm3, %v6877_v15  ;;  %2735 = vmatprep.mubr.bf16.mxu1 %v8288_v37  ;;  %vm9469_vm3 = vmmov %vm9466_vm6 }
 0x3aa   : > { %6801 = vmatprep.subr.msk.bf16.mxu1 %vm389_vm0, %v8479_v59  ;;  %v3682_v59 = vsel %vm9469_vm3, %v8543_v47, %v8545_v48  ;;  %v2888_v47 = vsel %vm389_vm0, %v8476_v58, 0  ;;  %v2984_v48 = vpop.permute.xlu0 %2983  ;;  %vm9471_vm6 = vmmov %vm9470_vm9  ;;  %v7716_v58 = vld [vmem:[%s9424_s5 + $0x38] sm:$0xff]   ;;  %vm9472_vm3 = vcmask 924672  }
 0x3ab   : > { %6871 = vmatmul.mubr.msk.bf16.gmra.mrb[20].mxu0 %vm382_vm2, %v7712_v6  ;;  %v3691_v49 = vsel %vm389_vm0, %v3682_v59, 0  ;;  %v2988_v25 = vsel %vm784_vm10, %v2984_v48, %v2986_v19  ;;  %v2987_v46 = vsel %vm784_vm10, %v2982_v23, %v2984_v48  ;;  %v7724_v6 = vld [vmem:[%s9421_s2 + $0x28] sm:$0xff]   ;;  %v7729_v48 = vld [vmem:[%s9421_s2 + $0x38] sm:$0xff]  }
 0x3ac   : > { %3606 = vmatpush1.bf16.msra.mxu0 %v3596_v7  ;;  %3633 = vmatprep.mubr.bf16.mxu0 %v8288_v37  ;;  %v2996_v51 = vsel %vm389_vm0, %v2987_v46, 0  ;;  %v7725_v7 = vld [vmem:[%s9424_s5 + $0x58] sm:$0xff]   ;;  %v3300_v19 = vpop.permute.xlu1 %3299  ;;  %v4206_v46 = vsel %vm389_vm0, %v8591_v21, 0  ;;  %v7738_v21 = vld [vmem:[%s9424_s5 + $0x88] sm:$0xff]  }
 0x3ad   : > { %6890 = vmatprep.subr.msk.bf16.mxu0 %vm389_vm0, %v3683_v16  ;;  %v7726_v16 = vld [vmem:[%s9421_s2 + $0x30] sm:$0xff]  }
 0x3af   : > { %6780 = vmatmul.mubr.msk.bf16.gmra.mrb[4].mxu1 %vm382_vm2, %v7714_v44 }
 0x3b0   : > { %2831 = vmatprep.mubr.bf16.mxu1 %v8288_v37 }
 0x3b3   : > { %6879 = vmatmul.mubr.msk.bf16.vlgmr.msra.gmra.mrb[16].mxu0 %vm9470_vm9, %v7918_v27  ;;  %vm9473_vm9 = vmmov %vm9472_vm3 }
 0x3b4   : > { %3697 = vmatpush1.bf16.msra.mxu0 %v3691_v49  ;;  %3643 = vmatprep.mubr.bf16.mxu0 %v8288_v37  ;;  %v7728_v49 = vld [vmem:[%s9424_s5 + $0x60] sm:$0xff]  }
 0x3b5   : > { %6902 = vmatprep.subr.msk.bf16.mxu0 %vm389_vm0, %v8558_v56  ;;  %v3088_v56 = vpop.permute.xlu0 %3087 }
 0x3b6   : > { %v3093_v4 = vsel %vm9473_vm9, %v3088_v56, %v3090_v36  ;;  %vm9476_vm9 = vcmask 908288   ;;  %v7732_v56 = vld [vmem:[%s9424_s5 + $0x70] sm:$0xff]  }
 0x3b7   : > { %6791 = vmatmul.mubr.msk.bf16.vlgmr.msra.gmra.mrb[0].mxu1 %vm382_vm2, %v7715_v14  ;;  %v3102_v3 = vsel %vm389_vm0, %v3093_v4, 0 }
 0x3b8   : > { %2894 = vmatpush1.bf16.msra.mxu1 %v2888_v47  ;;  %2841 = vmatprep.mubr.bf16.mxu1 %v8288_v37 }
 0x3b9   : > { %6813 = vmatprep.subr.msk.bf16.mxu1 %vm389_vm0, %v2988_v25  ;;  %v3092_v42 = vpop.permute.xlu0 %3091 }
 0x3ba   : > { %v3094_v52 = vsel %vm9472_vm3, %v3090_v36, %v3092_v42  ;;  %v7736_v36 = vld [vmem:[%s9424_s5 + $0x80] sm:$0xff]   ;;  %v7737_v42 = vld [vmem:[%s9421_s2 + $0x58] sm:$0xff]  }
 0x3bb   : > { %6880 = vmatmul.mubr.msk.bf16.gmra.mrb[20].mxu0 %vm9471_vm6, %v7919_v32  ;;  %vm9474_vm6 = vcmask 916480   ;;  %v7730_v32 = vld [vmem:[%s9424_s5 + $0x68] sm:$0xff]  }
 0x3bc   : > { %3728 = vmatprep.mubr.bf16.mxu0 %v8288_v37  ;;  %vm9475_vm3 = vmmov %vm9474_vm6 }
 0x3bd   : > { %v3194_v15 = vpop.permute.xlu0 %3193 }
 0x3be   : > { %v3198_v5 = vsel %vm9474_vm6, %v3194_v15, %v3196_v31  ;;  %v3197_v59 = vsel %vm9475_vm3, %v3192_v57, %v3194_v15  ;;  %vm9477_vm6 = vmmov %vm9476_vm9  ;;  %vm9478_vm3 = vcmp.ne.s16.totalorder %v8018_v10, 0 }
 0x3bf   : > { %6792 = vmatmul.mubr.msk.bf16.gmra.mrb[4].mxu1 %vm382_vm2, %v7716_v58  ;;  %v3206_v14 = vsel %vm389_vm0, %v3197_v59, 0  ;;  %v4101_v58 = vsel %vm389_vm0, %v8579_v8, 0  ;;  %v7733_v8 = vld [vmem:[%s9421_s2 + $0x48] sm:$0xff]  }
 0x3c0   : > { %2925 = vmatprep.mubr.bf16.mxu1 %v8288_v37 }
 0x3c1   : > { %v3298_v44 = vpop.permute.xlu0 %3297 }
 0x3c3   : > { %6891 = vmatmul.mubr.msk.bf16.vlgmr.msra.gmra.mrb[16].mxu0 %vm382_vm2, %v7717_v35  ;;  %v3303_v35 = vsel %vm9477_vm6, %v3298_v44, %v3300_v19  ;;  %vm9480_vm6 = vcmp.ne.s16.totalorder %v8046_v22, 0 }
 0x3c4   : > { %3802 = vmatpush1.bf16.msra.mxu0 %v3796_v38  ;;  %3738 = vmatprep.mubr.bf16.mxu0 %v8288_v37  ;;  %v3312_v38 = vsel %vm389_vm0, %v3303_v35, 0 }
 0x3c5   : > { %6914 = vmatprep.subr.msk.bf16.mxu0 %vm389_vm0, %v8574_v33  ;;  %v7720_v33 = vld [vmem:[%s9424_s5 + $0x48] sm:$0xff]   ;;  %v3302_v47 = vpop.permute.xlu0 %3301 }
 0x3c6   : > { %v3304_v25 = vsel %vm9476_vm9, %v3300_v19, %v3302_v47  ;;  %vm9479_vm9 = vcmp.ne.s16.totalorder %v8040_v20, 0 }
 0x3c7   : > { %6802 = vmatmul.mubr.msk.bf16.vlgmr.msra.gmra.mrb[0].mxu1 %vm382_vm2, %v7718_v13  ;;  %v7734_v13 = vld [vmem:[%s9424_s5 + $0x78] sm:$0xff]  }
 0x3c8   : > { %3002 = vmatpush1.bf16.msra.mxu1 %v2996_v51  ;;  %2935 = vmatprep.mubr.bf16.mxu1 %v8288_v37  ;;  %v3971_v37 = vld [vmem:[#allocation2 + $0x4] sm:$0xff]  ;;  %v4309_v51 = vsel %vm389_vm0, %v8606_v34, 0  ;;  %v7741_v34 = vld [vmem:[%s9421_s2 + $0x70] sm:$0xff]  }
 0x3c9   : > { %6825 = vmatprep.subr.msk.bf16.mxu1 %vm389_vm0, %v3094_v52  ;;  %v6924_v2 = vcombine.high %v3971_v37, %v3971_v37  ;;  %v6923_v23 = vcombine.low %v3971_v37, %v3971_v37  ;;  %v4414_v52 = vsel %vm389_vm0, %v8634_v17, 0  ;;  %v7744_v17 = vld [vmem:[%s9421_s2 + $0x88] sm:$0xff]  }
 0x3cb   : > { %6892 = vmatmul.mubr.msk.bf16.gmra.mrb[20].mxu0 %vm382_vm2, %v7719_v54  ;;  %v3994_v27 = vsel %vm389_vm0, %v6923_v23, 0  ;;  %v7740_v54 = vld [vmem:[%s9421_s2 + $0x68] sm:$0xff]  }
 0x3cc   : > { %3833 = vmatprep.mubr.bf16.mxu0 %v8807_v53 }
 0x3cf   : > { %6803 = vmatmul.mubr.msk.bf16.gmra.mrb[4].mxu1 %vm382_vm2, %v7720_v33  ;;  %v7743_v33 = vld [vmem:[%s9421_s2 + $0x80] sm:$0xff]  }
 0x3d0   : > { %3033 = vmatprep.mubr.bf16.mxu1 %v8807_v53 }
 0x3d3   : > { %6903 = vmatmul.mubr.msk.bf16.vlgmr.msra.gmra.mrb[16].mxu0 %vm382_vm2, %v7721_v60 }
 0x3d4   : > { %3907 = vmatpush1.bf16.msra.mxu0 %v3901_v0  ;;  %3843 = vmatprep.mubr.bf16.mxu0 %v8807_v53 }
 0x3d5   : > { %6925 = vmatprep.subr.msk.bf16.mxu0 %vm389_vm0, %v6924_v2 }
 0x3d7   : > { %6814 = vmatmul.mubr.msk.bf16.vlgmr.msra.gmra.mrb[0].mxu1 %vm382_vm2, %v7723_v50 }
 0x3d8   : > { %3108 = vmatpush1.bf16.msra.mxu1 %v3102_v3  ;;  %3043 = vmatprep.mubr.bf16.mxu1 %v8807_v53 }
 0x3d9   : > { %6837 = vmatprep.subr.msk.bf16.mxu1 %vm389_vm0, %v3198_v5 }
 0x3db   : > { %6904 = vmatmul.mubr.msk.bf16.gmra.mrb[20].mxu0 %vm382_vm2, %v7724_v6 }
 0x3dc   : > { %3938 = vmatprep.mubr.bf16.mxu0 %v8807_v53 }
 0x3df   : > { %6815 = vmatmul.mubr.msk.bf16.gmra.mrb[4].mxu1 %vm382_vm2, %v7725_v7 }
 0x3e0   : > { %3139 = vmatprep.mubr.bf16.mxu1 %v8807_v53 }
 0x3e3   : > { %6915 = vmatmul.mubr.msk.bf16.vlgmr.msra.gmra.mrb[16].mxu0 %vm382_vm2, %v7726_v16 }
 0x3e4   : > { %4000 = vmatpush1.bf16.msra.mxu0 %v3994_v27  ;;  %3948 = vmatprep.mubr.bf16.mxu0 %v8807_v53 }
 0x3e5   : > { %6937 = vmatprep.subr.msk.bf16.mxu0 %vm389_vm0, %v8582_v9  ;;  %v7731_v9 = vld [vmem:[%s9421_s2 + $0x40] sm:$0xff]  }
 0x3e7   : > { %6826 = vmatmul.mubr.msk.bf16.vlgmr.msra.gmra.mrb[0].mxu1 %vm382_vm2, %v7728_v49 }
 0x3e8   : > { %3212 = vmatpush1.bf16.msra.mxu1 %v3206_v14  ;;  %3149 = vmatprep.mubr.bf16.mxu1 %v8807_v53 }
 0x3e9   : > { %6849 = vmatprep.subr.msk.bf16.mxu1 %vm389_vm0, %v3304_v25 }
 0x3eb   : > { %6916 = vmatmul.mubr.msk.bf16.gmra.mrb[20].mxu0 %vm382_vm2, %v7729_v48 }
 0x3ec   : > { %4031 = vmatprep.mubr.bf16.mxu0 %v8807_v53 }
 0x3ef   : > { %6827 = vmatmul.mubr.msk.bf16.gmra.mrb[4].mxu1 %vm382_vm2, %v7730_v32 }
 0x3f0   : > { %3243 = vmatprep.mubr.bf16.mxu1 %v8807_v53 }
 0x3f3   : > { %6926 = vmatmul.mubr.msk.bf16.vlgmr.msra.gmra.mrb[16].mxu0 %vm382_vm2, %v7731_v9 }
 0x3f4   : > { %4107 = vmatpush1.bf16.msra.mxu0 %v4101_v58  ;;  %4041 = vmatprep.mubr.bf16.mxu0 %v8807_v53 }
 0x3f5   : > { %6949 = vmatprep.subr.msk.bf16.mxu0 %vm389_vm0, %v8600_v12  ;;  %v7735_v12 = vld [vmem:[%s9421_s2 + $0x50] sm:$0xff]  }
 0x3f7   : > { %6838 = vmatmul.mubr.msk.bf16.vlgmr.msra.gmra.mrb[0].mxu1 %vm382_vm2, %v7732_v56 }
 0x3f8   : > { %3318 = vmatpush1.bf16.msra.mxu1 %v3312_v38  ;;  %3253 = vmatprep.mubr.bf16.mxu1 %v8807_v53 }
 0x3fb   : > { %6927 = vmatmul.mubr.msk.bf16.gmra.mrb[20].mxu0 %vm382_vm2, %v7733_v8 }
 0x3fc   : > { %4138 = vmatprep.mubr.bf16.mxu0 %v8807_v53 }
 0x3ff   : > { %6839 = vmatmul.mubr.msk.bf16.gmra.mrb[4].mxu1 %vm382_vm2, %v7734_v13 }
 0x400   : > { %3349 = vmatprep.mubr.bf16.mxu1 %v8807_v53 }
 0x403   : > { %6938 = vmatmul.mubr.msk.bf16.vlgmr.msra.gmra.mrb[16].mxu0 %vm382_vm2, %v7735_v12 }
 0x404   : > { %4212 = vmatpush1.bf16.msra.mxu0 %v4206_v46  ;;  %4148 = vmatprep.mubr.bf16.mxu0 %v8807_v53 }
 0x405   : > { %6961 = vmatprep.subr.msk.bf16.mxu0 %vm389_vm0, %v8609_v28  ;;  %v7739_v28 = vld [vmem:[%s9421_s2 + $0x60] sm:$0xff]  }
 0x407   : > { %6850 = vmatmul.mubr.msk.bf16.vlgmr.msra.gmra.mrb[0].mxu1 %vm382_vm2, %v7736_v36 }
 0x408   : > { %3359 = vmatprep.mubr.bf16.mxu1 %v8807_v53 }
 0x40b   : > { %6939 = vmatmul.mubr.msk.bf16.gmra.mrb[20].mxu0 %vm382_vm2, %v7737_v42 }
 0x40c   : > { %4243 = vmatprep.mubr.bf16.mxu0 %v8807_v53 }
 0x40f   : > { %6851 = vmatmul.mubr.msk.bf16.gmra.mrb[4].mxu1 %vm382_vm2, %v7738_v21 }
 0x410   : > { %4627 = vmatprep.mubr.bf16.mxu1 %v8807_v53 }
 0x413   : > { %6950 = vmatmul.mubr.msk.bf16.vlgmr.msra.gmra.mrb[16].mxu0 %vm382_vm2, %v7739_v28 }
 0x414   : > { %4315 = vmatpush1.bf16.msra.mxu0 %v4309_v51  ;;  %4253 = vmatprep.mubr.bf16.mxu0 %v8807_v53 }
 0x415   : > { %6973 = vmatprep.subr.msk.bf16.mxu0 %vm389_vm0, %v8637_v18  ;;  %v7742_v18 = vld [vmem:[%s9421_s2 + $0x78] sm:$0xff]  }
 0x41b   : > { %6951 = vmatmul.mubr.msk.bf16.gmra.mrb[20].mxu0 %vm382_vm2, %v7740_v54 }
 0x41c   : > { %4346 = vmatprep.mubr.bf16.mxu0 %v8807_v53 }
 0x423   : > { %6962 = vmatmul.mubr.msk.bf16.vlgmr.msra.gmra.mrb[16].mxu0 %vm382_vm2, %v7741_v34 }
 0x424   : > { %4420 = vmatpush1.bf16.msra.mxu0 %v4414_v52  ;;  %4356 = vmatprep.mubr.bf16.mxu0 %v8807_v53 }
 0x42b   : > { %6963 = vmatmul.mubr.msk.bf16.gmra.mrb[20].mxu0 %vm382_vm2, %v7742_v18 }
 0x42c   : > { %4451 = vmatprep.mubr.bf16.mxu0 %v8807_v53 }
 0x433   : > { %6974 = vmatmul.mubr.msk.bf16.vlgmr.msra.gmra.mrb[16].mxu0 %vm382_vm2, %v7743_v33 }
 0x434   : > { %4461 = vmatprep.mubr.bf16.mxu0 %v8807_v53 }
 0x43b   : > { %6975 = vmatmul.mubr.msk.bf16.gmra.mrb[20].mxu0 %vm382_vm2, %v7744_v17 }
 0x466   : > { %v2304_v57 = vpop.f32.mrb[8].mxu0 }
 0x467   : > { %v2306_v60 = vpop.f32.mrb[9].mxu0 }
 0x468   : > { %v2308_v37 = vpop.f32.mrb[10].mxu0 }
 0x469   : > { %v2310_v0 = vpop.f32.mrb[11].mxu0 }
 0x46e   : > { %v2314_v2 = vpop.f32.mrb[12].mxu0 }
 0x46f   : > { %v2316_v50 = vpop.f32.mrb[13].mxu0 }
 0x470   : > { %v2318_v4 = vpop.f32.mrb[14].mxu0 }
 0x471   : > { %v2320_v15 = vpop.f32.mrb[15].mxu0 }
 0x4da   : > { %v3351_v31 = vpop.f32.mrb[0].mxu1 }
 0x4db   : > { %v8951_v5 = vadd.f32 %v3351_v31, %v2304_v57  ;;  %v3353_v3 = vpop.f32.mrb[1].mxu1 }
 0x4dc   : > { %v8953_v6 = vadd.f32 %v3353_v3, %v2306_v60  ;;  %v3355_v7 = vpop.f32.mrb[2].mxu1 }
 0x4dd   : > { %v8955_v44 = vadd.f32 %v3355_v7, %v2308_v37  ;;  %v3357_v16 = vpop.f32.mrb[3].mxu1 }
 0x4de   : > { %v8957_v23 = vadd.f32 %v3357_v16, %v2310_v0 }
 0x4e2   : > { %v3361_v59 = vpop.f32.mrb[4].mxu1 }
 0x4e3   : > { %v8959_v27 = vadd.f32 %v3361_v59, %v2314_v2  ;;  %v3363_v49 = vpop.f32.mrb[5].mxu1 }
 0x4e4   : > { %v8961_v14 = vadd.f32 %v3363_v49, %v2316_v50  ;;  %v3365_v19 = vpop.f32.mrb[6].mxu1 }
 0x4e5   : > { %v8963_v47 = vadd.f32 %v3365_v19, %v2318_v4  ;;  %v3367_v48 = vpop.f32.mrb[7].mxu1 }
 0x4e6   : > { %v8965_v25 = vadd.f32 %v3367_v48, %v2320_v15 }
 0x506   : > { %v4453_v32 = vpop.f32.mrb[16].mxu0 }
 0x507   : > { %v4480_v9 = vadd.f32 %v4453_v32, %v8301_v39  ;;  %v4455_v58 = vpop.f32.mrb[17].mxu0 }
 0x508   : > { %v4481_v56 = vadd.f32 %v4455_v58, %v8301_v39  ;;  %v4457_v35 = vpop.f32.mrb[18].mxu0 }
 0x509   : > { %v6976_v38 = vmul.f32 -1.442695, %v4480_v9  ;;  %v4482_v8 = vadd.f32 %v4457_v35, %v8304_v45  ;;  %v4459_v13 = vpop.f32.mrb[19].mxu0 }
 0x50a   : > { %v6977_v12 = vmul.f32 -1.442695, %v4481_v56  ;;  %v4483_v46 = vadd.f32 %v4459_v13, %v8304_v45 }
 0x50b   : > { %7821 = vpow2.f32 %v6976_v38  ;;  %v6978_v36 = vmul.f32 -1.442695, %v4482_v8 }
 0x50c   : > { %7823 = vpow2.f32 %v6977_v12  ;;  %v6979_v42 = vmul.f32 -1.442695, %v4483_v46 }
 0x50d   : > { %7825 = vpow2.f32 %v6978_v36 }
 0x50e   : > { %7827 = vpow2.f32 %v6979_v42  ;;  %v4463_v21 = vpop.f32.mrb[20].mxu0 }
 0x50f   : > { %v4484_v28 = vadd.f32 %v4463_v21, %v8309_v55  ;;  %v4465_v51 = vpop.f32.mrb[21].mxu0 }
 0x510   : > { %v4485_v39 = vadd.f32 %v4465_v51, %v8309_v55  ;;  %v4467_v54 = vpop.f32.mrb[22].mxu0 }
 0x511   : > { %v6980_v34 = vmul.f32 -1.442695, %v4484_v28  ;;  %v4469_v52 = vpop.f32.mrb[23].mxu0  ;;  %v4486_v33 = vadd.f32 %v4467_v54, %v8313_v63 }
 0x512   : > { %v6981_v18 = vmul.f32 -1.442695, %v4485_v39  ;;  %v4487_v45 = vadd.f32 %v4469_v52, %v8313_v63 }
 0x513   : > { %7829 = vpow2.f32 %v6980_v34 }
 0x514   : > { %7831 = vpow2.f32 %v6981_v18 }
 0x515   : > { %v7822_v17 = vpop.eup %7821  ;;  %7833 = vtanh.f32 %v4486_v33  ;;  %v321_v33 = vld [vmem:[%s9425_s6] sm:$0xff] }
 0x516   : > { %v7824_v57 = vpop.eup %7823  ;;  %v4506_v60 = vadd.f32 1.0, %v7822_v17  ;;  %7835 = vtanh.f32 %v4487_v45  ;;  %v322_v45 = vld [vmem:[%s9425_s6 + $0x8] sm:$0xff] }
 0x517   : > { %v7826_v37 = vpop.eup %7825  ;;  %v4507_v0 = vadd.f32 1.0, %v7824_v57 }
 0x518   : > { %v7828_v2 = vpop.eup %7827  ;;  %7837 = vrcp.f32 %v4506_v60  ;;  %v4508_v55 = vadd.f32 1.0, %v7826_v37 }
 0x519   : > { %7839 = vrcp.f32 %v4507_v0  ;;  %v4509_v50 = vadd.f32 1.0, %v7828_v2  ;;  %v323_v0 = vld [vmem:[%s9425_s6 + $0x10] sm:$0xff] }
 0x51a   : > { %7841 = vrcp.f32 %v4508_v55 }
 0x51b   : > { %7843 = vrcp.f32 %v4509_v50  ;;  %v324_v50 = vld [vmem:[%s9425_s6 + $0x18] sm:$0xff] }
 0x51d   : > { %v7830_v4 = vpop.eup %7829 }
 0x51e   : > { %v7832_v15 = vpop.eup %7831  ;;  %v4510_v16 = vadd.f32 1.0, %v7830_v4 }
 0x51f   : > { %v7834_v31 = vpop.eup %7833  ;;  %v4511_v19 = vadd.f32 1.0, %v7832_v15 }
 0x520   : > { %v7836_v63 = vpop.eup %7835  ;;  %7845 = vrcp.f32 %v4510_v16 }
 0x521   : > { %7847 = vrcp.f32 %v4511_v19 }
 0x522   : > { %v7838_v3 = vpop.eup %7837 }
 0x523   : > { %v7840_v7 = vpop.eup %7839  ;;  %v4528_v59 = vmul.f32 %v7838_v3, %v7834_v31 }
 0x524   : > { %v7842_v49 = vpop.eup %7841  ;;  %v4529_v48 = vmul.f32 %v7840_v7, %v7836_v63  ;;  %v5047_v7 = vld [vmem:[#allocation2 + $0xc] sm:$0xf] }
 0x525   : > { %v7844_v32 = vpop.eup %7843  ;;  %v4526_v9 = vmul.f32 %v7842_v49, %v8317_v1  ;;  %v5049_v49 = vsel %vm8093_vm4, %v5047_v7, 0 }
 0x526   : > { %v4527_v58 = vmul.f32 %v7844_v32, %v8319_v40 }
 0x527   : > { %v4530_v56 = vadd.f32 %v4528_v59, %v4526_v9  ;;  %v5154_v9 = vsel %vm8118_vm13, %v5047_v7, 0 }
 0x528   : > { %v4531_v35 = vadd.f32 %v4529_v48, %v4527_v58  ;;  %v7046_v48 = vcombine.low %v5049_v49, %v5049_v49 }
 0x529   : > { %7849 = vtanh.f32 %v4530_v56  ;;  %v7058_v56 = vcombine.low %v5154_v9, %v5154_v9 }
 0x52a   : > { %7851 = vtanh.f32 %v4531_v35  ;;  %v7846_v38 = vpop.eup %7845 }
 0x52b   : > { %v7848_v8 = vpop.eup %7847 }
 0x533   : > { %v7850_v13 = vpop.eup %7849 }
 0x534   : > { %v7852_v12 = vpop.eup %7851  ;;  %v4534_v46 = vmul.f32 %v7850_v13, %v7846_v38  ;;  %v7070_v13 = vcombine.low %v5047_v7, %v5047_v7 }
 0x535   : > { %v4535_v36 = vmul.f32 %v7852_v12, %v7848_v8 }
 0x536   : > { %v9027_v35 = vpack.c.bf16 %v4534_v46, %v4534_v46 }
 0x537   : > { %v7201_v42 = vpack.c.bf16 %v4535_v36, %v4534_v46  ;;  %v9029_v38 = vpack.c.bf16 %v4535_v36, %v4535_v36 }
 0x539   : > { %4544 = vst [vmem:[#allocation2 + $0x4] sm:$0xff] %v7201_v42  ;;  %v5361_v8 = vsel %vm1324_vm7, %v7201_v42, 0 }
 0x53a   : > { %v7080_v12 = vcombine.low %v5361_v8, %v5361_v8  ;;  %v7081_v46 = vcombine.high %v5361_v8, %v5361_v8  ;;  %v7753_v8 = vld [vmem:[%s9423_s4 + $0x20] sm:$0xff]  }
 0x540   : > { %v4549_v21 = vld [vmem:[#allocation2] sm:$0xff]  ;;  %v4550_v1 = vld [vmem:[#allocation2 + $0x8] sm:$0xf] }
 0x541   : > { %v6990_v28 = vcombine.high %v4549_v21, %v4549_v21  ;;  %v6989_v51 = vcombine.low %v4549_v21, %v4549_v21  ;;  %v4551_v40 = vsel %vm9478_vm3, %v4549_v21, 0  ;;  %v6991_v39 = vcombine.low %v4550_v1, %v4550_v1 }
 0x542   : > { %v6997_v54 = vcombine.low %v4551_v40, %v4551_v40  ;;  %v4552_v34 = vsel %vm8021_vm8, %v4550_v1, 0  ;;  %v6998_v52 = vcombine.high %v4551_v40, %v4551_v40  ;;  %v4743_v17 = vsel %vm9479_vm9, %v4549_v21, 0 }
 0x543   : > { %4577 = vrot.lane.b32.xlu0 %v6990_v28, %s7941_s12  ;;  %4575 = vrot.lane.b32.xlu1 %v6989_v51, %s7941_s12  ;;  %v6999_v18 = vcombine.low %v4552_v34, %v4552_v34  ;;  %v7009_v57 = vcombine.low %v4743_v17, %v4743_v17  ;;  %v7010_v60 = vcombine.high %v4743_v17, %v4743_v17  ;;  %v4744_v37 = vsel %vm8052_vm12, %v4550_v1, 0  ;;  %v7749_v34 = vld [vmem:[%s9423_s4 + $0x10] sm:$0xff]  }
 0x544   : > { %v7011_v2 = vcombine.low %v4744_v37, %v4744_v37  ;;  %v4848_v55 = vsel %vm9480_vm6, %v4549_v21, 0  ;;  %v4849_v15 = vsel %vm8061_vm14, %v4550_v1, 0  ;;  %vm9481_vm3 = vcmp.ne.s16.totalorder %v8089_v41, 0 }
 0x545   : > { %v7021_v4 = vcombine.low %v4848_v55, %v4848_v55  ;;  %v7022_v31 = vcombine.high %v4848_v55, %v4848_v55  ;;  %v7023_v63 = vcombine.low %v4849_v15, %v4849_v15  ;;  %v5048_v3 = vsel %vm9481_vm3, %v7201_v42, 0 }
 0x546   : > { %v7044_v16 = vcombine.low %v5048_v3, %v5048_v3  ;;  %v7045_v59 = vcombine.high %v5048_v3, %v5048_v3  ;;  %vm9482_vm9 = vcmp.ne.s16.totalorder %v8116_v61, 0  ;;  %v5362_v21 = vsel %vm8166_vm11, %v5047_v7, 0 }
 0x547   : > { %4579 = vrot.lane.b32.xlu1 %v6991_v39, %s7941_s12  ;;  %4666 = vrot.lane.b32.xlu0 %v6997_v54, %s7939_s10  ;;  %v5153_v19 = vsel %vm9482_vm9, %v7201_v42, 0  ;;  %v7082_v36 = vcombine.low %v5362_v21, %v5362_v21  ;;  %vm9483_vm6 = vcmask 130048   ;;  %vm9485_vm9 = vcmask 924672  }
 0x548   : > { %v7056_v32 = vcombine.low %v5153_v19, %v5153_v19  ;;  %v7057_v58 = vcombine.high %v5153_v19, %v5153_v19  ;;  %vm9484_vm3 = vmmov %vm9483_vm6 }
 0x54b   : > { %4668 = vrot.lane.b32.xlu1 %v6998_v52, %s7939_s10  ;;  %4670 = vrot.lane.b32.xlu0 %v6999_v18, %s7939_s10 }
 0x54f   : > { %3380 = vperm.xlu1 %7638, %v321_v33   ;;  %3385 = vperm.xlu0 %7637, %v322_v45  }
 0x553   : > { %4763 = vrot.lane.b32.xlu1 %v7009_v57, %s7942_s13  ;;  %4765 = vrot.lane.b32.xlu0 %v7010_v60, %s7942_s13  ;;  %v7750_v57 = vld [vmem:[%s9423_s4 + $0x18] sm:$0xff]   ;;  %v7751_v60 = vld [vmem:[%s9423_s4] sm:$0xff]  }
 0x557   : > { %4767 = vrot.lane.b32.xlu1 %v7011_v2, %s7942_s13  ;;  %3390 = vperm.xlu0 %7637, %v323_v0  }
 0x55b   : > { %3395 = vperm.xlu1 %7638, %v324_v50   ;;  %4868 = vrot.lane.b32.xlu0 %v7021_v4, %s7940_s11 }
 0x55f   : > { %4870 = vrot.lane.b32.xlu1 %v7022_v31, %s7940_s11  ;;  %4872 = vrot.lane.b32.xlu0 %v7023_v63, %s7940_s11 }
 0x563   : > { %5068 = vrot.lane.b32.xlu1 %v7044_v16, %s7937_s27  ;;  %5070 = vrot.lane.b32.xlu0 %v7045_v59, %s7937_s27 }
 0x567   : > { %5072 = vrot.lane.b32.xlu1 %v7046_v48, %s7937_s27  ;;  %5173 = vrot.lane.b32.xlu0 %v7056_v32, %s7938_s28 }
 0x56b   : > { %5175 = vrot.lane.b32.xlu1 %v7057_v58, %s7938_s28  ;;  %5177 = vrot.lane.b32.xlu0 %v7058_v56, %s7938_s28 }
 0x56f   : > { %5276 = vrot.lane.b32.xlu1 %v9027_v35, %s7943_s20  ;;  %5278 = vrot.lane.b32.xlu0 %v9029_v38, %s7943_s20 }
 0x573   : > { %5280 = vrot.lane.b32.xlu1 %v7070_v13, %s7943_s20  ;;  %5381 = vrot.lane.b32.xlu0 %v7080_v12, %s7936_s26 }
 0x577   : > { %5383 = vrot.lane.b32.xlu1 %v7081_v46, %s7936_s26  ;;  %5385 = vrot.lane.b32.xlu0 %v7082_v36, %s7936_s26 }
 0x5b5   : > { %v4576_v42 = vpop.permute.xlu1 %4575  ;;  %v4578_v28 = vpop.permute.xlu0 %4577 }
 0x5b6   : > { %v4581_v51 = vsel %vm9483_vm6, %v4576_v42, %v4578_v28  ;;  %vm9486_vm6 = vcmp.ne.s16.totalorder %v8018_v10, 0 }
 0x5b7   : > { %v4590_v54 = vsel %vm389_vm0, %v4581_v51, 0 }
 0x5b9   : > { %v4580_v1 = vpop.permute.xlu1 %4579  ;;  %v4667_v40 = vpop.permute.xlu0 %4666 }
 0x5ba   : > { %v4582_v39 = vsel %vm9484_vm3, %v4578_v28, %v4580_v1  ;;  %vm9487_vm3 = vmmov %vm9485_vm9 }
 0x5bb   : > { %6992 = vmatprep.subr.msk.bf16.mxu1 %vm389_vm0, %v4582_v39 }
 0x5bc   : > { %4596 = vmatpush1.bf16.msra.mxu1 %v4590_v54  ;;  %v7754_v54 = vld [vmem:[%s9423_s4 + $0x28] sm:$0xff]  }
 0x5bd   : > { %v4669_v52 = vpop.permute.xlu1 %4668  ;;  %v4671_v18 = vpop.permute.xlu0 %4670 }
 0x5be   : > { %v4672_v33 = vsel %vm379_vm15, %v4667_v40, %v4669_v52  ;;  %v4673_v45 = vsel %vm379_vm15, %v4669_v52, %v4671_v18 }
 0x5bf   : > { %v4681_v17 = vsel %vm389_vm0, %v4672_v33, 0  ;;  %6993 = vmatmul.mubr.msk.bf16.vlgmr.msra.gmra.mrb[8].mxu1 %vm382_vm2, %v7749_v34  ;;  %7000 = vmatprep.subr.msk.bf16.mxu1 %vm389_vm0, %v4673_v45 }
 0x5c0   : > { %4687 = vmatpush1.bf16.msra.mxu1 %v4681_v17  ;;  %4637 = vmatprep.mubr.bf16.mxu1 %v8807_v53 }
 0x5c7   : > { %6994 = vmatmul.mubr.msk.bf16.gmra.mrb[12].mxu1 %vm382_vm2, %v7750_v57 }
 0x5c8   : > { %4718 = vmatprep.mubr.bf16.mxu1 %v8807_v53 }
 0x5ce   : > { %v9064_v37 = vpop.permute.xlu1 %3380  ;;  %v9066_v0 = vpop.permute.xlu0 %3385 }
 0x5cf   : > { %v3398_v2 = vadd.f32 %v8951_v5, %v9064_v37  ;;  %v3399_v55 = vadd.f32 %v8953_v6, %v9064_v37  ;;  %v3400_v50 = vadd.f32 %v8955_v44, %v9066_v0  ;;  %v3401_v4 = vadd.f32 %v8957_v23, %v9066_v0  ;;  %7001 = vmatmul.mubr.msk.bf16.vlgmr.msra.gmra.mrb[8].mxu1 %vm382_vm2, %v7751_v60  ;;  %v7752_v5 = vld [vmem:[%s9423_s4 + $0x8] sm:$0xff]  }
 0x5d0   : > { %4728 = vmatprep.mubr.bf16.mxu1 %v8807_v53 }
 0x5d1   : > { %v6852_v15 = vmul.f32 -1.442695, %v3398_v2  ;;  %v6853_v31 = vmul.f32 -1.442695, %v3399_v55  ;;  %v6854_v63 = vmul.f32 -1.442695, %v3400_v50 }
 0x5d2   : > { %v6855_v3 = vmul.f32 -1.442695, %v3401_v4  ;;  %v4764_v7 = vpop.permute.xlu1 %4763  ;;  %v4766_v16 = vpop.permute.xlu0 %4765 }
 0x5d3   : > { %7853 = vpow2.f32 %v6852_v15  ;;  %v4769_v6 = vsel %vm700_vm5, %v4764_v7, %v4766_v16 }
 0x5d4   : > { %7855 = vpow2.f32 %v6853_v31  ;;  %v4778_v48 = vsel %vm389_vm0, %v4769_v6, 0 }
 0x5d5   : > { %7857 = vpow2.f32 %v6854_v63 }
 0x5d6   : > { %7859 = vpow2.f32 %v6855_v3  ;;  %v4768_v44 = vpop.permute.xlu1 %4767  ;;  %v9082_v23 = vpop.permute.xlu0 %3390 }
 0x5d7   : > { %v4770_v59 = vsel %vm700_vm5, %v4766_v16, %v4768_v44  ;;  %v3402_v49 = vadd.f32 %v8959_v27, %v9082_v23  ;;  %v3403_v19 = vadd.f32 %v8961_v14, %v9082_v23  ;;  %7002 = vmatmul.mubr.msk.bf16.gmra.mrb[12].mxu1 %vm382_vm2, %v7752_v5  ;;  %v4976_v5 = vsel %vm389_vm0, %v9027_v35, 0 }
 0x5d8   : > { %7012 = vmatprep.subr.msk.bf16.mxu1 %vm389_vm0, %v4770_v59  ;;  %4815 = vmatprep.mubr.bf16.mxu1 %v8807_v53  ;;  %v7756_v59 = vld [vmem:[%s9423_s4 + $0x38] sm:$0xff]  }
 0x5d9   : > { %v6856_v32 = vmul.f32 -1.442695, %v3402_v49  ;;  %v6857_v9 = vmul.f32 -1.442695, %v3403_v19  ;;  %4784 = vmatpush1.bf16.msra.mxu1 %v4778_v48 }
 0x5da   : > { %v9093_v58 = vpop.permute.xlu1 %3395  ;;  %v4869_v56 = vpop.permute.xlu0 %4868 }
 0x5db   : > { %v3404_v27 = vadd.f32 %v8963_v47, %v9093_v58  ;;  %v3405_v14 = vadd.f32 %v8965_v25, %v9093_v58  ;;  %7861 = vpow2.f32 %v6856_v32  ;;  %v7757_v32 = vld [vmem:[%s9423_s4 + $0x40] sm:$0xff]  }
 0x5dc   : > { %7863 = vpow2.f32 %v6857_v9 }
 0x5dd   : > { %v7854_v13 = vpop.eup %7853  ;;  %7865 = vtanh.f32 %v3404_v27 }
 0x5de   : > { %v7856_v12 = vpop.eup %7855  ;;  %v3424_v21 = vadd.f32 1.0, %v7854_v13  ;;  %v4871_v46 = vpop.permute.xlu1 %4870  ;;  %7867 = vtanh.f32 %v3405_v14 }
 0x5df   : > { %v4873_v36 = vpop.permute.xlu0 %4872  ;;  %v7858_v42 = vpop.eup %7857  ;;  %v3425_v28 = vadd.f32 1.0, %v7856_v12  ;;  %v4874_v47 = vsel %vm814_vm1, %v4869_v56, %v4871_v46  ;;  %7013 = vmatmul.mubr.msk.bf16.vlgmr.msra.gmra.mrb[8].mxu1 %vm382_vm2, %v7753_v8 }
 0x5e0   : > { %v4875_v51 = vsel %vm814_vm1, %v4871_v46, %v4873_v36  ;;  %v7860_v25 = vpop.eup %7859  ;;  %7869 = vrcp.f32 %v3424_v21  ;;  %v3426_v1 = vadd.f32 1.0, %v7858_v42  ;;  %v4883_v40 = vsel %vm389_vm0, %v4874_v47, 0  ;;  %4825 = vmatprep.mubr.bf16.mxu1 %v8807_v53  ;;  %v7758_v36 = vld [vmem:[%s9423_s4 + $0x48] sm:$0xff]  }
 0x5e1   : > { %7024 = vmatprep.subr.msk.bf16.mxu1 %vm389_vm0, %v4875_v51  ;;  %7871 = vrcp.f32 %v3425_v28  ;;  %v3427_v39 = vadd.f32 1.0, %v7860_v25 }
 0x5e2   : > { %4889 = vmatpush1.bf16.msra.mxu1 %v4883_v40  ;;  %7873 = vrcp.f32 %v3426_v1  ;;  %v5069_v18 = vpop.permute.xlu1 %5068 }
 0x5e3   : > { %7035 = vmatprep.subr.msk.bf16.mxu1 %vm389_vm0, %v9029_v38  ;;  %7875 = vrcp.f32 %v3427_v39  ;;  %v7755_v38 = vld [vmem:[%s9423_s4 + $0x30] sm:$0xff]   ;;  %v5071_v16 = vpop.permute.xlu0 %5070 }
 0x5e4   : > { %v5074_v27 = vsel %vm784_vm10, %v5069_v18, %v5071_v16  ;;  %v7760_v39 = vld [vmem:[%s9423_s4 + $0x50] sm:$0xff]  }
 0x5e5   : > { %v7862_v34 = vpop.eup %7861  ;;  %v5083_v21 = vsel %vm389_vm0, %v5074_v27, 0 }
 0x5e6   : > { %v7864_v52 = vpop.eup %7863  ;;  %v3428_v60 = vadd.f32 1.0, %v7862_v34  ;;  %v5073_v63 = vpop.permute.xlu1 %5072 }
 0x5e7   : > { %7014 = vmatmul.mubr.msk.bf16.gmra.mrb[12].mxu1 %vm382_vm2, %v7754_v54  ;;  %v7866_v33 = vpop.eup %7865  ;;  %v3429_v50 = vadd.f32 1.0, %v7864_v52  ;;  %v5075_v44 = vsel %vm784_vm10, %v5071_v16, %v5073_v63  ;;  %v5174_v49 = vpop.permute.xlu0 %5173 }
 0x5e8   : > { %4920 = vmatprep.mubr.bf16.mxu1 %v8807_v53  ;;  %v7868_v45 = vpop.eup %7867  ;;  %7877 = vrcp.f32 %v3428_v60  ;;  %v7763_v60 = vld [vmem:[%s9423_s4 + $0x58] sm:$0xff]  }
 0x5e9   : > { %7879 = vrcp.f32 %v3429_v50 }
 0x5ea   : > { %v7870_v17 = vpop.eup %7869  ;;  %v5176_v8 = vpop.permute.xlu1 %5175 }
 0x5eb   : > { %v7872_v57 = vpop.eup %7871  ;;  %v3446_v2 = vmul.f32 %v7870_v17, %v7866_v33  ;;  %v5178_v13 = vpop.permute.xlu0 %5177  ;;  %v5179_v54 = vsel %vm9487_vm3, %v5174_v49, %v5176_v8  ;;  %vm9492_vm3 = vcmp.ne.s16.totalorder %v8089_v41, 0 }
 0x5ec   : > { %v7874_v55 = vpop.eup %7873  ;;  %v3447_v4 = vmul.f32 %v7872_v57, %v7868_v45  ;;  %v5180_v46 = vsel %vm9485_vm9, %v5176_v8, %v5178_v13  ;;  %v5188_v10 = vsel %vm389_vm0, %v5179_v54, 0  ;;  %vm9489_vm9 = vcmp.ne.s16.totalorder %v8040_v20, 0  ;;  %v7766_v13 = vld [vmem:[%s9423_s4 + $0x70] sm:$0xff]  }
 0x5ed   : > { %v7876_v15 = vpop.eup %7875  ;;  %v3444_v31 = vmul.f32 0.0, %v7874_v55 }
 0x5ee   : > { %v3445_v3 = vmul.f32 0.0, %v7876_v15  ;;  %v5277_v42 = vpop.permute.xlu1 %5276 }
 0x5ef   : > { %v9118_v7 = vadd.f32 %v3446_v2, %v3444_v31  ;;  %7025 = vmatmul.mubr.msk.bf16.vlgmr.msra.gmra.mrb[8].mxu1 %vm382_vm2, %v7755_v38  ;;  %v5279_v33 = vpop.permute.xlu0 %5278 }
 0x5f0   : > { %v9123_v6 = vadd.f32 %v3447_v4, %v3445_v3  ;;  %4982 = vmatpush1.bf16.msra.mxu1 %v4976_v5  ;;  %4930 = vmatprep.mubr.bf16.mxu1 %v8807_v53 }
 0x5f1   : > { %7881 = vtanh.f32 %v9118_v7  ;;  %7047 = vmatprep.subr.msk.bf16.mxu1 %vm389_vm0, %v5075_v44 }
 0x5f2   : > { %7883 = vtanh.f32 %v9123_v6  ;;  %v7878_v35 = vpop.eup %7877  ;;  %v5281_v34 = vpop.permute.xlu1 %5280 }
 0x5f3   : > { %v7880_v19 = vpop.eup %7879  ;;  %v5382_v20 = vpop.permute.xlu0 %5381 }
 0x5f6   : > { %v5384_v63 = vpop.permute.xlu1 %5383 }
 0x5f7   : > { %7026 = vmatmul.mubr.msk.bf16.gmra.mrb[12].mxu1 %vm382_vm2, %v7756_v59  ;;  %v5386_v3 = vpop.permute.xlu0 %5385  ;;  %v5980_v59 = vld [vmem:[#allocation3 + $0xc] sm:$0xf] }
 0x5f8   : > { %5013 = vmatprep.mubr.bf16.mxu1 %v8807_v53  ;;  %v6087_v8 = vsel %vm8118_vm13, %v5980_v59, 0  ;;  %vm9498_vm13 = vcmask 924672  }
 0x5f9   : > { %v7161_v43 = vcombine.low %v6087_v8, %v6087_v8 }
 0x5fb   : > { %v7882_v48 = vpop.eup %7881 }
 0x5fc   : > { %v7884_v9 = vpop.eup %7883  ;;  %v9144_v56 = vmul.f32 %v7882_v48, %v7878_v35  ;;  %v5982_v48 = vsel %vm8093_vm4, %v5980_v59, 0 }
 0x5fd   : > { %v9147_v14 = vmul.f32 %v7884_v9, %v7880_v19  ;;  %v7149_v27 = vcombine.low %v5982_v48, %v5982_v48  ;;  %v7778_v48 = vld [vmem:[%s9424_s5 + $0x38] sm:$0xff]  }
 0x5fe   : > { %3463 = vst [vmem:[%s9142_s9] sm:$0xff] %v9144_v56 }
 0x5ff   : > { %v9153_v12 = vpack.c.bf16 %v9147_v14, %v9144_v56  ;;  %7036 = vmatmul.mubr.msk.bf16.vlgmr.msra.gmra.mrb[8].mxu1 %vm382_vm2, %v7757_v32  ;;  %3464 = vst [vmem:[%s9142_s9 + $0x8] sm:$0xff] %v9147_v14  ;;  %v7765_v32 = vld [vmem:[%s9423_s4 + $0x68] sm:$0xff]   ;;  %v9242_v62 = vpack.c.bf16 %v9147_v14, %v9147_v14  ;;  %v7173_v14 = vcombine.low %v5980_v59, %v5980_v59 }
 0x600   : > { %5089 = vmatpush1.bf16.msra.mxu1 %v5083_v21  ;;  %5023 = vmatprep.mubr.bf16.mxu1 %v8807_v53 }
 0x601   : > { %3462 = vst [vmem:[#allocation3 + $0x4] sm:$0xff] %v9153_v12  ;;  %7059 = vmatprep.subr.msk.bf16.mxu1 %vm389_vm0, %v5180_v46  ;;  %v5981_v26 = vsel %vm9492_vm3, %v9153_v12, 0  ;;  %v9246_v46 = vpack.c.bf16 %v9144_v56, %v9144_v56 }
 0x602   : > { %v7148_v35 = vcombine.high %v5981_v26, %v5981_v26  ;;  %v7147_v19 = vcombine.low %v5981_v26, %v5981_v26  ;;  %v7776_v26 = vld [vmem:[%s9424_s5 + $0x28] sm:$0xff]  }
 0x607   : > { %7037 = vmatmul.mubr.msk.bf16.gmra.mrb[12].mxu1 %vm382_vm2, %v7758_v36  ;;  %v6294_v36 = vsel %vm1324_vm7, %v9153_v12, 0  ;;  %vm9496_vm7 = vcmask 130048  }
 0x608   : > { %v5466_v28 = vld [vmem:[#allocation3] sm:$0xff]  ;;  %v5467_v47 = vld [vmem:[#allocation3 + $0x8] sm:$0xf]  ;;  %5120 = vmatprep.mubr.bf16.mxu1 %v8807_v53  ;;  %v7183_v56 = vcombine.low %v6294_v36, %v6294_v36 }
 0x609   : > { %v5468_v51 = vsel %vm9486_vm6, %v5466_v28, 0  ;;  %v5469_v40 = vsel %vm8021_vm8, %v5467_v47, 0  ;;  %v7100_v52 = vcombine.low %v5466_v28, %v5466_v28  ;;  %vm9488_vm8 = vcmask 916480  }
 0x60a   : > { %v7089_v25 = vcombine.high %v5468_v51, %v5468_v51  ;;  %v7088_v1 = vcombine.low %v5468_v51, %v5468_v51  ;;  %v7090_v18 = vcombine.low %v5469_v40, %v5469_v40  ;;  %v5283_v11 = vsel %vm9488_vm8, %v5279_v33, %v5281_v34  ;;  %v7770_v51 = vld [vmem:[%s9423_s4 + $0x88] sm:$0xff]  }
 0x60b   : > { %v7102_v45 = vcombine.low %v5467_v47, %v5467_v47  ;;  %v7101_v17 = vcombine.high %v5466_v28, %v5466_v28  ;;  %v5676_v57 = vsel %vm9489_vm9, %v5466_v28, 0  ;;  %vm9490_vm6 = vcmp.ne.s16.totalorder %v8046_v22, 0  ;;  %v7764_v22 = vld [vmem:[%s9423_s4 + $0x60] sm:$0xff]  }
 0x60c   : > { %5490 = vrot.lane.b32.xlu0 %v7089_v25, %s7939_s10  ;;  %5488 = vrot.lane.b32.xlu1 %v7088_v1, %s7939_s10  ;;  %v7113_v2 = vcombine.high %v5676_v57, %v5676_v57  ;;  %v7112_v38 = vcombine.low %v5676_v57, %v5676_v57  ;;  %v5781_v55 = vsel %vm9490_vm6, %v5466_v28, 0  ;;  %v5677_v50 = vsel %vm8052_vm12, %v5467_v47, 0  ;;  %vm9491_vm12 = vmmov %vm9488_vm8 }
 0x60d   : > { %v7124_v4 = vcombine.low %v5781_v55, %v5781_v55  ;;  %v7114_v15 = vcombine.low %v5677_v50, %v5677_v50  ;;  %v5782_v31 = vsel %vm8061_vm14, %v5467_v47, 0  ;;  %v5282_v24 = vsel %vm9491_vm12, %v5277_v42, %v5279_v33 }
 0x60e   : > { %v7126_v16 = vcombine.low %v5782_v31, %v5782_v31  ;;  %v7125_v5 = vcombine.high %v5781_v55, %v5781_v55  ;;  %v5291_v44 = vsel %vm389_vm0, %v5282_v24, 0  ;;  %vm9493_vm14 = vcmask 908288  }
 0x60f   : > { %7048 = vmatmul.mubr.msk.bf16.vlgmr.msra.gmra.mrb[8].mxu1 %vm382_vm2, %v7760_v39  ;;  %v5388_v49 = vsel %vm9493_vm14, %v5384_v63, %v5386_v3  ;;  %vm9494_vm8 = vcmp.ne.s16.totalorder %v8116_v61, 0  ;;  %vm9495_vm4 = vmmov %vm9493_vm14  ;;  %v6295_v28 = vsel %vm8166_vm11, %v5980_v59, 0  ;;  %v7184_v47 = vcombine.high %v6294_v36, %v6294_v36  ;;  %v7775_v3 = vld [vmem:[%s9424_s5 + $0x20] sm:$0xff]   ;;  %v7777_v59 = vld [vmem:[%s9424_s5 + $0x30] sm:$0xff]  }
 0x610   : > { %5591 = vrot.lane.b32.xlu0 %v7100_v52, %s7941_s12  ;;  %5492 = vrot.lane.b32.xlu1 %v7090_v18, %s7939_s10  ;;  %v6086_v41 = vsel %vm9494_vm8, %v9153_v12, 0  ;;  %v5387_v21 = vsel %vm9495_vm4, %v5382_v20, %v5384_v63  ;;  %v7185_v12 = vcombine.low %v6295_v28, %v6295_v28  ;;  %v7771_v18 = vld [vmem:[%s9424_s5] sm:$0xff]   ;;  %vm9497_vm11 = vmmov %vm9496_vm7  ;;  %v7773_v20 = vld [vmem:[%s9424_s5 + $0x10] sm:$0xff]  }
 0x611   : > { %5194 = vmatpush1.bf16.msra.mxu1 %v5188_v10  ;;  %5130 = vmatprep.mubr.bf16.mxu1 %v8807_v53  ;;  %v7159_v9 = vcombine.low %v6086_v41, %v6086_v41  ;;  %v7160_v61 = vcombine.high %v6086_v41, %v6086_v41  ;;  %v5396_v42 = vsel %vm389_vm0, %v5387_v21, 0  ;;  %v7774_v63 = vld [vmem:[%s9424_s5 + $0x18] sm:$0xff]   ;;  %v7780_v21 = vld [vmem:[%s9424_s5 + $0x48] sm:$0xff]   ;;  %vm9503_vm9 = vmmov %vm9495_vm4 }
 0x612   : > { %7071 = vmatprep.subr.msk.bf16.mxu1 %vm389_vm0, %v5283_v11 }
 0x614   : > { %5595 = vrot.lane.b32.xlu0 %v7102_v45, %s7941_s12  ;;  %5593 = vrot.lane.b32.xlu1 %v7101_v17, %s7941_s12 }
 0x617   : > { %7049 = vmatmul.mubr.msk.bf16.gmra.mrb[12].mxu1 %vm382_vm2, %v7763_v60 }
 0x618   : > { %5698 = vrot.lane.b32.xlu0 %v7113_v2, %s7942_s13  ;;  %5696 = vrot.lane.b32.xlu1 %v7112_v38, %s7942_s13  ;;  %v7772_v2 = vld [vmem:[%s9424_s5 + $0x8] sm:$0xff]  }
 0x619   : > { %5225 = vmatprep.mubr.bf16.mxu1 %v8807_v53 }
 0x61c   : > { %5801 = vrot.lane.b32.xlu0 %v7124_v4, %s7940_s11  ;;  %5700 = vrot.lane.b32.xlu1 %v7114_v15, %s7942_s13 }
 0x61f   : > { %7060 = vmatmul.mubr.msk.bf16.vlgmr.msra.gmra.mrb[8].mxu1 %vm382_vm2, %v7764_v22 }
 0x620   : > { %5805 = vrot.lane.b32.xlu0 %v7126_v16, %s7940_s11  ;;  %5803 = vrot.lane.b32.xlu1 %v7125_v5, %s7940_s11 }
 0x621   : > { %5297 = vmatpush1.bf16.msra.mxu1 %v5291_v44  ;;  %5235 = vmatprep.mubr.bf16.mxu1 %v8807_v53 }
 0x622   : > { %7083 = vmatprep.subr.msk.bf16.mxu1 %vm389_vm0, %v5388_v49 }
 0x624   : > { %6003 = vrot.lane.b32.xlu0 %v7148_v35, %s7937_s27  ;;  %6001 = vrot.lane.b32.xlu1 %v7147_v19, %s7937_s27  ;;  %v5909_v19 = vsel %vm389_vm0, %v9246_v46, 0 }
 0x627   : > { %7061 = vmatmul.mubr.msk.bf16.gmra.mrb[12].mxu1 %vm382_vm2, %v7765_v32 }
 0x628   : > { %6106 = vrot.lane.b32.xlu0 %v7159_v9, %s7938_s28  ;;  %6005 = vrot.lane.b32.xlu1 %v7149_v27, %s7937_s27  ;;  %v7779_v9 = vld [vmem:[%s9424_s5 + $0x40] sm:$0xff]  }
 0x629   : > { %5328 = vmatprep.mubr.bf16.mxu1 %v8807_v53 }
 0x62c   : > { %6110 = vrot.lane.b32.xlu0 %v7161_v43, %s7938_s28  ;;  %6108 = vrot.lane.b32.xlu1 %v7160_v61, %s7938_s28 }
 0x62f   : > { %7072 = vmatmul.mubr.msk.bf16.vlgmr.msra.gmra.mrb[8].mxu1 %vm382_vm2, %v7766_v13 }
 0x630   : > { %6211 = vrot.lane.b32.xlu0 %v9242_v62, %s7943_s20  ;;  %6209 = vrot.lane.b32.xlu1 %v9246_v46, %s7943_s20  ;;  %v7781_v46 = vld [vmem:[%s9424_s5 + $0x50] sm:$0xff]  }
 0x631   : > { %5402 = vmatpush1.bf16.msra.mxu1 %v5396_v42  ;;  %5338 = vmatprep.mubr.bf16.mxu1 %v8807_v53 }
 0x634   : > { %6314 = vrot.lane.b32.xlu0 %v7183_v56, %s7936_s26  ;;  %6213 = vrot.lane.b32.xlu1 %v7173_v14, %s7943_s20 }
 0x637   : > { %7073 = vmatmul.mubr.msk.bf16.gmra.mrb[12].mxu1 %vm382_vm2, %v7768_v29  ;;  %v7782_v29 = vld [vmem:[%s9424_s5 + $0x58] sm:$0xff]  }
 0x638   : > { %6318 = vrot.lane.b32.xlu0 %v7185_v12, %s7936_s26  ;;  %6316 = vrot.lane.b32.xlu1 %v7184_v47, %s7936_s26  ;;  %v7783_v47 = vld [vmem:[%s9424_s5 + $0x60] sm:$0xff]  }
 0x639   : > { %5433 = vmatprep.mubr.bf16.mxu1 %v8807_v53 }
 0x63f   : > { %7084 = vmatmul.mubr.msk.bf16.vlgmr.msra.gmra.mrb[8].mxu1 %vm382_vm2, %v7769_v30 }
 0x640   : > { %5443 = vmatprep.mubr.bf16.mxu1 %v8807_v53 }
 0x647   : > { %7085 = vmatmul.mubr.msk.bf16.gmra.mrb[12].mxu1 %vm382_vm2, %v7770_v51 }
 0x648   : > { %5540 = vmatprep.mubr.bf16.mxu1 %v8807_v53 }
 0x67e   : > { %v5489_v25 = vpop.permute.xlu1 %5488  ;;  %v5491_v1 = vpop.permute.xlu0 %5490 }
 0x67f   : > { %v5494_v40 = vsel %vm379_vm15, %v5489_v25, %v5491_v1 }
 0x680   : > { %v5503_v52 = vsel %vm389_vm0, %v5494_v40, 0 }
 0x682   : > { %v5493_v39 = vpop.permute.xlu1 %5492  ;;  %v5592_v54 = vpop.permute.xlu0 %5591 }
 0x683   : > { %v5495_v34 = vsel %vm379_vm15, %v5491_v1, %v5493_v39  ;;  %vm9500_vm15 = vmmov %vm9491_vm12  ;;  %v7784_v39 = vld [vmem:[%s9424_s5 + $0x68] sm:$0xff]  }
 0x684   : > { %7091 = vmatprep.subr.msk.bf16.mxu1 %vm389_vm0, %v5495_v34 }
 0x685   : > { %5509 = vmatpush1.bf16.msra.mxu1 %v5503_v52 }
 0x686   : > { %v5594_v10 = vpop.permute.xlu1 %5593  ;;  %v5596_v33 = vpop.permute.xlu0 %5595 }
 0x687   : > { %v5597_v11 = vsel %vm9496_vm7, %v5592_v54, %v5594_v10  ;;  %v5598_v45 = vsel %vm9497_vm11, %v5594_v10, %v5596_v33  ;;  %v7785_v54 = vld [vmem:[%s9424_s5 + $0x70] sm:$0xff]   ;;  %v7787_v10 = vld [vmem:[%s9424_s5 + $0x80] sm:$0xff]   ;;  %v7788_v33 = vld [vmem:[%s9424_s5 + $0x88] sm:$0xff]  }
 0x688   : > { %v5606_v17 = vsel %vm389_vm0, %v5597_v11, 0  ;;  %7092 = vmatmul.mubr.msk.bf16.vlgmr.msra.gmra.mrb[8].mxu1 %vm382_vm2, %v7771_v18  ;;  %7103 = vmatprep.subr.msk.bf16.mxu1 %vm389_vm0, %v5598_v45  ;;  %v7786_v18 = vld [vmem:[%s9424_s5 + $0x78] sm:$0xff]  }
 0x689   : > { %5612 = vmatpush1.bf16.msra.mxu1 %v5606_v17  ;;  %5550 = vmatprep.mubr.bf16.mxu1 %v8807_v53 }
 0x68a   : > { %v5697_v57 = vpop.permute.xlu1 %5696  ;;  %v5699_v60 = vpop.permute.xlu0 %5698 }
 0x68b   : > { %v5702_v4 = vsel %vm700_vm5, %v5697_v57, %v5699_v60 }
 0x68c   : > { %v5711_v22 = vsel %vm389_vm0, %v5702_v4, 0 }
 0x68e   : > { %v5701_v38 = vpop.permute.xlu1 %5700  ;;  %v5802_v50 = vpop.permute.xlu0 %5801 }
 0x68f   : > { %v5703_v55 = vsel %vm700_vm5, %v5699_v60, %v5701_v38  ;;  %vm9502_vm5 = vmmov %vm9495_vm4 }
 0x690   : > { %7093 = vmatmul.mubr.msk.bf16.gmra.mrb[12].mxu1 %vm382_vm2, %v7772_v2  ;;  %7115 = vmatprep.subr.msk.bf16.mxu1 %vm389_vm0, %v5703_v55 }
 0x691   : > { %5643 = vmatprep.mubr.bf16.mxu1 %v8807_v53 }
 0x692   : > { %v5804_v15 = vpop.permute.xlu1 %5803  ;;  %v5806_v31 = vpop.permute.xlu0 %5805 }
 0x693   : > { %v5808_v24 = vsel %vm814_vm1, %v5804_v15, %v5806_v31  ;;  %v5807_v16 = vsel %vm814_vm1, %v5802_v50, %v5804_v15  ;;  %vm9501_vm1 = vmmov %vm9491_vm12 }
 0x694   : > { %v5816_v5 = vsel %vm389_vm0, %v5807_v16, 0 }
 0x696   : > { %v6002_v44 = vpop.permute.xlu1 %6001  ;;  %v6004_v35 = vpop.permute.xlu0 %6003 }
 0x697   : > { %v6007_v27 = vsel %vm784_vm10, %v6002_v44, %v6004_v35 }
 0x698   : > { %7104 = vmatmul.mubr.msk.bf16.vlgmr.msra.gmra.mrb[8].mxu1 %vm382_vm2, %v7773_v20  ;;  %v6016_v61 = vsel %vm389_vm0, %v6007_v27, 0 }
 0x699   : > { %5717 = vmatpush1.bf16.msra.mxu1 %v5711_v22  ;;  %5653 = vmatprep.mubr.bf16.mxu1 %v8807_v53 }
 0x69a   : > { %7127 = vmatprep.subr.msk.bf16.mxu1 %vm389_vm0, %v5808_v24  ;;  %v6006_v49 = vpop.permute.xlu1 %6005  ;;  %v6107_v32 = vpop.permute.xlu0 %6106 }
 0x69b   : > { %v6008_v41 = vsel %vm784_vm10, %v6004_v35, %v6006_v49  ;;  %vm9499_vm10 = vmmov %vm9498_vm13 }
 0x69e   : > { %v6109_v8 = vpop.permute.xlu1 %6108  ;;  %v6111_v43 = vpop.permute.xlu0 %6110 }
 0x69f   : > { %v6113_v13 = vsel %vm9498_vm13, %v6109_v8, %v6111_v43  ;;  %v6112_v36 = vsel %vm9499_vm10, %v6107_v32, %v6109_v8 }
 0x6a0   : > { %7105 = vmatmul.mubr.msk.bf16.gmra.mrb[12].mxu1 %vm382_vm2, %v7774_v63  ;;  %v6121_v14 = vsel %vm389_vm0, %v6112_v36, 0 }
 0x6a1   : > { %5748 = vmatprep.mubr.bf16.mxu1 %v8807_v53 }
 0x6a2   : > { %v6212_v56 = vpop.permute.xlu0 %6211 }
 0x6a6   : > { %v6315_v12 = vpop.permute.xlu0 %6314 }
 0x6a8   : > { %7116 = vmatmul.mubr.msk.bf16.vlgmr.msra.gmra.mrb[8].mxu1 %vm382_vm2, %v7775_v3 }
 0x6a9   : > { %5822 = vmatpush1.bf16.msra.mxu1 %v5816_v5  ;;  %5758 = vmatprep.mubr.bf16.mxu1 %v8807_v53 }
 0x6aa   : > { %7138 = vmatprep.subr.msk.bf16.mxu1 %vm389_vm0, %v9242_v62  ;;  %v6210_v62 = vpop.permute.xlu1 %6209  ;;  %v6319_v25 = vpop.permute.xlu0 %6318 }
 0x6ab   : > { %v6215_v30 = vsel %vm9501_vm1, %v6210_v62, %v6212_v56 }
 0x6ac   : > { %v6224_v1 = vsel %vm389_vm0, %v6215_v30, 0 }
 0x6ae   : > { %v6214_v42 = vpop.permute.xlu1 %6213 }
 0x6af   : > { %v6216_v28 = vsel %vm9500_vm15, %v6212_v56, %v6214_v42 }
 0x6b0   : > { %7117 = vmatmul.mubr.msk.bf16.gmra.mrb[12].mxu1 %vm382_vm2, %v7776_v26 }
 0x6b1   : > { %5853 = vmatprep.mubr.bf16.mxu1 %v8807_v53 }
 0x6b2   : > { %v6317_v51 = vpop.permute.xlu1 %6316 }
 0x6b3   : > { %v6321_v40 = vsel %vm9502_vm5, %v6317_v51, %v6319_v25  ;;  %v6320_v34 = vsel %vm9503_vm9, %v6315_v12, %v6317_v51 }
 0x6b4   : > { %v6329_v52 = vsel %vm389_vm0, %v6320_v34, 0 }
 0x6b8   : > { %7128 = vmatmul.mubr.msk.bf16.vlgmr.msra.gmra.mrb[8].mxu1 %vm382_vm2, %v7777_v59 }
 0x6b9   : > { %5915 = vmatpush1.bf16.msra.mxu1 %v5909_v19  ;;  %5863 = vmatprep.mubr.bf16.mxu1 %v8807_v53 }
 0x6ba   : > { %7150 = vmatprep.subr.msk.bf16.mxu1 %vm389_vm0, %v6008_v41 }
 0x6c0   : > { %7129 = vmatmul.mubr.msk.bf16.gmra.mrb[12].mxu1 %vm382_vm2, %v7778_v48 }
 0x6c1   : > { %5946 = vmatprep.mubr.bf16.mxu1 %v8807_v53 }
 0x6c8   : > { %7139 = vmatmul.mubr.msk.bf16.vlgmr.msra.gmra.mrb[8].mxu1 %vm382_vm2, %v7779_v9 }
 0x6c9   : > { %6022 = vmatpush1.bf16.msra.mxu1 %v6016_v61  ;;  %5956 = vmatprep.mubr.bf16.mxu1 %v8807_v53 }
 0x6ca   : > { %7162 = vmatprep.subr.msk.bf16.mxu1 %vm389_vm0, %v6113_v13 }
 0x6d0   : > { %7140 = vmatmul.mubr.msk.bf16.gmra.mrb[12].mxu1 %vm382_vm2, %v7780_v21 }
 0x6d1   : > { %6053 = vmatprep.mubr.bf16.mxu1 %v8807_v53 }
 0x6d8   : > { %7151 = vmatmul.mubr.msk.bf16.vlgmr.msra.gmra.mrb[8].mxu1 %vm382_vm2, %v7781_v46 }
 0x6d9   : > { %6127 = vmatpush1.bf16.msra.mxu1 %v6121_v14  ;;  %6063 = vmatprep.mubr.bf16.mxu1 %v8807_v53 }
 0x6da   : > { %7174 = vmatprep.subr.msk.bf16.mxu1 %vm389_vm0, %v6216_v28 }
 0x6e0   : > { %7152 = vmatmul.mubr.msk.bf16.gmra.mrb[12].mxu1 %vm382_vm2, %v7782_v29 }
 0x6e1   : > { %6158 = vmatprep.mubr.bf16.mxu1 %v8807_v53 }
 0x6e8   : > { %7163 = vmatmul.mubr.msk.bf16.vlgmr.msra.gmra.mrb[8].mxu1 %vm382_vm2, %v7783_v47 }
 0x6e9   : > { %6230 = vmatpush1.bf16.msra.mxu1 %v6224_v1  ;;  %6168 = vmatprep.mubr.bf16.mxu1 %v8807_v53 }
 0x6ea   : > { %7186 = vmatprep.subr.msk.bf16.mxu1 %vm389_vm0, %v6321_v40 }
 0x6f0   : > { %7164 = vmatmul.mubr.msk.bf16.gmra.mrb[12].mxu1 %vm382_vm2, %v7784_v39 }
 0x6f1   : > { %6261 = vmatprep.mubr.bf16.mxu1 %v8807_v53 }
 0x6f8   : > { %7175 = vmatmul.mubr.msk.bf16.vlgmr.msra.gmra.mrb[8].mxu1 %vm382_vm2, %v7785_v54 }
 0x6f9   : > { %6335 = vmatpush1.bf16.msra.mxu1 %v6329_v52  ;;  %6271 = vmatprep.mubr.bf16.mxu1 %v8807_v53 }
 0x700   : > { %7176 = vmatmul.mubr.msk.bf16.gmra.mrb[12].mxu1 %vm382_vm2, %v7786_v18 }
 0x701   : > { %6366 = vmatprep.mubr.bf16.mxu1 %v8807_v53 }
 0x708   : > { %7187 = vmatmul.mubr.msk.bf16.vlgmr.msra.gmra.mrb[8].mxu1 %vm382_vm2, %v7787_v10 }
 0x709   : > { %6376 = vmatprep.mubr.bf16.mxu1 %v8807_v53 }
 0x710   : > { %7188 = vmatmul.mubr.msk.bf16.gmra.mrb[12].mxu1 %vm382_vm2, %v7788_v33 }
 0x7db   : > { %v6368_v11 = vpop.f32.mrb[8].mxu1 }
 0x7dc   : > { %v6395_v45 = vadd.f32 %v6368_v11, %v9064_v37  ;;  %v6370_v17 = vpop.f32.mrb[9].mxu1 }
 0x7dd   : > { %v6396_v57 = vadd.f32 %v6370_v17, %v9064_v37  ;;  %v6372_v60 = vpop.f32.mrb[10].mxu1 }
 0x7de   : > { %v7189_v2 = vmul.f32 -1.442695, %v6395_v45  ;;  %v6397_v38 = vadd.f32 %v6372_v60, %v9066_v0  ;;  %v6374_v55 = vpop.f32.mrb[11].mxu1 }
 0x7df   : > { %v7190_v50 = vmul.f32 -1.442695, %v6396_v57  ;;  %v6398_v53 = vadd.f32 %v6374_v55, %v9066_v0 }
 0x7e0   : > { %7885 = vpow2.f32 %v7189_v2  ;;  %v7191_v20 = vmul.f32 -1.442695, %v6397_v38 }
 0x7e1   : > { %7887 = vpow2.f32 %v7190_v50  ;;  %v7192_v4 = vmul.f32 -1.442695, %v6398_v53 }
 0x7e2   : > { %7889 = vpow2.f32 %v7191_v20 }
 0x7e3   : > { %7891 = vpow2.f32 %v7192_v4  ;;  %v6378_v15 = vpop.f32.mrb[12].mxu1 }
 0x7e4   : > { %v6399_v31 = vadd.f32 %v6378_v15, %v9082_v23  ;;  %v6380_v22 = vpop.f32.mrb[13].mxu1 }
 0x7e5   : > { %v6400_v37 = vadd.f32 %v6380_v22, %v9082_v23  ;;  %v6382_v24 = vpop.f32.mrb[14].mxu1 }
 0x7e6   : > { %v7193_v63 = vmul.f32 -1.442695, %v6399_v31  ;;  %v6384_v3 = vpop.f32.mrb[15].mxu1  ;;  %v6401_v5 = vadd.f32 %v6382_v24, %v9093_v58 }
 0x7e7   : > { %v7194_v16 = vmul.f32 -1.442695, %v6400_v37  ;;  %v6402_v0 = vadd.f32 %v6384_v3, %v9093_v58 }
 0x7e8   : > { %7893 = vpow2.f32 %v7193_v63 }
 0x7e9   : > { %7895 = vpow2.f32 %v7194_v16 }
 0x7ea   : > { %v7886_v26 = vpop.eup %7885  ;;  %7897 = vtanh.f32 %v6401_v5 }
 0x7eb   : > { %v7888_v44 = vpop.eup %7887  ;;  %v6421_v59 = vadd.f32 1.0, %v7886_v26  ;;  %7899 = vtanh.f32 %v6402_v0 }
 0x7ec   : > { %v7890_v49 = vpop.eup %7889  ;;  %v6422_v35 = vadd.f32 1.0, %v7888_v44 }
 0x7ed   : > { %v7892_v19 = vpop.eup %7891  ;;  %7901 = vrcp.f32 %v6421_v59  ;;  %v6423_v23 = vadd.f32 1.0, %v7890_v49 }
 0x7ee   : > { %7903 = vrcp.f32 %v6422_v35  ;;  %v6424_v41 = vadd.f32 1.0, %v7892_v19 }
 0x7ef   : > { %7905 = vrcp.f32 %v6423_v23 }
 0x7f0   : > { %7907 = vrcp.f32 %v6424_v41 }
 0x7f2   : > { %v7894_v48 = vpop.eup %7893 }
 0x7f3   : > { %v7896_v32 = vpop.eup %7895  ;;  %v6425_v43 = vadd.f32 1.0, %v7894_v48 }
 0x7f4   : > { %v7898_v9 = vpop.eup %7897  ;;  %v6426_v21 = vadd.f32 1.0, %v7896_v32 }
 0x7f5   : > { %v7900_v58 = vpop.eup %7899  ;;  %7909 = vrcp.f32 %v6425_v43 }
 0x7f6   : > { %7911 = vrcp.f32 %v6426_v21 }
 0x7f7   : > { %v7902_v27 = vpop.eup %7901 }
 0x7f8   : > { %v7904_v8 = vpop.eup %7903  ;;  %v6443_v61 = vmul.f32 %v7902_v27, %v7898_v9 }
 0x7f9   : > { %v7906_v13 = vpop.eup %7905  ;;  %v6444_v62 = vmul.f32 %v7904_v8, %v7900_v58 }
 0x7fa   : > { %v7908_v46 = vpop.eup %7907  ;;  %v6441_v36 = vmul.f32 %v7906_v13, %v9118_v7 }
 0x7fb   : > { %v6442_v42 = vmul.f32 %v7908_v46, %v9123_v6 }
 0x7fc   : > { %v6445_v14 = vadd.f32 %v6443_v61, %v6441_v36 }
 0x7fd   : > { %v6446_v56 = vadd.f32 %v6444_v62, %v6442_v42 }
 0x7fe   : > { %7913 = vtanh.f32 %v6445_v14 }
 0x7ff   : > { %7915 = vtanh.f32 %v6446_v56  ;;  %v7910_v28 = vpop.eup %7909 }
 0x800   : > { %v7912_v29 = vpop.eup %7911 }
 0x808   : > { %v7914_v12 = vpop.eup %7913 }
 0x809   : > { %v7916_v47 = vpop.eup %7915  ;;  %v6449_v30 = vmul.f32 %v7914_v12, %v7910_v28 }
 0x80a   : > { %v6450_v51 = vmul.f32 %v7916_v47, %v7912_v29 }
 0x80b   : > { %6460 = vst [vmem:[%s9142_s9 + $0x10] sm:$0xff] %v6449_v30 }
 0x80c   : > { %v7202_v25 = vpack.c.bf16 %v6450_v51, %v6449_v30  ;;  %6461 = vst [vmem:[%s9142_s9 + $0x18] sm:$0xff] %v6450_v51 }
 0x80e   : > { %6459 = vst [vmem:[#allocation3 + $0x4] sm:$0xff] %v7202_v25 }
 0x80f PF: > { %s17_s24 = sadd.s32 1, %s7933_s24  }
 0x810   : > { %p14_p4 = scmp.ge.s32.totalorder %s17_s24, 4  }
 0x812   :  { %16 = sbr.rel (!%p14_p4) target bundleno = 1 (0x1), region = 103 }

</bundles_post_ra>
